<compile_context>
chip_gen: v7x
topology: tpu7x:2x2x1
jax: 0.10.0
libtpu: 0.0.40
codegen_flags: <defaults>
</compile_context>

<pallas_src>
import jax
import jax.numpy as jnp
from jax.experimental import pallas as pl
from jax.experimental.pallas import tpu as pltpu


def _sigmoid(z):
    # exact sigmoid via tanh: numerically stable, single EUP op
    return 0.5 * (jnp.tanh(0.5 * z) + 1.0)


# ---------------------- fully fused forward kernel ----------------------------
def fused_forward_kernel(x_ref, wl_ref, wh_ref, out_ref, xp_scr):
    # x_ref:  (S, TB, E)  time-major embeddings for this batch tile
    # wl_ref: (Rl, 8H)    packed LSTM slab
    # wh_ref: (Rh, 128)   packed attention / dense / head slab
    # out_ref:(TB, 128)   sigmoid outputs, lane-padded
    # xp_scr: (S, TB, 8H) hoisted input-projection scratch (reused by both layers)
    S, TB, E = x_ref.shape
    G = wl_ref.shape[1]            # 8H
    H = G // 8
    H4 = 4 * H
    f32 = jnp.float32

    # ---- static row offsets inside the LSTM slab -----------------------------
    o_wih1 = 0
    o_wih2 = o_wih1 + E
    o_whh1 = o_wih2 + 2 * H
    o_whh2 = o_whh1 + 2 * H
    o_b1 = o_whh2 + 2 * H
    o_b2 = o_b1 + 1

    def lstm_cell(g, c_prev):                       # g: (TB, 4H), order [i,f,g,o]
        i = _sigmoid(g[:, 0 * H:1 * H])
        f = _sigmoid(g[:, 1 * H:2 * H])
        gg = jnp.tanh(g[:, 2 * H:3 * H])
        o = _sigmoid(g[:, 3 * H:4 * H])
        c = f * c_prev + i * gg
        return o * jnp.tanh(c), c

    def run_bilstm(whh_blk):
        # Fused fwd/bwd recurrence: one block-diagonal (2H, 8H) matmul per step.
        hf = jnp.zeros((TB, H), f32); cf = jnp.zeros((TB, H), f32)
        hb = jnp.zeros((TB, H), f32); cb = jnp.zeros((TB, H), f32)
        hs_f = [None] * S
        hs_b = [None] * S
        for t in range(S):                          # S=8: fully unrolled, static idx
            rt = S - 1 - t
            gate_in = jnp.concatenate(
                [xp_scr[t][:, :H4], xp_scr[rt][:, H4:]], axis=-1)       # (TB, 8H)
            g = gate_in + jnp.dot(jnp.concatenate([hf, hb], axis=-1), whh_blk,
                                  preferred_element_type=f32)            # (TB, 8H)
            hf, cf = lstm_cell(g[:, :H4], cf)
            hb, cb = lstm_cell(g[:, H4:], cb)
            hs_f[t] = hf                            # fwd hidden at time t
            hs_b[rt] = hb                           # bwd hidden, re-time-aligned
        # time-aligned concat(fwd, bwd) per timestep, kept in registers
        return [jnp.concatenate([hs_f[t], hs_b[t]], axis=-1) for t in range(S)]

    # ---- layer 1: hoisted input projection (bias folded in) ------------------
    x_flat = x_ref[...].reshape(S * TB, E)
    xp1 = (jnp.dot(x_flat, wl_ref[o_wih1:o_wih1 + E, :], preferred_element_type=f32)
           + wl_ref[o_b1:o_b1 + 1, :])
    xp_scr[...] = xp1.reshape(S, TB, G)
    h1 = run_bilstm(wl_ref[o_whh1:o_whh1 + 2 * H, :])

    # ---- layer 2: single K=2H projection over the whole sequence -------------
    h1_seq = jnp.concatenate(h1, axis=0)                                  # (S*TB, 2H)
    xp2 = (jnp.dot(h1_seq, wl_ref[o_wih2:o_wih2 + 2 * H, :], preferred_element_type=f32)
           + wl_ref[o_b2:o_b2 + 1, :])
    xp_scr[...] = xp2.reshape(S, TB, G)
    h2 = run_bilstm(wl_ref[o_whh2:o_whh2 + 2 * H, :])

    # ---- head slab offsets (128-row blocks, lane-padded to 128) ---------------
    o_aw1, o_wa, o_wb, o_hw1, o_hw2, o_bias = 0, 128, 256, 384, 512, 640
    ab1 = wh_ref[o_bias + 0:o_bias + 1, :]
    aw2 = wh_ref[o_bias + 1:o_bias + 2, :]
    ba = wh_ref[o_bias + 2:o_bias + 3, :]
    bb = wh_ref[o_bias + 3:o_bias + 4, :]
    hb1 = wh_ref[o_bias + 4:o_bias + 5, :]
    hb2 = wh_ref[o_bias + 5:o_bias + 6, :]

    # ---- attention: Linear(2H,H) -> ReLU -> Linear(H,1) -> Softmax(seq) -------
    # (the Linear(H,1) bias is a per-row constant; softmax is shift-invariant,
    #  so it is dropped exactly)
    h2_seq = jnp.concatenate(h2, axis=0)                                  # (S*TB, 2H)
    a = jnp.maximum(jnp.dot(h2_seq, wh_ref[o_aw1:o_aw1 + 2 * H, :],
                            preferred_element_type=f32) + ab1, 0.0)       # (S*TB, 128)
    scores = jnp.concatenate(
        [jnp.sum(a[t * TB:(t + 1) * TB, :] * aw2, axis=-1, keepdims=True)
         for t in range(S)], axis=-1)                                     # (TB, S)
    scores = scores - jnp.max(scores, axis=-1, keepdims=True)             # lane reduce
    e = jnp.exp(scores)
    attn = e * pl.reciprocal(jnp.sum(e, axis=-1, keepdims=True), approx=True)
    ctx = jnp.zeros((TB, 2 * H), f32)
    for t in range(S):
        ctx = ctx + attn[:, t:t + 1] * h2[t]                              # (TB, 2H)

    # ---- shared dense (eval BN pre-folded) + fused 3 heads --------------------
    d = jnp.maximum(jnp.dot(ctx, wh_ref[o_wa:o_wa + 2 * H, :],
                            preferred_element_type=f32) + ba, 0.0)        # (TB, 128)
    shared = jnp.maximum(jnp.dot(d, wh_ref[o_wb:o_wb + 128, :],
                                 preferred_element_type=f32) + bb, 0.0)   # (TB, 128)
    t1 = jnp.maximum(jnp.dot(shared, wh_ref[o_hw1:o_hw1 + 128, :],
                             preferred_element_type=f32) + hb1, 0.0)      # (TB, 128)
    logits = jnp.dot(t1, wh_ref[o_hw2:o_hw2 + 128, :],
                     preferred_element_type=f32) + hb2
    out_ref[...] = _sigmoid(logits)                                       # (TB, 128)


# ------------------------------ pallas_call wrapper ----------------------------
def run_fused(xs, w_lstm, w_head, TB):
    S, Bp, E = xs.shape
    G = w_lstm.shape[1]
    nb = Bp // TB
    return pl.pallas_call(
        fused_forward_kernel,
        out_shape=jax.ShapeDtypeStruct((Bp, 128), jnp.float32),
        grid=(nb,),
        in_specs=[
            pl.BlockSpec((S, TB, E), lambda i: (0, i, 0)),     # batch-tiled input
            pl.BlockSpec(w_lstm.shape, lambda i: (0, 0)),      # weight slabs: same
            pl.BlockSpec(w_head.shape, lambda i: (0, 0)),      # block every step
        ],
        out_specs=pl.BlockSpec((TB, 128), lambda i: (i, 0)),
        scratch_shapes=[pltpu.VMEM((S, TB, G), jnp.float32)],
        compiler_params=pltpu.CompilerParams(
            dimension_semantics=("parallel",),                 # v7x: shard tiles over 2 TCs
            vmem_limit_bytes=32 * 1024 * 1024,
        ),
    )(xs, w_lstm, w_head)


# ------------------------------ parameters ------------------------------------
def init_params(key, vocab, E, H, C1, C2, C3):
    keys = iter(jax.random.split(key, 64))

    def rand(shape, scale=0.1):
        return (scale * jax.random.normal(next(keys), shape)).astype(jnp.float32)

    H4, G = 4 * H, 8 * H
    Ct = C1 + C2 + C3
    assert E % 8 == 0 and H % 8 == 0 and 3 * H <= 128 and Ct <= 128

    p = {}
    emb = rand((vocab, E))
    p["embedding"] = emb.at[0].set(0.0)                        # padding_idx = 0

    # ---- raw LSTM weights: transposed (Din,4H), gate order [i,f,g,o], b=b_ih+b_hh
    wih1f, wih1b = rand((E, H4)), rand((E, H4))
    wih2f, wih2b = rand((2 * H, H4)), rand((2 * H, H4))
    whh1f, whh1b = rand((H, H4)), rand((H, H4))
    whh2f, whh2b = rand((H, H4)), rand((H, H4))
    b1f, b1b = rand((1, H4)), rand((1, H4))
    b2f, b2b = rand((1, H4)), rand((1, H4))

    def cat2(wf, wb_):
        return jnp.concatenate([wf, wb_], axis=1)              # (Din, 8H)

    def blockdiag(wf, wb_):
        z = jnp.zeros((H, H4), jnp.float32)
        return jnp.concatenate([jnp.concatenate([wf, z], axis=1),
                                jnp.concatenate([z, wb_], axis=1)], axis=0)  # (2H, 8H)

    w_lstm = jnp.concatenate(
        [cat2(wih1f, wih1b),          # rows [0, E)
         cat2(wih2f, wih2b),          # rows [E, E+2H)
         blockdiag(whh1f, whh1b),     # rows [E+2H, E+4H)
         blockdiag(whh2f, whh2b),     # rows [E+4H, E+6H)
         cat2(b1f, b1b),              # row  E+6H
         cat2(b2f, b2b)], axis=0)     # row  E+6H+1
    w_lstm = jnp.pad(w_lstm, ((0, (-w_lstm.shape[0]) % 8), (0, 0)))
    p["w_lstm"] = w_lstm

    # ---- attention / shared dense (with BN) / heads ---------------------------
    aw1 = rand((2 * H, H)); ab1 = rand((1, H))
    aw2 = rand((1, H))                           # Linear(H,1) weight (bias cancels in softmax)
    wa = rand((2 * H, 2 * H)); ba = rand((1, 2 * H))
    wb = rand((2 * H, H)); bb = rand((1, H))

    def bn_stats(dim):
        gamma = (1.0 + 0.1 * jax.random.normal(next(keys), (dim,))).astype(jnp.float32)
        beta = (0.1 * jax.random.normal(next(keys), (dim,))).astype(jnp.float32)
        mean = (0.1 * jax.random.normal(next(keys), (dim,))).astype(jnp.float32)
        var = (1.0 + 0.1 * jax.random.uniform(next(keys), (dim,))).astype(jnp.float32)
        return gamma, beta, mean, var

    eps = 1e-5

    def fold_bn(w, b, stats):                    # eval-mode BN folded into Linear
        gamma, beta, mean, var = stats
        s = gamma / jnp.sqrt(var + eps)
        return w * s[None, :], (b - mean[None, :]) * s[None, :] + beta[None, :]

    wa_f, ba_f = fold_bn(wa, ba, bn_stats(2 * H))
    wb_f, bb_f = fold_bn(wb, bb, bn_stats(H))

    # three heads fused: (H,3H) matmul + block-diagonal (3H, Ct)
    w1s, b1s, w2s, b2s = [], [], [], []
    for C in (C1, C2, C3):
        w1s.append(rand((H, H))); b1s.append(rand((1, H)))
        w2s.append(rand((H, C))); b2s.append(rand((1, C)))
    hw1 = jnp.concatenate(w1s, axis=1)                         # (H, 3H)
    hb1 = jnp.concatenate(b1s, axis=1)                         # (1, 3H)
    hw2 = jnp.zeros((3 * H, Ct), jnp.float32)
    col = 0
    for k, C in enumerate((C1, C2, C3)):
        hw2 = hw2.at[k * H:(k + 1) * H, col:col + C].set(w2s[k])
        col += C
    hb2 = jnp.concatenate(b2s, axis=1)                         # (1, Ct)

    # ---- head slab: five 128x128 blocks + bias rows, all lane-padded to 128 ----
    def pad_block(w):
        return jnp.pad(w, ((0, 128 - w.shape[0]), (0, 128 - w.shape[1])))

    def pad_row(b):
        return jnp.pad(b, ((0, 0), (0, 128 - b.shape[1])))

    p["w_head"] = jnp.concatenate(
        [pad_block(aw1), pad_block(wa_f), pad_block(wb_f),
         pad_block(hw1), pad_block(hw2),
         pad_row(ab1), pad_row(aw2), pad_row(ba_f), pad_row(bb_f),
         pad_row(hb1), pad_row(hb2),
         jnp.zeros((2, 128), jnp.float32)], axis=0)            # (648, 128)
    return p


# -------------------------------- forward -------------------------------------
def make_forward(C1, C2, C3):
    Ct = C1 + C2 + C3

    @jax.jit
    def forward(params, tokens):
        B, S = tokens.shape
        TB = 128 if B > 128 else ((B + 7) // 8) * 8            # batch tile (sublane multiple)
        Bp = ((B + TB - 1) // TB) * TB
        tok = jnp.pad(tokens, ((0, Bp - B), (0, 0)))           # pad rows use padding_idx=0
        # TODO(synk): embedding gather + time-major transpose stay in XLA; an in-kernel
        # gather (scalar-prefetch tokens + take on a VMEM table) would save one tiny
        # HBM round-trip but risks Mosaic gather lowering.
        x = params["embedding"][tok]                           # (Bp, S, E)
        xs = jnp.transpose(x, (1, 0, 2))                       # (S, Bp, E) time-major
        out = run_fused(xs, params["w_lstm"], params["w_head"], TB)   # (Bp, 128)
        return (out[:B, :C1], out[:B, C1:C1 + C2], out[:B, C1 + C2:Ct])

    return forward


if __name__ == "__main__":
    V, E, H = 50, 16, 32
    C1, C2, C3 = 3, 5, 7
    B, S = 2, 8

    key = jax.random.PRNGKey(0)
    pkey, tkey = jax.random.split(key)
    params = init_params(pkey, V, E, H, C1, C2, C3)
    tokens = jax.random.randint(tkey, (B, S), 0, V, dtype=jnp.int32)

    forward = make_forward(C1, C2, C3)
    l1, l2, l3 = forward(params, tokens)
    jax.block_until_ready((l1, l2, l3))

    assert l1.shape == (B, C1) and l2.shape == (B, C2) and l3.shape == (B, C3)
    assert bool(jnp.all(jnp.isfinite(l1))) and bool(jnp.all(jnp.isfinite(l2))) \
        and bool(jnp.all(jnp.isfinite(l3)))
    # sigmoid outputs must lie in (0, 1)
    assert bool(jnp.all((l1 > 0) & (l1 < 1))) and bool(jnp.all((l2 > 0) & (l2 < 1))) \
        and bool(jnp.all((l3 > 0) & (l3 < 1)))
    print("KERNEL_OK")
</pallas_src>

<mosaic_0001>
module attributes {stable_mosaic.version = 11 : i64} {
  func.func @fused_forward_kernel(%arg0: i32, %arg1: memref<8x8x16xf32, #tpu.memory_space<vmem>>, %arg2: memref<216x256xf32, #tpu.memory_space<vmem>>, %arg3: memref<648x128xf32, #tpu.memory_space<vmem>>, %arg4: memref<8x128xf32, #tpu.memory_space<vmem>>, %arg5: memref<8x8x256xf32, #tpu.memory_space<vmem>>) attributes {dimension_semantics = [#tpu.dimension_semantics<parallel>], iteration_bounds = array<i64: 1>, scalar_prefetch = 0 : i64, scratch_operands = 1 : i64, tpu.core_type = #tpu.core_type<tc>, window_params = [{transform_indices = @transform_0, window_bounds = array<i64: 8, 8, 16>}, {pipeline_mode = #tpu.pipeline_mode<synchronous>, transform_indices = @transform_1, window_bounds = array<i64: 216, 256>}, {pipeline_mode = #tpu.pipeline_mode<synchronous>, transform_indices = @transform_2, window_bounds = array<i64: 648, 128>}, {transform_indices = @transform_3, window_bounds = array<i64: 8, 128>}]} {
    %c0 = arith.constant 0 : index
    %c0_0 = arith.constant 0 : index
    %c0_1 = arith.constant 0 : index
    %0 = vector.load %arg1[%c0, %c0_0, %c0_1] : memref<8x8x16xf32, #tpu.memory_space<vmem>>, vector<8x8x16xf32>
    %1 = vector.shape_cast %0 : vector<8x8x16xf32> to vector<64x16xf32>
    %c0_2 = arith.constant 0 : index
    %c0_3 = arith.constant 0 : index
    %2 = vector.load %arg2[%c0_2, %c0_3] : memref<216x256xf32, #tpu.memory_space<vmem>>, vector<16x256xf32>
    %cst = arith.constant dense<0.000000e+00> : vector<64x256xf32>
    %3 = tpu.matmul %1, %2, %cst {dimension_numbers = #tpu.dot_dimension_numbers<[1], [0], [0], [1], [0, 0, 1, 1], [], []>} : vector<64x16xf32>, vector<16x256xf32>, vector<64x256xf32> -> vector<64x256xf32>
    %c208 = arith.constant 208 : index
    %c0_4 = arith.constant 0 : index
    %4 = vector.load %arg2[%c208, %c0_4] : memref<216x256xf32, #tpu.memory_space<vmem>>, vector<1x256xf32>
    %5 = vector.broadcast %4 : vector<1x256xf32> to vector<64x256xf32>
    %6 = arith.addf %3, %5 : vector<64x256xf32>
    %7 = vector.shape_cast %6 : vector<64x256xf32> to vector<8x8x256xf32>
    %c0_5 = arith.constant 0 : index
    %c0_6 = arith.constant 0 : index
    %c0_7 = arith.constant 0 : index
    %8 = vector.load %arg5[%c0_5, %c0_6, %c0_7] : memref<8x8x256xf32, #tpu.memory_space<vmem>>, vector<8x8x256xf32>
    tpu.vector_store %arg5[%c0_5, %c0_6, %c0_7], %7 {strides = array<i32>} : memref<8x8x256xf32, #tpu.memory_space<vmem>>, vector<8x8x256xf32>,
    %c80 = arith.constant 80 : index
    %c0_8 = arith.constant 0 : index
    %9 = vector.load %arg2[%c80, %c0_8] : memref<216x256xf32, #tpu.memory_space<vmem>>, vector<64x256xf32>
    %cst_9 = arith.constant 0.000000e+00 : f32
    %10 = vector.broadcast %cst_9 : f32 to vector<8x32xf32>
    %cst_10 = arith.constant 0.000000e+00 : f32
    %11 = vector.broadcast %cst_10 : f32 to vector<8x32xf32>
    %cst_11 = arith.constant 0.000000e+00 : f32
    %12 = vector.broadcast %cst_11 : f32 to vector<8x32xf32>
    %cst_12 = arith.constant 0.000000e+00 : f32
    %13 = vector.broadcast %cst_12 : f32 to vector<8x32xf32>
    %c0_13 = arith.constant 0 : index
    %c0_14 = arith.constant 0 : index
    %c0_15 = arith.constant 0 : index
    %14 = vector.load %arg5[%c0_13, %c0_14, %c0_15] : memref<8x8x256xf32, #tpu.memory_space<vmem>>, vector<1x8x256xf32>
    %15 = vector.shape_cast %14 : vector<1x8x256xf32> to vector<8x256xf32>
    %16 = vector.extract_strided_slice %15 {offsets = [0, 0], sizes = [8, 128], strides = [1, 1]} : vector<8x256xf32> to vector<8x128xf32>
    %c7 = arith.constant 7 : index
    %c0_16 = arith.constant 0 : index
    %c0_17 = arith.constant 0 : index
    %17 = vector.load %arg5[%c7, %c0_16, %c0_17] : memref<8x8x256xf32, #tpu.memory_space<vmem>>, vector<1x8x256xf32>
    %18 = vector.shape_cast %17 : vector<1x8x256xf32> to vector<8x256xf32>
    %19 = vector.extract_strided_slice %18 {offsets = [0, 128], sizes = [8, 128], strides = [1, 1]} : vector<8x256xf32> to vector<8x128xf32>
    %20 = tpu.concatenate %16, %19 in 1 : vector<8x128xf32>, vector<8x128xf32> -> vector<8x256xf32>
    %21 = tpu.concatenate %10, %12 in 1 : vector<8x32xf32>, vector<8x32xf32> -> vector<8x64xf32>
    %cst_18 = arith.constant dense<0.000000e+00> : vector<8x256xf32>
    %22 = tpu.matmul %21, %9, %cst_18 {dimension_numbers = #tpu.dot_dimension_numbers<[1], [0], [0], [1], [0, 0, 1, 1], [], []>} : vector<8x64xf32>, vector<64x256xf32>, vector<8x256xf32> -> vector<8x256xf32>
    %23 = arith.addf %20, %22 : vector<8x256xf32>
    %24 = vector.extract_strided_slice %23 {offsets = [0, 0], sizes = [8, 128], strides = [1, 1]} : vector<8x256xf32> to vector<8x128xf32>
    %25 = vector.extract_strided_slice %24 {offsets = [0, 0], sizes = [8, 32], strides = [1, 1]} : vector<8x128xf32> to vector<8x32xf32>
    %cst_19 = arith.constant 5.000000e-01 : f32
    %26 = vector.broadcast %cst_19 : f32 to vector<8x32xf32>
    %27 = arith.mulf %26, %25 : vector<8x32xf32>
    %28 = math.tanh %27 : vector<8x32xf32>
    %cst_20 = arith.constant 1.000000e+00 : f32
    %29 = vector.broadcast %cst_20 : f32 to vector<8x32xf32>
    %30 = arith.addf %28, %29 : vector<8x32xf32>
    %cst_21 = arith.constant 5.000000e-01 : f32
    %31 = vector.broadcast %cst_21 : f32 to vector<8x32xf32>
    %32 = arith.mulf %31, %30 : vector<8x32xf32>
    %33 = vector.extract_strided_slice %24 {offsets = [0, 32], sizes = [8, 32], strides = [1, 1]} : vector<8x128xf32> to vector<8x32xf32>
    %cst_22 = arith.constant 5.000000e-01 : f32
    %34 = vector.broadcast %cst_22 : f32 to vector<8x32xf32>
    %35 = arith.mulf %34, %33 : vector<8x32xf32>
    %36 = math.tanh %35 : vector<8x32xf32>
    %cst_23 = arith.constant 1.000000e+00 : f32
    %37 = vector.broadcast %cst_23 : f32 to vector<8x32xf32>
    %38 = arith.addf %36, %37 : vector<8x32xf32>
    %cst_24 = arith.constant 5.000000e-01 : f32
    %39 = vector.broadcast %cst_24 : f32 to vector<8x32xf32>
    %40 = arith.mulf %39, %38 : vector<8x32xf32>
    %41 = vector.extract_strided_slice %24 {offsets = [0, 64], sizes = [8, 32], strides = [1, 1]} : vector<8x128xf32> to vector<8x32xf32>
    %42 = math.tanh %41 : vector<8x32xf32>
    %43 = vector.extract_strided_slice %24 {offsets = [0, 96], sizes = [8, 32], strides = [1, 1]} : vector<8x128xf32> to vector<8x32xf32>
    %cst_25 = arith.constant 5.000000e-01 : f32
    %44 = vector.broadcast %cst_25 : f32 to vector<8x32xf32>
    %45 = arith.mulf %44, %43 : vector<8x32xf32>
    %46 = math.tanh %45 : vector<8x32xf32>
    %cst_26 = arith.constant 1.000000e+00 : f32
    %47 = vector.broadcast %cst_26 : f32 to vector<8x32xf32>
    %48 = arith.addf %46, %47 : vector<8x32xf32>
    %cst_27 = arith.constant 5.000000e-01 : f32
    %49 = vector.broadcast %cst_27 : f32 to vector<8x32xf32>
    %50 = arith.mulf %49, %48 : vector<8x32xf32>
    %51 = arith.mulf %40, %11 : vector<8x32xf32>
    %52 = arith.mulf %32, %42 : vector<8x32xf32>
    %53 = arith.addf %51, %52 : vector<8x32xf32>
    %54 = math.tanh %53 : vector<8x32xf32>
    %55 = arith.mulf %50, %54 : vector<8x32xf32>
    %56 = vector.extract_strided_slice %23 {offsets = [0, 128], sizes = [8, 128], strides = [1, 1]} : vector<8x256xf32> to vector<8x128xf32>
    %57 = vector.extract_strided_slice %56 {offsets = [0, 0], sizes = [8, 32], strides = [1, 1]} : vector<8x128xf32> to vector<8x32xf32>
    %cst_28 = arith.constant 5.000000e-01 : f32
    %58 = vector.broadcast %cst_28 : f32 to vector<8x32xf32>
    %59 = arith.mulf %58, %57 : vector<8x32xf32>
    %60 = math.tanh %59 : vector<8x32xf32>
    %cst_29 = arith.constant 1.000000e+00 : f32
    %61 = vector.broadcast %cst_29 : f32 to vector<8x32xf32>
    %62 = arith.addf %60, %61 : vector<8x32xf32>
    %cst_30 = arith.constant 5.000000e-01 : f32
    %63 = vector.broadcast %cst_30 : f32 to vector<8x32xf32>
    %64 = arith.mulf %63, %62 : vector<8x32xf32>
    %65 = vector.extract_strided_slice %56 {offsets = [0, 32], sizes = [8, 32], strides = [1, 1]} : vector<8x128xf32> to vector<8x32xf32>
    %cst_31 = arith.constant 5.000000e-01 : f32
    %66 = vector.broadcast %cst_31 : f32 to vector<8x32xf32>
    %67 = arith.mulf %66, %65 : vector<8x32xf32>
    %68 = math.tanh %67 : vector<8x32xf32>
    %cst_32 = arith.constant 1.000000e+00 : f32
    %69 = vector.broadcast %cst_32 : f32 to vector<8x32xf32>
    %70 = arith.addf %68, %69 : vector<8x32xf32>
    %cst_33 = arith.constant 5.000000e-01 : f32
    %71 = vector.broadcast %cst_33 : f32 to vector<8x32xf32>
    %72 = arith.mulf %71, %70 : vector<8x32xf32>
    %73 = vector.extract_strided_slice %56 {offsets = [0, 64], sizes = [8, 32], strides = [1, 1]} : vector<8x128xf32> to vector<8x32xf32>
    %74 = math.tanh %73 : vector<8x32xf32>
    %75 = vector.extract_strided_slice %56 {offsets = [0, 96], sizes = [8, 32], strides = [1, 1]} : vector<8x128xf32> to vector<8x32xf32>
    %cst_34 = arith.constant 5.000000e-01 : f32
    %76 = vector.broadcast %cst_34 : f32 to vector<8x32xf32>
    %77 = arith.mulf %76, %75 : vector<8x32xf32>
    %78 = math.tanh %77 : vector<8x32xf32>
    %cst_35 = arith.constant 1.000000e+00 : f32
    %79 = vector.broadcast %cst_35 : f32 to vector<8x32xf32>
    %80 = arith.addf %78, %79 : vector<8x32xf32>
    %cst_36 = arith.constant 5.000000e-01 : f32
    %81 = vector.broadcast %cst_36 : f32 to vector<8x32xf32>
    %82 = arith.mulf %81, %80 : vector<8x32xf32>
    %83 = arith.mulf %72, %13 : vector<8x32xf32>
    %84 = arith.mulf %64, %74 : vector<8x32xf32>
    %85 = arith.addf %83, %84 : vector<8x32xf32>
    %86 = math.tanh %85 : vector<8x32xf32>
    %87 = arith.mulf %82, %86 : vector<8x32xf32>
    %c1 = arith.constant 1 : index
    %c0_37 = arith.constant 0 : index
    %c0_38 = arith.constant 0 : index
    %88 = vector.load %arg5[%c1, %c0_37, %c0_38] : memref<8x8x256xf32, #tpu.memory_space<vmem>>, vector<1x8x256xf32>
    %89 = vector.shape_cast %88 : vector<1x8x256xf32> to vector<8x256xf32>
    %90 = vector.extract_strided_slice %89 {offsets = [0, 0], sizes = [8, 128], strides = [1, 1]} : vector<8x256xf32> to vector<8x128xf32>
    %c6 = arith.constant 6 : index
    %c0_39 = arith.constant 0 : index
    %c0_40 = arith.constant 0 : index
    %91 = vector.load %arg5[%c6, %c0_39, %c0_40] : memref<8x8x256xf32, #tpu.memory_space<vmem>>, vector<1x8x256xf32>
    %92 = vector.shape_cast %91 : vector<1x8x256xf32> to vector<8x256xf32>
    %93 = vector.extract_strided_slice %92 {offsets = [0, 128], sizes = [8, 128], strides = [1, 1]} : vector<8x256xf32> to vector<8x128xf32>
    %94 = tpu.concatenate %90, %93 in 1 : vector<8x128xf32>, vector<8x128xf32> -> vector<8x256xf32>
    %95 = tpu.concatenate %55, %87 in 1 : vector<8x32xf32>, vector<8x32xf32> -> vector<8x64xf32>
    %cst_41 = arith.constant dense<0.000000e+00> : vector<8x256xf32>
    %96 = tpu.matmul %95, %9, %cst_41 {dimension_numbers = #tpu.dot_dimension_numbers<[1], [0], [0], [1], [0, 0, 1, 1], [], []>} : vector<8x64xf32>, vector<64x256xf32>, vector<8x256xf32> -> vector<8x256xf32>
    %97 = arith.addf %94, %96 : vector<8x256xf32>
    %98 = vector.extract_strided_slice %97 {offsets = [0, 0], sizes = [8, 128], strides = [1, 1]} : vector<8x256xf32> to vector<8x128xf32>
    %99 = vector.extract_strided_slice %98 {offsets = [0, 0], sizes = [8, 32], strides = [1, 1]} : vector<8x128xf32> to vector<8x32xf32>
    %cst_42 = arith.constant 5.000000e-01 : f32
    %100 = vector.broadcast %cst_42 : f32 to vector<8x32xf32>
    %101 = arith.mulf %100, %99 : vector<8x32xf32>
    %102 = math.tanh %101 : vector<8x32xf32>
    %cst_43 = arith.constant 1.000000e+00 : f32
    %103 = vector.broadcast %cst_43 : f32 to vector<8x32xf32>
    %104 = arith.addf %102, %103 : vector<8x32xf32>
    %cst_44 = arith.constant 5.000000e-01 : f32
    %105 = vector.broadcast %cst_44 : f32 to vector<8x32xf32>
    %106 = arith.mulf %105, %104 : vector<8x32xf32>
    %107 = vector.extract_strided_slice %98 {offsets = [0, 32], sizes = [8, 32], strides = [1, 1]} : vector<8x128xf32> to vector<8x32xf32>
    %cst_45 = arith.constant 5.000000e-01 : f32
    %108 = vector.broadcast %cst_45 : f32 to vector<8x32xf32>
    %109 = arith.mulf %108, %107 : vector<8x32xf32>
    %110 = math.tanh %109 : vector<8x32xf32>
    %cst_46 = arith.constant 1.000000e+00 : f32
    %111 = vector.broadcast %cst_46 : f32 to vector<8x32xf32>
    %112 = arith.addf %110, %111 : vector<8x32xf32>
    %cst_47 = arith.constant 5.000000e-01 : f32
    %113 = vector.broadcast %cst_47 : f32 to vector<8x32xf32>
    %114 = arith.mulf %113, %112 : vector<8x32xf32>
    %115 = vector.extract_strided_slice %98 {offsets = [0, 64], sizes = [8, 32], strides = [1, 1]} : vector<8x128xf32> to vector<8x32xf32>
    %116 = math.tanh %115 : vector<8x32xf32>
    %117 = vector.extract_strided_slice %98 {offsets = [0, 96], sizes = [8, 32], strides = [1, 1]} : vector<8x128xf32> to vector<8x32xf32>
    %cst_48 = arith.constant 5.000000e-01 : f32
    %118 = vector.broadcast %cst_48 : f32 to vector<8x32xf32>
    %119 = arith.mulf %118, %117 : vector<8x32xf32>
    %120 = math.tanh %119 : vector<8x32xf32>
    %cst_49 = arith.constant 1.000000e+00 : f32
    %121 = vector.broadcast %cst_49 : f32 to vector<8x32xf32>
    %122 = arith.addf %120, %121 : vector<8x32xf32>
    %cst_50 = arith.constant 5.000000e-01 : f32
    %123 = vector.broadcast %cst_50 : f32 to vector<8x32xf32>
    %124 = arith.mulf %123, %122 : vector<8x32xf32>
    %125 = arith.mulf %114, %53 : vector<8x32xf32>
    %126 = arith.mulf %106, %116 : vector<8x32xf32>
    %127 = arith.addf %125, %126 : vector<8x32xf32>
    %128 = math.tanh %127 : vector<8x32xf32>
    %129 = arith.mulf %124, %128 : vector<8x32xf32>
    %130 = vector.extract_strided_slice %97 {offsets = [0, 128], sizes = [8, 128], strides = [1, 1]} : vector<8x256xf32> to vector<8x128xf32>
    %131 = vector.extract_strided_slice %130 {offsets = [0, 0], sizes = [8, 32], strides = [1, 1]} : vector<8x128xf32> to vector<8x32xf32>
    %cst_51 = arith.constant 5.000000e-01 : f32
    %132 = vector.broadcast %cst_51 : f32 to vector<8x32xf32>
    %133 = arith.mulf %132, %131 : vector<8x32xf32>
    %134 = math.tanh %133 : vector<8x32xf32>
    %cst_52 = arith.constant 1.000000e+00 : f32
    %135 = vector.broadcast %cst_52 : f32 to vector<8x32xf32>
    %136 = arith.addf %134, %135 : vector<8x32xf32>
    %cst_53 = arith.constant 5.000000e-01 : f32
    %137 = vector.broadcast %cst_53 : f32 to vector<8x32xf32>
    %138 = arith.mulf %137, %136 : vector<8x32xf32>
    %139 = vector.extract_strided_slice %130 {offsets = [0, 32], sizes = [8, 32], strides = [1, 1]} : vector<8x128xf32> to vector<8x32xf32>
    %cst_54 = arith.constant 5.000000e-01 : f32
    %140 = vector.broadcast %cst_54 : f32 to vector<8x32xf32>
    %141 = arith.mulf %140, %139 : vector<8x32xf32>
    %142 = math.tanh %141 : vector<8x32xf32>
    %cst_55 = arith.constant 1.000000e+00 : f32
    %143 = vector.broadcast %cst_55 : f32 to vector<8x32xf32>
    %144 = arith.addf %142, %143 : vector<8x32xf32>
    %cst_56 = arith.constant 5.000000e-01 : f32
    %145 = vector.broadcast %cst_56 : f32 to vector<8x32xf32>
    %146 = arith.mulf %145, %144 : vector<8x32xf32>
    %147 = vector.extract_strided_slice %130 {offsets = [0, 64], sizes = [8, 32], strides = [1, 1]} : vector<8x128xf32> to vector<8x32xf32>
    %148 = math.tanh %147 : vector<8x32xf32>
    %149 = vector.extract_strided_slice %130 {offsets = [0, 96], sizes = [8, 32], strides = [1, 1]} : vector<8x128xf32> to vector<8x32xf32>
    %cst_57 = arith.constant 5.000000e-01 : f32
    %150 = vector.broadcast %cst_57 : f32 to vector<8x32xf32>
    %151 = arith.mulf %150, %149 : vector<8x32xf32>
    %152 = math.tanh %151 : vector<8x32xf32>
    %cst_58 = arith.constant 1.000000e+00 : f32
    %153 = vector.broadcast %cst_58 : f32 to vector<8x32xf32>
    %154 = arith.addf %152, %153 : vector<8x32xf32>
    %cst_59 = arith.constant 5.000000e-01 : f32
    %155 = vector.broadcast %cst_59 : f32 to vector<8x32xf32>
    %156 = arith.mulf %155, %154 : vector<8x32xf32>
    %157 = arith.mulf %146, %85 : vector<8x32xf32>
    %158 = arith.mulf %138, %148 : vector<8x32xf32>
    %159 = arith.addf %157, %158 : vector<8x32xf32>
    %160 = math.tanh %159 : vector<8x32xf32>
    %161 = arith.mulf %156, %160 : vector<8x32xf32>
    %c2 = arith.constant 2 : index
    %c0_60 = arith.constant 0 : index
    %c0_61 = arith.constant 0 : index
    %162 = vector.load %arg5[%c2, %c0_60, %c0_61] : memref<8x8x256xf32, #tpu.memory_space<vmem>>, vector<1x8x256xf32>
    %163 = vector.shape_cast %162 : vector<1x8x256xf32> to vector<8x256xf32>
    %164 = vector.extract_strided_slice %163 {offsets = [0, 0], sizes = [8, 128], strides = [1, 1]} : vector<8x256xf32> to vector<8x128xf32>
    %c5 = arith.constant 5 : index
    %c0_62 = arith.constant 0 : index
    %c0_63 = arith.constant 0 : index
    %165 = vector.load %arg5[%c5, %c0_62, %c0_63] : memref<8x8x256xf32, #tpu.memory_space<vmem>>, vector<1x8x256xf32>
    %166 = vector.shape_cast %165 : vector<1x8x256xf32> to vector<8x256xf32>
    %167 = vector.extract_strided_slice %166 {offsets = [0, 128], sizes = [8, 128], strides = [1, 1]} : vector<8x256xf32> to vector<8x128xf32>
    %168 = tpu.concatenate %164, %167 in 1 : vector<8x128xf32>, vector<8x128xf32> -> vector<8x256xf32>
    %169 = tpu.concatenate %129, %161 in 1 : vector<8x32xf32>, vector<8x32xf32> -> vector<8x64xf32>
    %cst_64 = arith.constant dense<0.000000e+00> : vector<8x256xf32>
    %170 = tpu.matmul %169, %9, %cst_64 {dimension_numbers = #tpu.dot_dimension_numbers<[1], [0], [0], [1], [0, 0, 1, 1], [], []>} : vector<8x64xf32>, vector<64x256xf32>, vector<8x256xf32> -> vector<8x256xf32>
    %171 = arith.addf %168, %170 : vector<8x256xf32>
    %172 = vector.extract_strided_slice %171 {offsets = [0, 0], sizes = [8, 128], strides = [1, 1]} : vector<8x256xf32> to vector<8x128xf32>
    %173 = vector.extract_strided_slice %172 {offsets = [0, 0], sizes = [8, 32], strides = [1, 1]} : vector<8x128xf32> to vector<8x32xf32>
    %cst_65 = arith.constant 5.000000e-01 : f32
    %174 = vector.broadcast %cst_65 : f32 to vector<8x32xf32>
    %175 = arith.mulf %174, %173 : vector<8x32xf32>
    %176 = math.tanh %175 : vector<8x32xf32>
    %cst_66 = arith.constant 1.000000e+00 : f32
    %177 = vector.broadcast %cst_66 : f32 to vector<8x32xf32>
    %178 = arith.addf %176, %177 : vector<8x32xf32>
    %cst_67 = arith.constant 5.000000e-01 : f32
    %179 = vector.broadcast %cst_67 : f32 to vector<8x32xf32>
    %180 = arith.mulf %179, %178 : vector<8x32xf32>
    %181 = vector.extract_strided_slice %172 {offsets = [0, 32], sizes = [8, 32], strides = [1, 1]} : vector<8x128xf32> to vector<8x32xf32>
    %cst_68 = arith.constant 5.000000e-01 : f32
    %182 = vector.broadcast %cst_68 : f32 to vector<8x32xf32>
    %183 = arith.mulf %182, %181 : vector<8x32xf32>
    %184 = math.tanh %183 : vector<8x32xf32>
    %cst_69 = arith.constant 1.000000e+00 : f32
    %185 = vector.broadcast %cst_69 : f32 to vector<8x32xf32>
    %186 = arith.addf %184, %185 : vector<8x32xf32>
    %cst_70 = arith.constant 5.000000e-01 : f32
    %187 = vector.broadcast %cst_70 : f32 to vector<8x32xf32>
    %188 = arith.mulf %187, %186 : vector<8x32xf32>
    %189 = vector.extract_strided_slice %172 {offsets = [0, 64], sizes = [8, 32], strides = [1, 1]} : vector<8x128xf32> to vector<8x32xf32>
    %190 = math.tanh %189 : vector<8x32xf32>
    %191 = vector.extract_strided_slice %172 {offsets = [0, 96], sizes = [8, 32], strides = [1, 1]} : vector<8x128xf32> to vector<8x32xf32>
    %cst_71 = arith.constant 5.000000e-01 : f32
    %192 = vector.broadcast %cst_71 : f32 to vector<8x32xf32>
    %193 = arith.mulf %192, %191 : vector<8x32xf32>
    %194 = math.tanh %193 : vector<8x32xf32>
    %cst_72 = arith.constant 1.000000e+00 : f32
    %195 = vector.broadcast %cst_72 : f32 to vector<8x32xf32>
    %196 = arith.addf %194, %195 : vector<8x32xf32>
    %cst_73 = arith.constant 5.000000e-01 : f32
    %197 = vector.broadcast %cst_73 : f32 to vector<8x32xf32>
    %198 = arith.mulf %197, %196 : vector<8x32xf32>
    %199 = arith.mulf %188, %127 : vector<8x32xf32>
    %200 = arith.mulf %180, %190 : vector<8x32xf32>
    %201 = arith.addf %199, %200 : vector<8x32xf32>
    %202 = math.tanh %201 : vector<8x32xf32>
    %203 = arith.mulf %198, %202 : vector<8x32xf32>
    %204 = vector.extract_strided_slice %171 {offsets = [0, 128], sizes = [8, 128], strides = [1, 1]} : vector<8x256xf32> to vector<8x128xf32>
    %205 = vector.extract_strided_slice %204 {offsets = [0, 0], sizes = [8, 32], strides = [1, 1]} : vector<8x128xf32> to vector<8x32xf32>
    %cst_74 = arith.constant 5.000000e-01 : f32
    %206 = vector.broadcast %cst_74 : f32 to vector<8x32xf32>
    %207 = arith.mulf %206, %205 : vector<8x32xf32>
    %208 = math.tanh %207 : vector<8x32xf32>
    %cst_75 = arith.constant 1.000000e+00 : f32
    %209 = vector.broadcast %cst_75 : f32 to vector<8x32xf32>
    %210 = arith.addf %208, %209 : vector<8x32xf32>
    %cst_76 = arith.constant 5.000000e-01 : f32
    %211 = vector.broadcast %cst_76 : f32 to vector<8x32xf32>
    %212 = arith.mulf %211, %210 : vector<8x32xf32>
    %213 = vector.extract_strided_slice %204 {offsets = [0, 32], sizes = [8, 32], strides = [1, 1]} : vector<8x128xf32> to vector<8x32xf32>
    %cst_77 = arith.constant 5.000000e-01 : f32
    %214 = vector.broadcast %cst_77 : f32 to vector<8x32xf32>
    %215 = arith.mulf %214, %213 : vector<8x32xf32>
    %216 = math.tanh %215 : vector<8x32xf32>
    %cst_78 = arith.constant 1.000000e+00 : f32
    %217 = vector.broadcast %cst_78 : f32 to vector<8x32xf32>
    %218 = arith.addf %216, %217 : vector<8x32xf32>
    %cst_79 = arith.constant 5.000000e-01 : f32
    %219 = vector.broadcast %cst_79 : f32 to vector<8x32xf32>
    %220 = arith.mulf %219, %218 : vector<8x32xf32>
    %221 = vector.extract_strided_slice %204 {offsets = [0, 64], sizes = [8, 32], strides = [1, 1]} : vector<8x128xf32> to vector<8x32xf32>
    %222 = math.tanh %221 : vector<8x32xf32>
    %223 = vector.extract_strided_slice %204 {offsets = [0, 96], sizes = [8, 32], strides = [1, 1]} : vector<8x128xf32> to vector<8x32xf32>
    %cst_80 = arith.constant 5.000000e-01 : f32
    %224 = vector.broadcast %cst_80 : f32 to vector<8x32xf32>
    %225 = arith.mulf %224, %223 : vector<8x32xf32>
    %226 = math.tanh %225 : vector<8x32xf32>
    %cst_81 = arith.constant 1.000000e+00 : f32
    %227 = vector.broadcast %cst_81 : f32 to vector<8x32xf32>
    %228 = arith.addf %226, %227 : vector<8x32xf32>
    %cst_82 = arith.constant 5.000000e-01 : f32
    %229 = vector.broadcast %cst_82 : f32 to vector<8x32xf32>
    %230 = arith.mulf %229, %228 : vector<8x32xf32>
    %231 = arith.mulf %220, %159 : vector<8x32xf32>
    %232 = arith.mulf %212, %222 : vector<8x32xf32>
    %233 = arith.addf %231, %232 : vector<8x32xf32>
    %234 = math.tanh %233 : vector<8x32xf32>
    %235 = arith.mulf %230, %234 : vector<8x32xf32>
    %c3 = arith.constant 3 : index
    %c0_83 = arith.constant 0 : index
    %c0_84 = arith.constant 0 : index
    %236 = vector.load %arg5[%c3, %c0_83, %c0_84] : memref<8x8x256xf32, #tpu.memory_space<vmem>>, vector<1x8x256xf32>
    %237 = vector.shape_cast %236 : vector<1x8x256xf32> to vector<8x256xf32>
    %238 = vector.extract_strided_slice %237 {offsets = [0, 0], sizes = [8, 128], strides = [1, 1]} : vector<8x256xf32> to vector<8x128xf32>
    %c4 = arith.constant 4 : index
    %c0_85 = arith.constant 0 : index
    %c0_86 = arith.constant 0 : index
    %239 = vector.load %arg5[%c4, %c0_85, %c0_86] : memref<8x8x256xf32, #tpu.memory_space<vmem>>, vector<1x8x256xf32>
    %240 = vector.shape_cast %239 : vector<1x8x256xf32> to vector<8x256xf32>
    %241 = vector.extract_strided_slice %240 {offsets = [0, 128], sizes = [8, 128], strides = [1, 1]} : vector<8x256xf32> to vector<8x128xf32>
    %242 = tpu.concatenate %238, %241 in 1 : vector<8x128xf32>, vector<8x128xf32> -> vector<8x256xf32>
    %243 = tpu.concatenate %203, %235 in 1 : vector<8x32xf32>, vector<8x32xf32> -> vector<8x64xf32>
    %cst_87 = arith.constant dense<0.000000e+00> : vector<8x256xf32>
    %244 = tpu.matmul %243, %9, %cst_87 {dimension_numbers = #tpu.dot_dimension_numbers<[1], [0], [0], [1], [0, 0, 1, 1], [], []>} : vector<8x64xf32>, vector<64x256xf32>, vector<8x256xf32> -> vector<8x256xf32>
    %245 = arith.addf %242, %244 : vector<8x256xf32>
    %246 = vector.extract_strided_slice %245 {offsets = [0, 0], sizes = [8, 128], strides = [1, 1]} : vector<8x256xf32> to vector<8x128xf32>
    %247 = vector.extract_strided_slice %246 {offsets = [0, 0], sizes = [8, 32], strides = [1, 1]} : vector<8x128xf32> to vector<8x32xf32>
    %cst_88 = arith.constant 5.000000e-01 : f32
    %248 = vector.broadcast %cst_88 : f32 to vector<8x32xf32>
    %249 = arith.mulf %248, %247 : vector<8x32xf32>
    %250 = math.tanh %249 : vector<8x32xf32>
    %cst_89 = arith.constant 1.000000e+00 : f32
    %251 = vector.broadcast %cst_89 : f32 to vector<8x32xf32>
    %252 = arith.addf %250, %251 : vector<8x32xf32>
    %cst_90 = arith.constant 5.000000e-01 : f32
    %253 = vector.broadcast %cst_90 : f32 to vector<8x32xf32>
    %254 = arith.mulf %253, %252 : vector<8x32xf32>
    %255 = vector.extract_strided_slice %246 {offsets = [0, 32], sizes = [8, 32], strides = [1, 1]} : vector<8x128xf32> to vector<8x32xf32>
    %cst_91 = arith.constant 5.000000e-01 : f32
    %256 = vector.broadcast %cst_91 : f32 to vector<8x32xf32>
    %257 = arith.mulf %256, %255 : vector<8x32xf32>
    %258 = math.tanh %257 : vector<8x32xf32>
    %cst_92 = arith.constant 1.000000e+00 : f32
    %259 = vector.broadcast %cst_92 : f32 to vector<8x32xf32>
    %260 = arith.addf %258, %259 : vector<8x32xf32>
    %cst_93 = arith.constant 5.000000e-01 : f32
    %261 = vector.broadcast %cst_93 : f32 to vector<8x32xf32>
    %262 = arith.mulf %261, %260 : vector<8x32xf32>
    %263 = vector.extract_strided_slice %246 {offsets = [0, 64], sizes = [8, 32], strides = [1, 1]} : vector<8x128xf32> to vector<8x32xf32>
    %264 = math.tanh %263 : vector<8x32xf32>
    %265 = vector.extract_strided_slice %246 {offsets = [0, 96], sizes = [8, 32], strides = [1, 1]} : vector<8x128xf32> to vector<8x32xf32>
    %cst_94 = arith.constant 5.000000e-01 : f32
    %266 = vector.broadcast %cst_94 : f32 to vector<8x32xf32>
    %267 = arith.mulf %266, %265 : vector<8x32xf32>
    %268 = math.tanh %267 : vector<8x32xf32>
    %cst_95 = arith.constant 1.000000e+00 : f32
    %269 = vector.broadcast %cst_95 : f32 to vector<8x32xf32>
    %270 = arith.addf %268, %269 : vector<8x32xf32>
    %cst_96 = arith.constant 5.000000e-01 : f32
    %271 = vector.broadcast %cst_96 : f32 to vector<8x32xf32>
    %272 = arith.mulf %271, %270 : vector<8x32xf32>
    %273 = arith.mulf %262, %201 : vector<8x32xf32>
    %274 = arith.mulf %254, %264 : vector<8x32xf32>
    %275 = arith.addf %273, %274 : vector<8x32xf32>
    %276 = math.tanh %275 : vector<8x32xf32>
    %277 = arith.mulf %272, %276 : vector<8x32xf32>
    %278 = vector.extract_strided_slice %245 {offsets = [0, 128], sizes = [8, 128], strides = [1, 1]} : vector<8x256xf32> to vector<8x128xf32>
    %279 = vector.extract_strided_slice %278 {offsets = [0, 0], sizes = [8, 32], strides = [1, 1]} : vector<8x128xf32> to vector<8x32xf32>
    %cst_97 = arith.constant 5.000000e-01 : f32
    %280 = vector.broadcast %cst_97 : f32 to vector<8x32xf32>
    %281 = arith.mulf %280, %279 : vector<8x32xf32>
    %282 = math.tanh %281 : vector<8x32xf32>
    %cst_98 = arith.constant 1.000000e+00 : f32
    %283 = vector.broadcast %cst_98 : f32 to vector<8x32xf32>
    %284 = arith.addf %282, %283 : vector<8x32xf32>
    %cst_99 = arith.constant 5.000000e-01 : f32
    %285 = vector.broadcast %cst_99 : f32 to vector<8x32xf32>
    %286 = arith.mulf %285, %284 : vector<8x32xf32>
    %287 = vector.extract_strided_slice %278 {offsets = [0, 32], sizes = [8, 32], strides = [1, 1]} : vector<8x128xf32> to vector<8x32xf32>
    %cst_100 = arith.constant 5.000000e-01 : f32
    %288 = vector.broadcast %cst_100 : f32 to vector<8x32xf32>
    %289 = arith.mulf %288, %287 : vector<8x32xf32>
    %290 = math.tanh %289 : vector<8x32xf32>
    %cst_101 = arith.constant 1.000000e+00 : f32
    %291 = vector.broadcast %cst_101 : f32 to vector<8x32xf32>
    %292 = arith.addf %290, %291 : vector<8x32xf32>
    %cst_102 = arith.constant 5.000000e-01 : f32
    %293 = vector.broadcast %cst_102 : f32 to vector<8x32xf32>
    %294 = arith.mulf %293, %292 : vector<8x32xf32>
    %295 = vector.extract_strided_slice %278 {offsets = [0, 64], sizes = [8, 32], strides = [1, 1]} : vector<8x128xf32> to vector<8x32xf32>
    %296 = math.tanh %295 : vector<8x32xf32>
    %297 = vector.extract_strided_slice %278 {offsets = [0, 96], sizes = [8, 32], strides = [1, 1]} : vector<8x128xf32> to vector<8x32xf32>
    %cst_103 = arith.constant 5.000000e-01 : f32
    %298 = vector.broadcast %cst_103 : f32 to vector<8x32xf32>
    %299 = arith.mulf %298, %297 : vector<8x32xf32>
    %300 = math.tanh %299 : vector<8x32xf32>
    %cst_104 = arith.constant 1.000000e+00 : f32
    %301 = vector.broadcast %cst_104 : f32 to vector<8x32xf32>
    %302 = arith.addf %300, %301 : vector<8x32xf32>
    %cst_105 = arith.constant 5.000000e-01 : f32
    %303 = vector.broadcast %cst_105 : f32 to vector<8x32xf32>
    %304 = arith.mulf %303, %302 : vector<8x32xf32>
    %305 = arith.mulf %294, %233 : vector<8x32xf32>
    %306 = arith.mulf %286, %296 : vector<8x32xf32>
    %307 = arith.addf %305, %306 : vector<8x32xf32>
    %308 = math.tanh %307 : vector<8x32xf32>
    %309 = arith.mulf %304, %308 : vector<8x32xf32>
    %c4_106 = arith.constant 4 : index
    %c0_107 = arith.constant 0 : index
    %c0_108 = arith.constant 0 : index
    %310 = vector.load %arg5[%c4_106, %c0_107, %c0_108] : memref<8x8x256xf32, #tpu.memory_space<vmem>>, vector<1x8x256xf32>
    %311 = vector.shape_cast %310 : vector<1x8x256xf32> to vector<8x256xf32>
    %312 = vector.extract_strided_slice %311 {offsets = [0, 0], sizes = [8, 128], strides = [1, 1]} : vector<8x256xf32> to vector<8x128xf32>
    %c3_109 = arith.constant 3 : index
    %c0_110 = arith.constant 0 : index
    %c0_111 = arith.constant 0 : index
    %313 = vector.load %arg5[%c3_109, %c0_110, %c0_111] : memref<8x8x256xf32, #tpu.memory_space<vmem>>, vector<1x8x256xf32>
    %314 = vector.shape_cast %313 : vector<1x8x256xf32> to vector<8x256xf32>
    %315 = vector.extract_strided_slice %314 {offsets = [0, 128], sizes = [8, 128], strides = [1, 1]} : vector<8x256xf32> to vector<8x128xf32>
    %316 = tpu.concatenate %312, %315 in 1 : vector<8x128xf32>, vector<8x128xf32> -> vector<8x256xf32>
    %317 = tpu.concatenate %277, %309 in 1 : vector<8x32xf32>, vector<8x32xf32> -> vector<8x64xf32>
    %cst_112 = arith.constant dense<0.000000e+00> : vector<8x256xf32>
    %318 = tpu.matmul %317, %9, %cst_112 {dimension_numbers = #tpu.dot_dimension_numbers<[1], [0], [0], [1], [0, 0, 1, 1], [], []>} : vector<8x64xf32>, vector<64x256xf32>, vector<8x256xf32> -> vector<8x256xf32>
    %319 = arith.addf %316, %318 : vector<8x256xf32>
    %320 = vector.extract_strided_slice %319 {offsets = [0, 0], sizes = [8, 128], strides = [1, 1]} : vector<8x256xf32> to vector<8x128xf32>
    %321 = vector.extract_strided_slice %320 {offsets = [0, 0], sizes = [8, 32], strides = [1, 1]} : vector<8x128xf32> to vector<8x32xf32>
    %cst_113 = arith.constant 5.000000e-01 : f32
    %322 = vector.broadcast %cst_113 : f32 to vector<8x32xf32>
    %323 = arith.mulf %322, %321 : vector<8x32xf32>
    %324 = math.tanh %323 : vector<8x32xf32>
    %cst_114 = arith.constant 1.000000e+00 : f32
    %325 = vector.broadcast %cst_114 : f32 to vector<8x32xf32>
    %326 = arith.addf %324, %325 : vector<8x32xf32>
    %cst_115 = arith.constant 5.000000e-01 : f32
    %327 = vector.broadcast %cst_115 : f32 to vector<8x32xf32>
    %328 = arith.mulf %327, %326 : vector<8x32xf32>
    %329 = vector.extract_strided_slice %320 {offsets = [0, 32], sizes = [8, 32], strides = [1, 1]} : vector<8x128xf32> to vector<8x32xf32>
    %cst_116 = arith.constant 5.000000e-01 : f32
    %330 = vector.broadcast %cst_116 : f32 to vector<8x32xf32>
    %331 = arith.mulf %330, %329 : vector<8x32xf32>
    %332 = math.tanh %331 : vector<8x32xf32>
    %cst_117 = arith.constant 1.000000e+00 : f32
    %333 = vector.broadcast %cst_117 : f32 to vector<8x32xf32>
    %334 = arith.addf %332, %333 : vector<8x32xf32>
    %cst_118 = arith.constant 5.000000e-01 : f32
    %335 = vector.broadcast %cst_118 : f32 to vector<8x32xf32>
    %336 = arith.mulf %335, %334 : vector<8x32xf32>
    %337 = vector.extract_strided_slice %320 {offsets = [0, 64], sizes = [8, 32], strides = [1, 1]} : vector<8x128xf32> to vector<8x32xf32>
    %338 = math.tanh %337 : vector<8x32xf32>
    %339 = vector.extract_strided_slice %320 {offsets = [0, 96], sizes = [8, 32], strides = [1, 1]} : vector<8x128xf32> to vector<8x32xf32>
    %cst_119 = arith.constant 5.000000e-01 : f32
    %340 = vector.broadcast %cst_119 : f32 to vector<8x32xf32>
    %341 = arith.mulf %340, %339 : vector<8x32xf32>
    %342 = math.tanh %341 : vector<8x32xf32>
    %cst_120 = arith.constant 1.000000e+00 : f32
    %343 = vector.broadcast %cst_120 : f32 to vector<8x32xf32>
    %344 = arith.addf %342, %343 : vector<8x32xf32>
    %cst_121 = arith.constant 5.000000e-01 : f32
    %345 = vector.broadcast %cst_121 : f32 to vector<8x32xf32>
    %346 = arith.mulf %345, %344 : vector<8x32xf32>
    %347 = arith.mulf %336, %275 : vector<8x32xf32>
    %348 = arith.mulf %328, %338 : vector<8x32xf32>
    %349 = arith.addf %347, %348 : vector<8x32xf32>
    %350 = math.tanh %349 : vector<8x32xf32>
    %351 = arith.mulf %346, %350 : vector<8x32xf32>
    %352 = vector.extract_strided_slice %319 {offsets = [0, 128], sizes = [8, 128], strides = [1, 1]} : vector<8x256xf32> to vector<8x128xf32>
    %353 = vector.extract_strided_slice %352 {offsets = [0, 0], sizes = [8, 32], strides = [1, 1]} : vector<8x128xf32> to vector<8x32xf32>
    %cst_122 = arith.constant 5.000000e-01 : f32
    %354 = vector.broadcast %cst_122 : f32 to vector<8x32xf32>
    %355 = arith.mulf %354, %353 : vector<8x32xf32>
    %356 = math.tanh %355 : vector<8x32xf32>
    %cst_123 = arith.constant 1.000000e+00 : f32
    %357 = vector.broadcast %cst_123 : f32 to vector<8x32xf32>
    %358 = arith.addf %356, %357 : vector<8x32xf32>
    %cst_124 = arith.constant 5.000000e-01 : f32
    %359 = vector.broadcast %cst_124 : f32 to vector<8x32xf32>
    %360 = arith.mulf %359, %358 : vector<8x32xf32>
    %361 = vector.extract_strided_slice %352 {offsets = [0, 32], sizes = [8, 32], strides = [1, 1]} : vector<8x128xf32> to vector<8x32xf32>
    %cst_125 = arith.constant 5.000000e-01 : f32
    %362 = vector.broadcast %cst_125 : f32 to vector<8x32xf32>
    %363 = arith.mulf %362, %361 : vector<8x32xf32>
    %364 = math.tanh %363 : vector<8x32xf32>
    %cst_126 = arith.constant 1.000000e+00 : f32
    %365 = vector.broadcast %cst_126 : f32 to vector<8x32xf32>
    %366 = arith.addf %364, %365 : vector<8x32xf32>
    %cst_127 = arith.constant 5.000000e-01 : f32
    %367 = vector.broadcast %cst_127 : f32 to vector<8x32xf32>
    %368 = arith.mulf %367, %366 : vector<8x32xf32>
    %369 = vector.extract_strided_slice %352 {offsets = [0, 64], sizes = [8, 32], strides = [1, 1]} : vector<8x128xf32> to vector<8x32xf32>
    %370 = math.tanh %369 : vector<8x32xf32>
    %371 = vector.extract_strided_slice %352 {offsets = [0, 96], sizes = [8, 32], strides = [1, 1]} : vector<8x128xf32> to vector<8x32xf32>
    %cst_128 = arith.constant 5.000000e-01 : f32
    %372 = vector.broadcast %cst_128 : f32 to vector<8x32xf32>
    %373 = arith.mulf %372, %371 : vector<8x32xf32>
    %374 = math.tanh %373 : vector<8x32xf32>
    %cst_129 = arith.constant 1.000000e+00 : f32
    %375 = vector.broadcast %cst_129 : f32 to vector<8x32xf32>
    %376 = arith.addf %374, %375 : vector<8x32xf32>
    %cst_130 = arith.constant 5.000000e-01 : f32
    %377 = vector.broadcast %cst_130 : f32 to vector<8x32xf32>
    %378 = arith.mulf %377, %376 : vector<8x32xf32>
    %379 = arith.mulf %368, %307 : vector<8x32xf32>
    %380 = arith.mulf %360, %370 : vector<8x32xf32>
    %381 = arith.addf %379, %380 : vector<8x32xf32>
    %382 = math.tanh %381 : vector<8x32xf32>
    %383 = arith.mulf %378, %382 : vector<8x32xf32>
    %c5_131 = arith.constant 5 : index
    %c0_132 = arith.constant 0 : index
    %c0_133 = arith.constant 0 : index
    %384 = vector.load %arg5[%c5_131, %c0_132, %c0_133] : memref<8x8x256xf32, #tpu.memory_space<vmem>>, vector<1x8x256xf32>
    %385 = vector.shape_cast %384 : vector<1x8x256xf32> to vector<8x256xf32>
    %386 = vector.extract_strided_slice %385 {offsets = [0, 0], sizes = [8, 128], strides = [1, 1]} : vector<8x256xf32> to vector<8x128xf32>
    %c2_134 = arith.constant 2 : index
    %c0_135 = arith.constant 0 : index
    %c0_136 = arith.constant 0 : index
    %387 = vector.load %arg5[%c2_134, %c0_135, %c0_136] : memref<8x8x256xf32, #tpu.memory_space<vmem>>, vector<1x8x256xf32>
    %388 = vector.shape_cast %387 : vector<1x8x256xf32> to vector<8x256xf32>
    %389 = vector.extract_strided_slice %388 {offsets = [0, 128], sizes = [8, 128], strides = [1, 1]} : vector<8x256xf32> to vector<8x128xf32>
    %390 = tpu.concatenate %386, %389 in 1 : vector<8x128xf32>, vector<8x128xf32> -> vector<8x256xf32>
    %391 = tpu.concatenate %351, %383 in 1 : vector<8x32xf32>, vector<8x32xf32> -> vector<8x64xf32>
    %cst_137 = arith.constant dense<0.000000e+00> : vector<8x256xf32>
    %392 = tpu.matmul %391, %9, %cst_137 {dimension_numbers = #tpu.dot_dimension_numbers<[1], [0], [0], [1], [0, 0, 1, 1], [], []>} : vector<8x64xf32>, vector<64x256xf32>, vector<8x256xf32> -> vector<8x256xf32>
    %393 = arith.addf %390, %392 : vector<8x256xf32>
    %394 = vector.extract_strided_slice %393 {offsets = [0, 0], sizes = [8, 128], strides = [1, 1]} : vector<8x256xf32> to vector<8x128xf32>
    %395 = vector.extract_strided_slice %394 {offsets = [0, 0], sizes = [8, 32], strides = [1, 1]} : vector<8x128xf32> to vector<8x32xf32>
    %cst_138 = arith.constant 5.000000e-01 : f32
    %396 = vector.broadcast %cst_138 : f32 to vector<8x32xf32>
    %397 = arith.mulf %396, %395 : vector<8x32xf32>
    %398 = math.tanh %397 : vector<8x32xf32>
    %cst_139 = arith.constant 1.000000e+00 : f32
    %399 = vector.broadcast %cst_139 : f32 to vector<8x32xf32>
    %400 = arith.addf %398, %399 : vector<8x32xf32>
    %cst_140 = arith.constant 5.000000e-01 : f32
    %401 = vector.broadcast %cst_140 : f32 to vector<8x32xf32>
    %402 = arith.mulf %401, %400 : vector<8x32xf32>
    %403 = vector.extract_strided_slice %394 {offsets = [0, 32], sizes = [8, 32], strides = [1, 1]} : vector<8x128xf32> to vector<8x32xf32>
    %cst_141 = arith.constant 5.000000e-01 : f32
    %404 = vector.broadcast %cst_141 : f32 to vector<8x32xf32>
    %405 = arith.mulf %404, %403 : vector<8x32xf32>
    %406 = math.tanh %405 : vector<8x32xf32>
    %cst_142 = arith.constant 1.000000e+00 : f32
    %407 = vector.broadcast %cst_142 : f32 to vector<8x32xf32>
    %408 = arith.addf %406, %407 : vector<8x32xf32>
    %cst_143 = arith.constant 5.000000e-01 : f32
    %409 = vector.broadcast %cst_143 : f32 to vector<8x32xf32>
    %410 = arith.mulf %409, %408 : vector<8x32xf32>
    %411 = vector.extract_strided_slice %394 {offsets = [0, 64], sizes = [8, 32], strides = [1, 1]} : vector<8x128xf32> to vector<8x32xf32>
    %412 = math.tanh %411 : vector<8x32xf32>
    %413 = vector.extract_strided_slice %394 {offsets = [0, 96], sizes = [8, 32], strides = [1, 1]} : vector<8x128xf32> to vector<8x32xf32>
    %cst_144 = arith.constant 5.000000e-01 : f32
    %414 = vector.broadcast %cst_144 : f32 to vector<8x32xf32>
    %415 = arith.mulf %414, %413 : vector<8x32xf32>
    %416 = math.tanh %415 : vector<8x32xf32>
    %cst_145 = arith.constant 1.000000e+00 : f32
    %417 = vector.broadcast %cst_145 : f32 to vector<8x32xf32>
    %418 = arith.addf %416, %417 : vector<8x32xf32>
    %cst_146 = arith.constant 5.000000e-01 : f32
    %419 = vector.broadcast %cst_146 : f32 to vector<8x32xf32>
    %420 = arith.mulf %419, %418 : vector<8x32xf32>
    %421 = arith.mulf %410, %349 : vector<8x32xf32>
    %422 = arith.mulf %402, %412 : vector<8x32xf32>
    %423 = arith.addf %421, %422 : vector<8x32xf32>
    %424 = math.tanh %423 : vector<8x32xf32>
    %425 = arith.mulf %420, %424 : vector<8x32xf32>
    %426 = vector.extract_strided_slice %393 {offsets = [0, 128], sizes = [8, 128], strides = [1, 1]} : vector<8x256xf32> to vector<8x128xf32>
    %427 = vector.extract_strided_slice %426 {offsets = [0, 0], sizes = [8, 32], strides = [1, 1]} : vector<8x128xf32> to vector<8x32xf32>
    %cst_147 = arith.constant 5.000000e-01 : f32
    %428 = vector.broadcast %cst_147 : f32 to vector<8x32xf32>
    %429 = arith.mulf %428, %427 : vector<8x32xf32>
    %430 = math.tanh %429 : vector<8x32xf32>
    %cst_148 = arith.constant 1.000000e+00 : f32
    %431 = vector.broadcast %cst_148 : f32 to vector<8x32xf32>
    %432 = arith.addf %430, %431 : vector<8x32xf32>
    %cst_149 = arith.constant 5.000000e-01 : f32
    %433 = vector.broadcast %cst_149 : f32 to vector<8x32xf32>
    %434 = arith.mulf %433, %432 : vector<8x32xf32>
    %435 = vector.extract_strided_slice %426 {offsets = [0, 32], sizes = [8, 32], strides = [1, 1]} : vector<8x128xf32> to vector<8x32xf32>
    %cst_150 = arith.constant 5.000000e-01 : f32
    %436 = vector.broadcast %cst_150 : f32 to vector<8x32xf32>
    %437 = arith.mulf %436, %435 : vector<8x32xf32>
    %438 = math.tanh %437 : vector<8x32xf32>
    %cst_151 = arith.constant 1.000000e+00 : f32
    %439 = vector.broadcast %cst_151 : f32 to vector<8x32xf32>
    %440 = arith.addf %438, %439 : vector<8x32xf32>
    %cst_152 = arith.constant 5.000000e-01 : f32
    %441 = vector.broadcast %cst_152 : f32 to vector<8x32xf32>
    %442 = arith.mulf %441, %440 : vector<8x32xf32>
    %443 = vector.extract_strided_slice %426 {offsets = [0, 64], sizes = [8, 32], strides = [1, 1]} : vector<8x128xf32> to vector<8x32xf32>
    %444 = math.tanh %443 : vector<8x32xf32>
    %445 = vector.extract_strided_slice %426 {offsets = [0, 96], sizes = [8, 32], strides = [1, 1]} : vector<8x128xf32> to vector<8x32xf32>
    %cst_153 = arith.constant 5.000000e-01 : f32
    %446 = vector.broadcast %cst_153 : f32 to vector<8x32xf32>
    %447 = arith.mulf %446, %445 : vector<8x32xf32>
    %448 = math.tanh %447 : vector<8x32xf32>
    %cst_154 = arith.constant 1.000000e+00 : f32
    %449 = vector.broadcast %cst_154 : f32 to vector<8x32xf32>
    %450 = arith.addf %448, %449 : vector<8x32xf32>
    %cst_155 = arith.constant 5.000000e-01 : f32
    %451 = vector.broadcast %cst_155 : f32 to vector<8x32xf32>
    %452 = arith.mulf %451, %450 : vector<8x32xf32>
    %453 = arith.mulf %442, %381 : vector<8x32xf32>
    %454 = arith.mulf %434, %444 : vector<8x32xf32>
    %455 = arith.addf %453, %454 : vector<8x32xf32>
    %456 = math.tanh %455 : vector<8x32xf32>
    %457 = arith.mulf %452, %456 : vector<8x32xf32>
    %c6_156 = arith.constant 6 : index
    %c0_157 = arith.constant 0 : index
    %c0_158 = arith.constant 0 : index
    %458 = vector.load %arg5[%c6_156, %c0_157, %c0_158] : memref<8x8x256xf32, #tpu.memory_space<vmem>>, vector<1x8x256xf32>
    %459 = vector.shape_cast %458 : vector<1x8x256xf32> to vector<8x256xf32>
    %460 = vector.extract_strided_slice %459 {offsets = [0, 0], sizes = [8, 128], strides = [1, 1]} : vector<8x256xf32> to vector<8x128xf32>
    %c1_159 = arith.constant 1 : index
    %c0_160 = arith.constant 0 : index
    %c0_161 = arith.constant 0 : index
    %461 = vector.load %arg5[%c1_159, %c0_160, %c0_161] : memref<8x8x256xf32, #tpu.memory_space<vmem>>, vector<1x8x256xf32>
    %462 = vector.shape_cast %461 : vector<1x8x256xf32> to vector<8x256xf32>
    %463 = vector.extract_strided_slice %462 {offsets = [0, 128], sizes = [8, 128], strides = [1, 1]} : vector<8x256xf32> to vector<8x128xf32>
    %464 = tpu.concatenate %460, %463 in 1 : vector<8x128xf32>, vector<8x128xf32> -> vector<8x256xf32>
    %465 = tpu.concatenate %425, %457 in 1 : vector<8x32xf32>, vector<8x32xf32> -> vector<8x64xf32>
    %cst_162 = arith.constant dense<0.000000e+00> : vector<8x256xf32>
    %466 = tpu.matmul %465, %9, %cst_162 {dimension_numbers = #tpu.dot_dimension_numbers<[1], [0], [0], [1], [0, 0, 1, 1], [], []>} : vector<8x64xf32>, vector<64x256xf32>, vector<8x256xf32> -> vector<8x256xf32>
    %467 = arith.addf %464, %466 : vector<8x256xf32>
    %468 = vector.extract_strided_slice %467 {offsets = [0, 0], sizes = [8, 128], strides = [1, 1]} : vector<8x256xf32> to vector<8x128xf32>
    %469 = vector.extract_strided_slice %468 {offsets = [0, 0], sizes = [8, 32], strides = [1, 1]} : vector<8x128xf32> to vector<8x32xf32>
    %cst_163 = arith.constant 5.000000e-01 : f32
    %470 = vector.broadcast %cst_163 : f32 to vector<8x32xf32>
    %471 = arith.mulf %470, %469 : vector<8x32xf32>
    %472 = math.tanh %471 : vector<8x32xf32>
    %cst_164 = arith.constant 1.000000e+00 : f32
    %473 = vector.broadcast %cst_164 : f32 to vector<8x32xf32>
    %474 = arith.addf %472, %473 : vector<8x32xf32>
    %cst_165 = arith.constant 5.000000e-01 : f32
    %475 = vector.broadcast %cst_165 : f32 to vector<8x32xf32>
    %476 = arith.mulf %475, %474 : vector<8x32xf32>
    %477 = vector.extract_strided_slice %468 {offsets = [0, 32], sizes = [8, 32], strides = [1, 1]} : vector<8x128xf32> to vector<8x32xf32>
    %cst_166 = arith.constant 5.000000e-01 : f32
    %478 = vector.broadcast %cst_166 : f32 to vector<8x32xf32>
    %479 = arith.mulf %478, %477 : vector<8x32xf32>
    %480 = math.tanh %479 : vector<8x32xf32>
    %cst_167 = arith.constant 1.000000e+00 : f32
    %481 = vector.broadcast %cst_167 : f32 to vector<8x32xf32>
    %482 = arith.addf %480, %481 : vector<8x32xf32>
    %cst_168 = arith.constant 5.000000e-01 : f32
    %483 = vector.broadcast %cst_168 : f32 to vector<8x32xf32>
    %484 = arith.mulf %483, %482 : vector<8x32xf32>
    %485 = vector.extract_strided_slice %468 {offsets = [0, 64], sizes = [8, 32], strides = [1, 1]} : vector<8x128xf32> to vector<8x32xf32>
    %486 = math.tanh %485 : vector<8x32xf32>
    %487 = vector.extract_strided_slice %468 {offsets = [0, 96], sizes = [8, 32], strides = [1, 1]} : vector<8x128xf32> to vector<8x32xf32>
    %cst_169 = arith.constant 5.000000e-01 : f32
    %488 = vector.broadcast %cst_169 : f32 to vector<8x32xf32>
    %489 = arith.mulf %488, %487 : vector<8x32xf32>
    %490 = math.tanh %489 : vector<8x32xf32>
    %cst_170 = arith.constant 1.000000e+00 : f32
    %491 = vector.broadcast %cst_170 : f32 to vector<8x32xf32>
    %492 = arith.addf %490, %491 : vector<8x32xf32>
    %cst_171 = arith.constant 5.000000e-01 : f32
    %493 = vector.broadcast %cst_171 : f32 to vector<8x32xf32>
    %494 = arith.mulf %493, %492 : vector<8x32xf32>
    %495 = arith.mulf %484, %423 : vector<8x32xf32>
    %496 = arith.mulf %476, %486 : vector<8x32xf32>
    %497 = arith.addf %495, %496 : vector<8x32xf32>
    %498 = math.tanh %497 : vector<8x32xf32>
    %499 = arith.mulf %494, %498 : vector<8x32xf32>
    %500 = vector.extract_strided_slice %467 {offsets = [0, 128], sizes = [8, 128], strides = [1, 1]} : vector<8x256xf32> to vector<8x128xf32>
    %501 = vector.extract_strided_slice %500 {offsets = [0, 0], sizes = [8, 32], strides = [1, 1]} : vector<8x128xf32> to vector<8x32xf32>
    %cst_172 = arith.constant 5.000000e-01 : f32
    %502 = vector.broadcast %cst_172 : f32 to vector<8x32xf32>
    %503 = arith.mulf %502, %501 : vector<8x32xf32>
    %504 = math.tanh %503 : vector<8x32xf32>
    %cst_173 = arith.constant 1.000000e+00 : f32
    %505 = vector.broadcast %cst_173 : f32 to vector<8x32xf32>
    %506 = arith.addf %504, %505 : vector<8x32xf32>
    %cst_174 = arith.constant 5.000000e-01 : f32
    %507 = vector.broadcast %cst_174 : f32 to vector<8x32xf32>
    %508 = arith.mulf %507, %506 : vector<8x32xf32>
    %509 = vector.extract_strided_slice %500 {offsets = [0, 32], sizes = [8, 32], strides = [1, 1]} : vector<8x128xf32> to vector<8x32xf32>
    %cst_175 = arith.constant 5.000000e-01 : f32
    %510 = vector.broadcast %cst_175 : f32 to vector<8x32xf32>
    %511 = arith.mulf %510, %509 : vector<8x32xf32>
    %512 = math.tanh %511 : vector<8x32xf32>
    %cst_176 = arith.constant 1.000000e+00 : f32
    %513 = vector.broadcast %cst_176 : f32 to vector<8x32xf32>
    %514 = arith.addf %512, %513 : vector<8x32xf32>
    %cst_177 = arith.constant 5.000000e-01 : f32
    %515 = vector.broadcast %cst_177 : f32 to vector<8x32xf32>
    %516 = arith.mulf %515, %514 : vector<8x32xf32>
    %517 = vector.extract_strided_slice %500 {offsets = [0, 64], sizes = [8, 32], strides = [1, 1]} : vector<8x128xf32> to vector<8x32xf32>
    %518 = math.tanh %517 : vector<8x32xf32>
    %519 = vector.extract_strided_slice %500 {offsets = [0, 96], sizes = [8, 32], strides = [1, 1]} : vector<8x128xf32> to vector<8x32xf32>
    %cst_178 = arith.constant 5.000000e-01 : f32
    %520 = vector.broadcast %cst_178 : f32 to vector<8x32xf32>
    %521 = arith.mulf %520, %519 : vector<8x32xf32>
    %522 = math.tanh %521 : vector<8x32xf32>
    %cst_179 = arith.constant 1.000000e+00 : f32
    %523 = vector.broadcast %cst_179 : f32 to vector<8x32xf32>
    %524 = arith.addf %522, %523 : vector<8x32xf32>
    %cst_180 = arith.constant 5.000000e-01 : f32
    %525 = vector.broadcast %cst_180 : f32 to vector<8x32xf32>
    %526 = arith.mulf %525, %524 : vector<8x32xf32>
    %527 = arith.mulf %516, %455 : vector<8x32xf32>
    %528 = arith.mulf %508, %518 : vector<8x32xf32>
    %529 = arith.addf %527, %528 : vector<8x32xf32>
    %530 = math.tanh %529 : vector<8x32xf32>
    %531 = arith.mulf %526, %530 : vector<8x32xf32>
    %c7_181 = arith.constant 7 : index
    %c0_182 = arith.constant 0 : index
    %c0_183 = arith.constant 0 : index
    %532 = vector.load %arg5[%c7_181, %c0_182, %c0_183] : memref<8x8x256xf32, #tpu.memory_space<vmem>>, vector<1x8x256xf32>
    %533 = vector.shape_cast %532 : vector<1x8x256xf32> to vector<8x256xf32>
    %534 = vector.extract_strided_slice %533 {offsets = [0, 0], sizes = [8, 128], strides = [1, 1]} : vector<8x256xf32> to vector<8x128xf32>
    %c0_184 = arith.constant 0 : index
    %c0_185 = arith.constant 0 : index
    %c0_186 = arith.constant 0 : index
    %535 = vector.load %arg5[%c0_184, %c0_185, %c0_186] : memref<8x8x256xf32, #tpu.memory_space<vmem>>, vector<1x8x256xf32>
    %536 = vector.shape_cast %535 : vector<1x8x256xf32> to vector<8x256xf32>
    %537 = vector.extract_strided_slice %536 {offsets = [0, 128], sizes = [8, 128], strides = [1, 1]} : vector<8x256xf32> to vector<8x128xf32>
    %538 = tpu.concatenate %534, %537 in 1 : vector<8x128xf32>, vector<8x128xf32> -> vector<8x256xf32>
    %539 = tpu.concatenate %499, %531 in 1 : vector<8x32xf32>, vector<8x32xf32> -> vector<8x64xf32>
    %cst_187 = arith.constant dense<0.000000e+00> : vector<8x256xf32>
    %540 = tpu.matmul %539, %9, %cst_187 {dimension_numbers = #tpu.dot_dimension_numbers<[1], [0], [0], [1], [0, 0, 1, 1], [], []>} : vector<8x64xf32>, vector<64x256xf32>, vector<8x256xf32> -> vector<8x256xf32>
    %541 = arith.addf %538, %540 : vector<8x256xf32>
    %542 = vector.extract_strided_slice %541 {offsets = [0, 0], sizes = [8, 128], strides = [1, 1]} : vector<8x256xf32> to vector<8x128xf32>
    %543 = vector.extract_strided_slice %542 {offsets = [0, 0], sizes = [8, 32], strides = [1, 1]} : vector<8x128xf32> to vector<8x32xf32>
    %cst_188 = arith.constant 5.000000e-01 : f32
    %544 = vector.broadcast %cst_188 : f32 to vector<8x32xf32>
    %545 = arith.mulf %544, %543 : vector<8x32xf32>
    %546 = math.tanh %545 : vector<8x32xf32>
    %cst_189 = arith.constant 1.000000e+00 : f32
    %547 = vector.broadcast %cst_189 : f32 to vector<8x32xf32>
    %548 = arith.addf %546, %547 : vector<8x32xf32>
    %cst_190 = arith.constant 5.000000e-01 : f32
    %549 = vector.broadcast %cst_190 : f32 to vector<8x32xf32>
    %550 = arith.mulf %549, %548 : vector<8x32xf32>
    %551 = vector.extract_strided_slice %542 {offsets = [0, 32], sizes = [8, 32], strides = [1, 1]} : vector<8x128xf32> to vector<8x32xf32>
    %cst_191 = arith.constant 5.000000e-01 : f32
    %552 = vector.broadcast %cst_191 : f32 to vector<8x32xf32>
    %553 = arith.mulf %552, %551 : vector<8x32xf32>
    %554 = math.tanh %553 : vector<8x32xf32>
    %cst_192 = arith.constant 1.000000e+00 : f32
    %555 = vector.broadcast %cst_192 : f32 to vector<8x32xf32>
    %556 = arith.addf %554, %555 : vector<8x32xf32>
    %cst_193 = arith.constant 5.000000e-01 : f32
    %557 = vector.broadcast %cst_193 : f32 to vector<8x32xf32>
    %558 = arith.mulf %557, %556 : vector<8x32xf32>
    %559 = vector.extract_strided_slice %542 {offsets = [0, 64], sizes = [8, 32], strides = [1, 1]} : vector<8x128xf32> to vector<8x32xf32>
    %560 = math.tanh %559 : vector<8x32xf32>
    %561 = vector.extract_strided_slice %542 {offsets = [0, 96], sizes = [8, 32], strides = [1, 1]} : vector<8x128xf32> to vector<8x32xf32>
    %cst_194 = arith.constant 5.000000e-01 : f32
    %562 = vector.broadcast %cst_194 : f32 to vector<8x32xf32>
    %563 = arith.mulf %562, %561 : vector<8x32xf32>
    %564 = math.tanh %563 : vector<8x32xf32>
    %cst_195 = arith.constant 1.000000e+00 : f32
    %565 = vector.broadcast %cst_195 : f32 to vector<8x32xf32>
    %566 = arith.addf %564, %565 : vector<8x32xf32>
    %cst_196 = arith.constant 5.000000e-01 : f32
    %567 = vector.broadcast %cst_196 : f32 to vector<8x32xf32>
    %568 = arith.mulf %567, %566 : vector<8x32xf32>
    %569 = arith.mulf %558, %497 : vector<8x32xf32>
    %570 = arith.mulf %550, %560 : vector<8x32xf32>
    %571 = arith.addf %569, %570 : vector<8x32xf32>
    %572 = math.tanh %571 : vector<8x32xf32>
    %573 = arith.mulf %568, %572 : vector<8x32xf32>
    %574 = vector.extract_strided_slice %541 {offsets = [0, 128], sizes = [8, 128], strides = [1, 1]} : vector<8x256xf32> to vector<8x128xf32>
    %575 = vector.extract_strided_slice %574 {offsets = [0, 0], sizes = [8, 32], strides = [1, 1]} : vector<8x128xf32> to vector<8x32xf32>
    %cst_197 = arith.constant 5.000000e-01 : f32
    %576 = vector.broadcast %cst_197 : f32 to vector<8x32xf32>
    %577 = arith.mulf %576, %575 : vector<8x32xf32>
    %578 = math.tanh %577 : vector<8x32xf32>
    %cst_198 = arith.constant 1.000000e+00 : f32
    %579 = vector.broadcast %cst_198 : f32 to vector<8x32xf32>
    %580 = arith.addf %578, %579 : vector<8x32xf32>
    %cst_199 = arith.constant 5.000000e-01 : f32
    %581 = vector.broadcast %cst_199 : f32 to vector<8x32xf32>
    %582 = arith.mulf %581, %580 : vector<8x32xf32>
    %583 = vector.extract_strided_slice %574 {offsets = [0, 32], sizes = [8, 32], strides = [1, 1]} : vector<8x128xf32> to vector<8x32xf32>
    %cst_200 = arith.constant 5.000000e-01 : f32
    %584 = vector.broadcast %cst_200 : f32 to vector<8x32xf32>
    %585 = arith.mulf %584, %583 : vector<8x32xf32>
    %586 = math.tanh %585 : vector<8x32xf32>
    %cst_201 = arith.constant 1.000000e+00 : f32
    %587 = vector.broadcast %cst_201 : f32 to vector<8x32xf32>
    %588 = arith.addf %586, %587 : vector<8x32xf32>
    %cst_202 = arith.constant 5.000000e-01 : f32
    %589 = vector.broadcast %cst_202 : f32 to vector<8x32xf32>
    %590 = arith.mulf %589, %588 : vector<8x32xf32>
    %591 = vector.extract_strided_slice %574 {offsets = [0, 64], sizes = [8, 32], strides = [1, 1]} : vector<8x128xf32> to vector<8x32xf32>
    %592 = math.tanh %591 : vector<8x32xf32>
    %593 = vector.extract_strided_slice %574 {offsets = [0, 96], sizes = [8, 32], strides = [1, 1]} : vector<8x128xf32> to vector<8x32xf32>
    %cst_203 = arith.constant 5.000000e-01 : f32
    %594 = vector.broadcast %cst_203 : f32 to vector<8x32xf32>
    %595 = arith.mulf %594, %593 : vector<8x32xf32>
    %596 = math.tanh %595 : vector<8x32xf32>
    %cst_204 = arith.constant 1.000000e+00 : f32
    %597 = vector.broadcast %cst_204 : f32 to vector<8x32xf32>
    %598 = arith.addf %596, %597 : vector<8x32xf32>
    %cst_205 = arith.constant 5.000000e-01 : f32
    %599 = vector.broadcast %cst_205 : f32 to vector<8x32xf32>
    %600 = arith.mulf %599, %598 : vector<8x32xf32>
    %601 = arith.mulf %590, %529 : vector<8x32xf32>
    %602 = arith.mulf %582, %592 : vector<8x32xf32>
    %603 = arith.addf %601, %602 : vector<8x32xf32>
    %604 = math.tanh %603 : vector<8x32xf32>
    %605 = arith.mulf %600, %604 : vector<8x32xf32>
    %606 = tpu.concatenate %55, %605 in 1 : vector<8x32xf32>, vector<8x32xf32> -> vector<8x64xf32>
    %607 = tpu.concatenate %129, %531 in 1 : vector<8x32xf32>, vector<8x32xf32> -> vector<8x64xf32>
    %608 = tpu.concatenate %203, %457 in 1 : vector<8x32xf32>, vector<8x32xf32> -> vector<8x64xf32>
    %609 = tpu.concatenate %277, %383 in 1 : vector<8x32xf32>, vector<8x32xf32> -> vector<8x64xf32>
    %610 = tpu.concatenate %351, %309 in 1 : vector<8x32xf32>, vector<8x32xf32> -> vector<8x64xf32>
    %611 = tpu.concatenate %425, %235 in 1 : vector<8x32xf32>, vector<8x32xf32> -> vector<8x64xf32>
    %612 = tpu.concatenate %499, %161 in 1 : vector<8x32xf32>, vector<8x32xf32> -> vector<8x64xf32>
    %613 = tpu.concatenate %573, %87 in 1 : vector<8x32xf32>, vector<8x32xf32> -> vector<8x64xf32>
    %614 = tpu.concatenate %606, %607, %608, %609, %610, %611, %612, %613 in 0 : vector<8x64xf32>, vector<8x64xf32>, vector<8x64xf32>, vector<8x64xf32>, vector<8x64xf32>, vector<8x64xf32>, vector<8x64xf32>, vector<8x64xf32> -> vector<64x64xf32>
    %c16 = arith.constant 16 : index
    %c0_206 = arith.constant 0 : index
    %615 = vector.load %arg2[%c16, %c0_206] : memref<216x256xf32, #tpu.memory_space<vmem>>, vector<64x256xf32>
    %cst_207 = arith.constant dense<0.000000e+00> : vector<64x256xf32>
    %616 = tpu.matmul %614, %615, %cst_207 {dimension_numbers = #tpu.dot_dimension_numbers<[1], [0], [0], [1], [0, 0, 1, 1], [], []>} : vector<64x64xf32>, vector<64x256xf32>, vector<64x256xf32> -> vector<64x256xf32>
    %c209 = arith.constant 209 : index
    %c0_208 = arith.constant 0 : index
    %617 = vector.load %arg2[%c209, %c0_208] : memref<216x256xf32, #tpu.memory_space<vmem>>, vector<1x256xf32>
    %618 = vector.broadcast %617 : vector<1x256xf32> to vector<64x256xf32>
    %619 = arith.addf %616, %618 : vector<64x256xf32>
    %620 = vector.shape_cast %619 : vector<64x256xf32> to vector<8x8x256xf32>
    %c0_209 = arith.constant 0 : index
    %c0_210 = arith.constant 0 : index
    %c0_211 = arith.constant 0 : index
    %621 = vector.load %arg5[%c0_209, %c0_210, %c0_211] : memref<8x8x256xf32, #tpu.memory_space<vmem>>, vector<8x8x256xf32>
    tpu.vector_store %arg5[%c0_209, %c0_210, %c0_211], %620 {strides = array<i32>} : memref<8x8x256xf32, #tpu.memory_space<vmem>>, vector<8x8x256xf32>,
    %c144 = arith.constant 144 : index
    %c0_212 = arith.constant 0 : index
    %622 = vector.load %arg2[%c144, %c0_212] : memref<216x256xf32, #tpu.memory_space<vmem>>, vector<64x256xf32>
    %cst_213 = arith.constant 0.000000e+00 : f32
    %623 = vector.broadcast %cst_213 : f32 to vector<8x32xf32>
    %cst_214 = arith.constant 0.000000e+00 : f32
    %624 = vector.broadcast %cst_214 : f32 to vector<8x32xf32>
    %cst_215 = arith.constant 0.000000e+00 : f32
    %625 = vector.broadcast %cst_215 : f32 to vector<8x32xf32>
    %cst_216 = arith.constant 0.000000e+00 : f32
    %626 = vector.broadcast %cst_216 : f32 to vector<8x32xf32>
    %c0_217 = arith.constant 0 : index
    %c0_218 = arith.constant 0 : index
    %c0_219 = arith.constant 0 : index
    %627 = vector.load %arg5[%c0_217, %c0_218, %c0_219] : memref<8x8x256xf32, #tpu.memory_space<vmem>>, vector<1x8x256xf32>
    %628 = vector.shape_cast %627 : vector<1x8x256xf32> to vector<8x256xf32>
    %629 = vector.extract_strided_slice %628 {offsets = [0, 0], sizes = [8, 128], strides = [1, 1]} : vector<8x256xf32> to vector<8x128xf32>
    %c7_220 = arith.constant 7 : index
    %c0_221 = arith.constant 0 : index
    %c0_222 = arith.constant 0 : index
    %630 = vector.load %arg5[%c7_220, %c0_221, %c0_222] : memref<8x8x256xf32, #tpu.memory_space<vmem>>, vector<1x8x256xf32>
    %631 = vector.shape_cast %630 : vector<1x8x256xf32> to vector<8x256xf32>
    %632 = vector.extract_strided_slice %631 {offsets = [0, 128], sizes = [8, 128], strides = [1, 1]} : vector<8x256xf32> to vector<8x128xf32>
    %633 = tpu.concatenate %629, %632 in 1 : vector<8x128xf32>, vector<8x128xf32> -> vector<8x256xf32>
    %634 = tpu.concatenate %623, %625 in 1 : vector<8x32xf32>, vector<8x32xf32> -> vector<8x64xf32>
    %cst_223 = arith.constant dense<0.000000e+00> : vector<8x256xf32>
    %635 = tpu.matmul %634, %622, %cst_223 {dimension_numbers = #tpu.dot_dimension_numbers<[1], [0], [0], [1], [0, 0, 1, 1], [], []>} : vector<8x64xf32>, vector<64x256xf32>, vector<8x256xf32> -> vector<8x256xf32>
    %636 = arith.addf %633, %635 : vector<8x256xf32>
    %637 = vector.extract_strided_slice %636 {offsets = [0, 0], sizes = [8, 128], strides = [1, 1]} : vector<8x256xf32> to vector<8x128xf32>
    %638 = vector.extract_strided_slice %637 {offsets = [0, 0], sizes = [8, 32], strides = [1, 1]} : vector<8x128xf32> to vector<8x32xf32>
    %cst_224 = arith.constant 5.000000e-01 : f32
    %639 = vector.broadcast %cst_224 : f32 to vector<8x32xf32>
    %640 = arith.mulf %639, %638 : vector<8x32xf32>
    %641 = math.tanh %640 : vector<8x32xf32>
    %cst_225 = arith.constant 1.000000e+00 : f32
    %642 = vector.broadcast %cst_225 : f32 to vector<8x32xf32>
    %643 = arith.addf %641, %642 : vector<8x32xf32>
    %cst_226 = arith.constant 5.000000e-01 : f32
    %644 = vector.broadcast %cst_226 : f32 to vector<8x32xf32>
    %645 = arith.mulf %644, %643 : vector<8x32xf32>
    %646 = vector.extract_strided_slice %637 {offsets = [0, 32], sizes = [8, 32], strides = [1, 1]} : vector<8x128xf32> to vector<8x32xf32>
    %cst_227 = arith.constant 5.000000e-01 : f32
    %647 = vector.broadcast %cst_227 : f32 to vector<8x32xf32>
    %648 = arith.mulf %647, %646 : vector<8x32xf32>
    %649 = math.tanh %648 : vector<8x32xf32>
    %cst_228 = arith.constant 1.000000e+00 : f32
    %650 = vector.broadcast %cst_228 : f32 to vector<8x32xf32>
    %651 = arith.addf %649, %650 : vector<8x32xf32>
    %cst_229 = arith.constant 5.000000e-01 : f32
    %652 = vector.broadcast %cst_229 : f32 to vector<8x32xf32>
    %653 = arith.mulf %652, %651 : vector<8x32xf32>
    %654 = vector.extract_strided_slice %637 {offsets = [0, 64], sizes = [8, 32], strides = [1, 1]} : vector<8x128xf32> to vector<8x32xf32>
    %655 = math.tanh %654 : vector<8x32xf32>
    %656 = vector.extract_strided_slice %637 {offsets = [0, 96], sizes = [8, 32], strides = [1, 1]} : vector<8x128xf32> to vector<8x32xf32>
    %cst_230 = arith.constant 5.000000e-01 : f32
    %657 = vector.broadcast %cst_230 : f32 to vector<8x32xf32>
    %658 = arith.mulf %657, %656 : vector<8x32xf32>
    %659 = math.tanh %658 : vector<8x32xf32>
    %cst_231 = arith.constant 1.000000e+00 : f32
    %660 = vector.broadcast %cst_231 : f32 to vector<8x32xf32>
    %661 = arith.addf %659, %660 : vector<8x32xf32>
    %cst_232 = arith.constant 5.000000e-01 : f32
    %662 = vector.broadcast %cst_232 : f32 to vector<8x32xf32>
    %663 = arith.mulf %662, %661 : vector<8x32xf32>
    %664 = arith.mulf %653, %624 : vector<8x32xf32>
    %665 = arith.mulf %645, %655 : vector<8x32xf32>
    %666 = arith.addf %664, %665 : vector<8x32xf32>
    %667 = math.tanh %666 : vector<8x32xf32>
    %668 = arith.mulf %663, %667 : vector<8x32xf32>
    %669 = vector.extract_strided_slice %636 {offsets = [0, 128], sizes = [8, 128], strides = [1, 1]} : vector<8x256xf32> to vector<8x128xf32>
    %670 = vector.extract_strided_slice %669 {offsets = [0, 0], sizes = [8, 32], strides = [1, 1]} : vector<8x128xf32> to vector<8x32xf32>
    %cst_233 = arith.constant 5.000000e-01 : f32
    %671 = vector.broadcast %cst_233 : f32 to vector<8x32xf32>
    %672 = arith.mulf %671, %670 : vector<8x32xf32>
    %673 = math.tanh %672 : vector<8x32xf32>
    %cst_234 = arith.constant 1.000000e+00 : f32
    %674 = vector.broadcast %cst_234 : f32 to vector<8x32xf32>
    %675 = arith.addf %673, %674 : vector<8x32xf32>
    %cst_235 = arith.constant 5.000000e-01 : f32
    %676 = vector.broadcast %cst_235 : f32 to vector<8x32xf32>
    %677 = arith.mulf %676, %675 : vector<8x32xf32>
    %678 = vector.extract_strided_slice %669 {offsets = [0, 32], sizes = [8, 32], strides = [1, 1]} : vector<8x128xf32> to vector<8x32xf32>
    %cst_236 = arith.constant 5.000000e-01 : f32
    %679 = vector.broadcast %cst_236 : f32 to vector<8x32xf32>
    %680 = arith.mulf %679, %678 : vector<8x32xf32>
    %681 = math.tanh %680 : vector<8x32xf32>
    %cst_237 = arith.constant 1.000000e+00 : f32
    %682 = vector.broadcast %cst_237 : f32 to vector<8x32xf32>
    %683 = arith.addf %681, %682 : vector<8x32xf32>
    %cst_238 = arith.constant 5.000000e-01 : f32
    %684 = vector.broadcast %cst_238 : f32 to vector<8x32xf32>
    %685 = arith.mulf %684, %683 : vector<8x32xf32>
    %686 = vector.extract_strided_slice %669 {offsets = [0, 64], sizes = [8, 32], strides = [1, 1]} : vector<8x128xf32> to vector<8x32xf32>
    %687 = math.tanh %686 : vector<8x32xf32>
    %688 = vector.extract_strided_slice %669 {offsets = [0, 96], sizes = [8, 32], strides = [1, 1]} : vector<8x128xf32> to vector<8x32xf32>
    %cst_239 = arith.constant 5.000000e-01 : f32
    %689 = vector.broadcast %cst_239 : f32 to vector<8x32xf32>
    %690 = arith.mulf %689, %688 : vector<8x32xf32>
    %691 = math.tanh %690 : vector<8x32xf32>
    %cst_240 = arith.constant 1.000000e+00 : f32
    %692 = vector.broadcast %cst_240 : f32 to vector<8x32xf32>
    %693 = arith.addf %691, %692 : vector<8x32xf32>
    %cst_241 = arith.constant 5.000000e-01 : f32
    %694 = vector.broadcast %cst_241 : f32 to vector<8x32xf32>
    %695 = arith.mulf %694, %693 : vector<8x32xf32>
    %696 = arith.mulf %685, %626 : vector<8x32xf32>
    %697 = arith.mulf %677, %687 : vector<8x32xf32>
    %698 = arith.addf %696, %697 : vector<8x32xf32>
    %699 = math.tanh %698 : vector<8x32xf32>
    %700 = arith.mulf %695, %699 : vector<8x32xf32>
    %c1_242 = arith.constant 1 : index
    %c0_243 = arith.constant 0 : index
    %c0_244 = arith.constant 0 : index
    %701 = vector.load %arg5[%c1_242, %c0_243, %c0_244] : memref<8x8x256xf32, #tpu.memory_space<vmem>>, vector<1x8x256xf32>
    %702 = vector.shape_cast %701 : vector<1x8x256xf32> to vector<8x256xf32>
    %703 = vector.extract_strided_slice %702 {offsets = [0, 0], sizes = [8, 128], strides = [1, 1]} : vector<8x256xf32> to vector<8x128xf32>
    %c6_245 = arith.constant 6 : index
    %c0_246 = arith.constant 0 : index
    %c0_247 = arith.constant 0 : index
    %704 = vector.load %arg5[%c6_245, %c0_246, %c0_247] : memref<8x8x256xf32, #tpu.memory_space<vmem>>, vector<1x8x256xf32>
    %705 = vector.shape_cast %704 : vector<1x8x256xf32> to vector<8x256xf32>
    %706 = vector.extract_strided_slice %705 {offsets = [0, 128], sizes = [8, 128], strides = [1, 1]} : vector<8x256xf32> to vector<8x128xf32>
    %707 = tpu.concatenate %703, %706 in 1 : vector<8x128xf32>, vector<8x128xf32> -> vector<8x256xf32>
    %708 = tpu.concatenate %668, %700 in 1 : vector<8x32xf32>, vector<8x32xf32> -> vector<8x64xf32>
    %cst_248 = arith.constant dense<0.000000e+00> : vector<8x256xf32>
    %709 = tpu.matmul %708, %622, %cst_248 {dimension_numbers = #tpu.dot_dimension_numbers<[1], [0], [0], [1], [0, 0, 1, 1], [], []>} : vector<8x64xf32>, vector<64x256xf32>, vector<8x256xf32> -> vector<8x256xf32>
    %710 = arith.addf %707, %709 : vector<8x256xf32>
    %711 = vector.extract_strided_slice %710 {offsets = [0, 0], sizes = [8, 128], strides = [1, 1]} : vector<8x256xf32> to vector<8x128xf32>
    %712 = vector.extract_strided_slice %711 {offsets = [0, 0], sizes = [8, 32], strides = [1, 1]} : vector<8x128xf32> to vector<8x32xf32>
    %cst_249 = arith.constant 5.000000e-01 : f32
    %713 = vector.broadcast %cst_249 : f32 to vector<8x32xf32>
    %714 = arith.mulf %713, %712 : vector<8x32xf32>
    %715 = math.tanh %714 : vector<8x32xf32>
    %cst_250 = arith.constant 1.000000e+00 : f32
    %716 = vector.broadcast %cst_250 : f32 to vector<8x32xf32>
    %717 = arith.addf %715, %716 : vector<8x32xf32>
    %cst_251 = arith.constant 5.000000e-01 : f32
    %718 = vector.broadcast %cst_251 : f32 to vector<8x32xf32>
    %719 = arith.mulf %718, %717 : vector<8x32xf32>
    %720 = vector.extract_strided_slice %711 {offsets = [0, 32], sizes = [8, 32], strides = [1, 1]} : vector<8x128xf32> to vector<8x32xf32>
    %cst_252 = arith.constant 5.000000e-01 : f32
    %721 = vector.broadcast %cst_252 : f32 to vector<8x32xf32>
    %722 = arith.mulf %721, %720 : vector<8x32xf32>
    %723 = math.tanh %722 : vector<8x32xf32>
    %cst_253 = arith.constant 1.000000e+00 : f32
    %724 = vector.broadcast %cst_253 : f32 to vector<8x32xf32>
    %725 = arith.addf %723, %724 : vector<8x32xf32>
    %cst_254 = arith.constant 5.000000e-01 : f32
    %726 = vector.broadcast %cst_254 : f32 to vector<8x32xf32>
    %727 = arith.mulf %726, %725 : vector<8x32xf32>
    %728 = vector.extract_strided_slice %711 {offsets = [0, 64], sizes = [8, 32], strides = [1, 1]} : vector<8x128xf32> to vector<8x32xf32>
    %729 = math.tanh %728 : vector<8x32xf32>
    %730 = vector.extract_strided_slice %711 {offsets = [0, 96], sizes = [8, 32], strides = [1, 1]} : vector<8x128xf32> to vector<8x32xf32>
    %cst_255 = arith.constant 5.000000e-01 : f32
    %731 = vector.broadcast %cst_255 : f32 to vector<8x32xf32>
    %732 = arith.mulf %731, %730 : vector<8x32xf32>
    %733 = math.tanh %732 : vector<8x32xf32>
    %cst_256 = arith.constant 1.000000e+00 : f32
    %734 = vector.broadcast %cst_256 : f32 to vector<8x32xf32>
    %735 = arith.addf %733, %734 : vector<8x32xf32>
    %cst_257 = arith.constant 5.000000e-01 : f32
    %736 = vector.broadcast %cst_257 : f32 to vector<8x32xf32>
    %737 = arith.mulf %736, %735 : vector<8x32xf32>
    %738 = arith.mulf %727, %666 : vector<8x32xf32>
    %739 = arith.mulf %719, %729 : vector<8x32xf32>
    %740 = arith.addf %738, %739 : vector<8x32xf32>
    %741 = math.tanh %740 : vector<8x32xf32>
    %742 = arith.mulf %737, %741 : vector<8x32xf32>
    %743 = vector.extract_strided_slice %710 {offsets = [0, 128], sizes = [8, 128], strides = [1, 1]} : vector<8x256xf32> to vector<8x128xf32>
    %744 = vector.extract_strided_slice %743 {offsets = [0, 0], sizes = [8, 32], strides = [1, 1]} : vector<8x128xf32> to vector<8x32xf32>
    %cst_258 = arith.constant 5.000000e-01 : f32
    %745 = vector.broadcast %cst_258 : f32 to vector<8x32xf32>
    %746 = arith.mulf %745, %744 : vector<8x32xf32>
    %747 = math.tanh %746 : vector<8x32xf32>
    %cst_259 = arith.constant 1.000000e+00 : f32
    %748 = vector.broadcast %cst_259 : f32 to vector<8x32xf32>
    %749 = arith.addf %747, %748 : vector<8x32xf32>
    %cst_260 = arith.constant 5.000000e-01 : f32
    %750 = vector.broadcast %cst_260 : f32 to vector<8x32xf32>
    %751 = arith.mulf %750, %749 : vector<8x32xf32>
    %752 = vector.extract_strided_slice %743 {offsets = [0, 32], sizes = [8, 32], strides = [1, 1]} : vector<8x128xf32> to vector<8x32xf32>
    %cst_261 = arith.constant 5.000000e-01 : f32
    %753 = vector.broadcast %cst_261 : f32 to vector<8x32xf32>
    %754 = arith.mulf %753, %752 : vector<8x32xf32>
    %755 = math.tanh %754 : vector<8x32xf32>
    %cst_262 = arith.constant 1.000000e+00 : f32
    %756 = vector.broadcast %cst_262 : f32 to vector<8x32xf32>
    %757 = arith.addf %755, %756 : vector<8x32xf32>
    %cst_263 = arith.constant 5.000000e-01 : f32
    %758 = vector.broadcast %cst_263 : f32 to vector<8x32xf32>
    %759 = arith.mulf %758, %757 : vector<8x32xf32>
    %760 = vector.extract_strided_slice %743 {offsets = [0, 64], sizes = [8, 32], strides = [1, 1]} : vector<8x128xf32> to vector<8x32xf32>
    %761 = math.tanh %760 : vector<8x32xf32>
    %762 = vector.extract_strided_slice %743 {offsets = [0, 96], sizes = [8, 32], strides = [1, 1]} : vector<8x128xf32> to vector<8x32xf32>
    %cst_264 = arith.constant 5.000000e-01 : f32
    %763 = vector.broadcast %cst_264 : f32 to vector<8x32xf32>
    %764 = arith.mulf %763, %762 : vector<8x32xf32>
    %765 = math.tanh %764 : vector<8x32xf32>
    %cst_265 = arith.constant 1.000000e+00 : f32
    %766 = vector.broadcast %cst_265 : f32 to vector<8x32xf32>
    %767 = arith.addf %765, %766 : vector<8x32xf32>
    %cst_266 = arith.constant 5.000000e-01 : f32
    %768 = vector.broadcast %cst_266 : f32 to vector<8x32xf32>
    %769 = arith.mulf %768, %767 : vector<8x32xf32>
    %770 = arith.mulf %759, %698 : vector<8x32xf32>
    %771 = arith.mulf %751, %761 : vector<8x32xf32>
    %772 = arith.addf %770, %771 : vector<8x32xf32>
    %773 = math.tanh %772 : vector<8x32xf32>
    %774 = arith.mulf %769, %773 : vector<8x32xf32>
    %c2_267 = arith.constant 2 : index
    %c0_268 = arith.constant 0 : index
    %c0_269 = arith.constant 0 : index
    %775 = vector.load %arg5[%c2_267, %c0_268, %c0_269] : memref<8x8x256xf32, #tpu.memory_space<vmem>>, vector<1x8x256xf32>
    %776 = vector.shape_cast %775 : vector<1x8x256xf32> to vector<8x256xf32>
    %777 = vector.extract_strided_slice %776 {offsets = [0, 0], sizes = [8, 128], strides = [1, 1]} : vector<8x256xf32> to vector<8x128xf32>
    %c5_270 = arith.constant 5 : index
    %c0_271 = arith.constant 0 : index
    %c0_272 = arith.constant 0 : index
    %778 = vector.load %arg5[%c5_270, %c0_271, %c0_272] : memref<8x8x256xf32, #tpu.memory_space<vmem>>, vector<1x8x256xf32>
    %779 = vector.shape_cast %778 : vector<1x8x256xf32> to vector<8x256xf32>
    %780 = vector.extract_strided_slice %779 {offsets = [0, 128], sizes = [8, 128], strides = [1, 1]} : vector<8x256xf32> to vector<8x128xf32>
    %781 = tpu.concatenate %777, %780 in 1 : vector<8x128xf32>, vector<8x128xf32> -> vector<8x256xf32>
    %782 = tpu.concatenate %742, %774 in 1 : vector<8x32xf32>, vector<8x32xf32> -> vector<8x64xf32>
    %cst_273 = arith.constant dense<0.000000e+00> : vector<8x256xf32>
    %783 = tpu.matmul %782, %622, %cst_273 {dimension_numbers = #tpu.dot_dimension_numbers<[1], [0], [0], [1], [0, 0, 1, 1], [], []>} : vector<8x64xf32>, vector<64x256xf32>, vector<8x256xf32> -> vector<8x256xf32>
    %784 = arith.addf %781, %783 : vector<8x256xf32>
    %785 = vector.extract_strided_slice %784 {offsets = [0, 0], sizes = [8, 128], strides = [1, 1]} : vector<8x256xf32> to vector<8x128xf32>
    %786 = vector.extract_strided_slice %785 {offsets = [0, 0], sizes = [8, 32], strides = [1, 1]} : vector<8x128xf32> to vector<8x32xf32>
    %cst_274 = arith.constant 5.000000e-01 : f32
    %787 = vector.broadcast %cst_274 : f32 to vector<8x32xf32>
    %788 = arith.mulf %787, %786 : vector<8x32xf32>
    %789 = math.tanh %788 : vector<8x32xf32>
    %cst_275 = arith.constant 1.000000e+00 : f32
    %790 = vector.broadcast %cst_275 : f32 to vector<8x32xf32>
    %791 = arith.addf %789, %790 : vector<8x32xf32>
    %cst_276 = arith.constant 5.000000e-01 : f32
    %792 = vector.broadcast %cst_276 : f32 to vector<8x32xf32>
    %793 = arith.mulf %792, %791 : vector<8x32xf32>
    %794 = vector.extract_strided_slice %785 {offsets = [0, 32], sizes = [8, 32], strides = [1, 1]} : vector<8x128xf32> to vector<8x32xf32>
    %cst_277 = arith.constant 5.000000e-01 : f32
    %795 = vector.broadcast %cst_277 : f32 to vector<8x32xf32>
    %796 = arith.mulf %795, %794 : vector<8x32xf32>
    %797 = math.tanh %796 : vector<8x32xf32>
    %cst_278 = arith.constant 1.000000e+00 : f32
    %798 = vector.broadcast %cst_278 : f32 to vector<8x32xf32>
    %799 = arith.addf %797, %798 : vector<8x32xf32>
    %cst_279 = arith.constant 5.000000e-01 : f32
    %800 = vector.broadcast %cst_279 : f32 to vector<8x32xf32>
    %801 = arith.mulf %800, %799 : vector<8x32xf32>
    %802 = vector.extract_strided_slice %785 {offsets = [0, 64], sizes = [8, 32], strides = [1, 1]} : vector<8x128xf32> to vector<8x32xf32>
    %803 = math.tanh %802 : vector<8x32xf32>
    %804 = vector.extract_strided_slice %785 {offsets = [0, 96], sizes = [8, 32], strides = [1, 1]} : vector<8x128xf32> to vector<8x32xf32>
    %cst_280 = arith.constant 5.000000e-01 : f32
    %805 = vector.broadcast %cst_280 : f32 to vector<8x32xf32>
    %806 = arith.mulf %805, %804 : vector<8x32xf32>
    %807 = math.tanh %806 : vector<8x32xf32>
    %cst_281 = arith.constant 1.000000e+00 : f32
    %808 = vector.broadcast %cst_281 : f32 to vector<8x32xf32>
    %809 = arith.addf %807, %808 : vector<8x32xf32>
    %cst_282 = arith.constant 5.000000e-01 : f32
    %810 = vector.broadcast %cst_282 : f32 to vector<8x32xf32>
    %811 = arith.mulf %810, %809 : vector<8x32xf32>
    %812 = arith.mulf %801, %740 : vector<8x32xf32>
    %813 = arith.mulf %793, %803 : vector<8x32xf32>
    %814 = arith.addf %812, %813 : vector<8x32xf32>
    %815 = math.tanh %814 : vector<8x32xf32>
    %816 = arith.mulf %811, %815 : vector<8x32xf32>
    %817 = vector.extract_strided_slice %784 {offsets = [0, 128], sizes = [8, 128], strides = [1, 1]} : vector<8x256xf32> to vector<8x128xf32>
    %818 = vector.extract_strided_slice %817 {offsets = [0, 0], sizes = [8, 32], strides = [1, 1]} : vector<8x128xf32> to vector<8x32xf32>
    %cst_283 = arith.constant 5.000000e-01 : f32
    %819 = vector.broadcast %cst_283 : f32 to vector<8x32xf32>
    %820 = arith.mulf %819, %818 : vector<8x32xf32>
    %821 = math.tanh %820 : vector<8x32xf32>
    %cst_284 = arith.constant 1.000000e+00 : f32
    %822 = vector.broadcast %cst_284 : f32 to vector<8x32xf32>
    %823 = arith.addf %821, %822 : vector<8x32xf32>
    %cst_285 = arith.constant 5.000000e-01 : f32
    %824 = vector.broadcast %cst_285 : f32 to vector<8x32xf32>
    %825 = arith.mulf %824, %823 : vector<8x32xf32>
    %826 = vector.extract_strided_slice %817 {offsets = [0, 32], sizes = [8, 32], strides = [1, 1]} : vector<8x128xf32> to vector<8x32xf32>
    %cst_286 = arith.constant 5.000000e-01 : f32
    %827 = vector.broadcast %cst_286 : f32 to vector<8x32xf32>
    %828 = arith.mulf %827, %826 : vector<8x32xf32>
    %829 = math.tanh %828 : vector<8x32xf32>
    %cst_287 = arith.constant 1.000000e+00 : f32
    %830 = vector.broadcast %cst_287 : f32 to vector<8x32xf32>
    %831 = arith.addf %829, %830 : vector<8x32xf32>
    %cst_288 = arith.constant 5.000000e-01 : f32
    %832 = vector.broadcast %cst_288 : f32 to vector<8x32xf32>
    %833 = arith.mulf %832, %831 : vector<8x32xf32>
    %834 = vector.extract_strided_slice %817 {offsets = [0, 64], sizes = [8, 32], strides = [1, 1]} : vector<8x128xf32> to vector<8x32xf32>
    %835 = math.tanh %834 : vector<8x32xf32>
    %836 = vector.extract_strided_slice %817 {offsets = [0, 96], sizes = [8, 32], strides = [1, 1]} : vector<8x128xf32> to vector<8x32xf32>
    %cst_289 = arith.constant 5.000000e-01 : f32
    %837 = vector.broadcast %cst_289 : f32 to vector<8x32xf32>
    %838 = arith.mulf %837, %836 : vector<8x32xf32>
    %839 = math.tanh %838 : vector<8x32xf32>
    %cst_290 = arith.constant 1.000000e+00 : f32
    %840 = vector.broadcast %cst_290 : f32 to vector<8x32xf32>
    %841 = arith.addf %839, %840 : vector<8x32xf32>
    %cst_291 = arith.constant 5.000000e-01 : f32
    %842 = vector.broadcast %cst_291 : f32 to vector<8x32xf32>
    %843 = arith.mulf %842, %841 : vector<8x32xf32>
    %844 = arith.mulf %833, %772 : vector<8x32xf32>
    %845 = arith.mulf %825, %835 : vector<8x32xf32>
    %846 = arith.addf %844, %845 : vector<8x32xf32>
    %847 = math.tanh %846 : vector<8x32xf32>
    %848 = arith.mulf %843, %847 : vector<8x32xf32>
    %c3_292 = arith.constant 3 : index
    %c0_293 = arith.constant 0 : index
    %c0_294 = arith.constant 0 : index
    %849 = vector.load %arg5[%c3_292, %c0_293, %c0_294] : memref<8x8x256xf32, #tpu.memory_space<vmem>>, vector<1x8x256xf32>
    %850 = vector.shape_cast %849 : vector<1x8x256xf32> to vector<8x256xf32>
    %851 = vector.extract_strided_slice %850 {offsets = [0, 0], sizes = [8, 128], strides = [1, 1]} : vector<8x256xf32> to vector<8x128xf32>
    %c4_295 = arith.constant 4 : index
    %c0_296 = arith.constant 0 : index
    %c0_297 = arith.constant 0 : index
    %852 = vector.load %arg5[%c4_295, %c0_296, %c0_297] : memref<8x8x256xf32, #tpu.memory_space<vmem>>, vector<1x8x256xf32>
    %853 = vector.shape_cast %852 : vector<1x8x256xf32> to vector<8x256xf32>
    %854 = vector.extract_strided_slice %853 {offsets = [0, 128], sizes = [8, 128], strides = [1, 1]} : vector<8x256xf32> to vector<8x128xf32>
    %855 = tpu.concatenate %851, %854 in 1 : vector<8x128xf32>, vector<8x128xf32> -> vector<8x256xf32>
    %856 = tpu.concatenate %816, %848 in 1 : vector<8x32xf32>, vector<8x32xf32> -> vector<8x64xf32>
    %cst_298 = arith.constant dense<0.000000e+00> : vector<8x256xf32>
    %857 = tpu.matmul %856, %622, %cst_298 {dimension_numbers = #tpu.dot_dimension_numbers<[1], [0], [0], [1], [0, 0, 1, 1], [], []>} : vector<8x64xf32>, vector<64x256xf32>, vector<8x256xf32> -> vector<8x256xf32>
    %858 = arith.addf %855, %857 : vector<8x256xf32>
    %859 = vector.extract_strided_slice %858 {offsets = [0, 0], sizes = [8, 128], strides = [1, 1]} : vector<8x256xf32> to vector<8x128xf32>
    %860 = vector.extract_strided_slice %859 {offsets = [0, 0], sizes = [8, 32], strides = [1, 1]} : vector<8x128xf32> to vector<8x32xf32>
    %cst_299 = arith.constant 5.000000e-01 : f32
    %861 = vector.broadcast %cst_299 : f32 to vector<8x32xf32>
    %862 = arith.mulf %861, %860 : vector<8x32xf32>
    %863 = math.tanh %862 : vector<8x32xf32>
    %cst_300 = arith.constant 1.000000e+00 : f32
    %864 = vector.broadcast %cst_300 : f32 to vector<8x32xf32>
    %865 = arith.addf %863, %864 : vector<8x32xf32>
    %cst_301 = arith.constant 5.000000e-01 : f32
    %866 = vector.broadcast %cst_301 : f32 to vector<8x32xf32>
    %867 = arith.mulf %866, %865 : vector<8x32xf32>
    %868 = vector.extract_strided_slice %859 {offsets = [0, 32], sizes = [8, 32], strides = [1, 1]} : vector<8x128xf32> to vector<8x32xf32>
    %cst_302 = arith.constant 5.000000e-01 : f32
    %869 = vector.broadcast %cst_302 : f32 to vector<8x32xf32>
    %870 = arith.mulf %869, %868 : vector<8x32xf32>
    %871 = math.tanh %870 : vector<8x32xf32>
    %cst_303 = arith.constant 1.000000e+00 : f32
    %872 = vector.broadcast %cst_303 : f32 to vector<8x32xf32>
    %873 = arith.addf %871, %872 : vector<8x32xf32>
    %cst_304 = arith.constant 5.000000e-01 : f32
    %874 = vector.broadcast %cst_304 : f32 to vector<8x32xf32>
    %875 = arith.mulf %874, %873 : vector<8x32xf32>
    %876 = vector.extract_strided_slice %859 {offsets = [0, 64], sizes = [8, 32], strides = [1, 1]} : vector<8x128xf32> to vector<8x32xf32>
    %877 = math.tanh %876 : vector<8x32xf32>
    %878 = vector.extract_strided_slice %859 {offsets = [0, 96], sizes = [8, 32], strides = [1, 1]} : vector<8x128xf32> to vector<8x32xf32>
    %cst_305 = arith.constant 5.000000e-01 : f32
    %879 = vector.broadcast %cst_305 : f32 to vector<8x32xf32>
    %880 = arith.mulf %879, %878 : vector<8x32xf32>
    %881 = math.tanh %880 : vector<8x32xf32>
    %cst_306 = arith.constant 1.000000e+00 : f32
    %882 = vector.broadcast %cst_306 : f32 to vector<8x32xf32>
    %883 = arith.addf %881, %882 : vector<8x32xf32>
    %cst_307 = arith.constant 5.000000e-01 : f32
    %884 = vector.broadcast %cst_307 : f32 to vector<8x32xf32>
    %885 = arith.mulf %884, %883 : vector<8x32xf32>
    %886 = arith.mulf %875, %814 : vector<8x32xf32>
    %887 = arith.mulf %867, %877 : vector<8x32xf32>
    %888 = arith.addf %886, %887 : vector<8x32xf32>
    %889 = math.tanh %888 : vector<8x32xf32>
    %890 = arith.mulf %885, %889 : vector<8x32xf32>
    %891 = vector.extract_strided_slice %858 {offsets = [0, 128], sizes = [8, 128], strides = [1, 1]} : vector<8x256xf32> to vector<8x128xf32>
    %892 = vector.extract_strided_slice %891 {offsets = [0, 0], sizes = [8, 32], strides = [1, 1]} : vector<8x128xf32> to vector<8x32xf32>
    %cst_308 = arith.constant 5.000000e-01 : f32
    %893 = vector.broadcast %cst_308 : f32 to vector<8x32xf32>
    %894 = arith.mulf %893, %892 : vector<8x32xf32>
    %895 = math.tanh %894 : vector<8x32xf32>
    %cst_309 = arith.constant 1.000000e+00 : f32
    %896 = vector.broadcast %cst_309 : f32 to vector<8x32xf32>
    %897 = arith.addf %895, %896 : vector<8x32xf32>
    %cst_310 = arith.constant 5.000000e-01 : f32
    %898 = vector.broadcast %cst_310 : f32 to vector<8x32xf32>
    %899 = arith.mulf %898, %897 : vector<8x32xf32>
    %900 = vector.extract_strided_slice %891 {offsets = [0, 32], sizes = [8, 32], strides = [1, 1]} : vector<8x128xf32> to vector<8x32xf32>
    %cst_311 = arith.constant 5.000000e-01 : f32
    %901 = vector.broadcast %cst_311 : f32 to vector<8x32xf32>
    %902 = arith.mulf %901, %900 : vector<8x32xf32>
    %903 = math.tanh %902 : vector<8x32xf32>
    %cst_312 = arith.constant 1.000000e+00 : f32
    %904 = vector.broadcast %cst_312 : f32 to vector<8x32xf32>
    %905 = arith.addf %903, %904 : vector<8x32xf32>
    %cst_313 = arith.constant 5.000000e-01 : f32
    %906 = vector.broadcast %cst_313 : f32 to vector<8x32xf32>
    %907 = arith.mulf %906, %905 : vector<8x32xf32>
    %908 = vector.extract_strided_slice %891 {offsets = [0, 64], sizes = [8, 32], strides = [1, 1]} : vector<8x128xf32> to vector<8x32xf32>
    %909 = math.tanh %908 : vector<8x32xf32>
    %910 = vector.extract_strided_slice %891 {offsets = [0, 96], sizes = [8, 32], strides = [1, 1]} : vector<8x128xf32> to vector<8x32xf32>
    %cst_314 = arith.constant 5.000000e-01 : f32
    %911 = vector.broadcast %cst_314 : f32 to vector<8x32xf32>
    %912 = arith.mulf %911, %910 : vector<8x32xf32>
    %913 = math.tanh %912 : vector<8x32xf32>
    %cst_315 = arith.constant 1.000000e+00 : f32
    %914 = vector.broadcast %cst_315 : f32 to vector<8x32xf32>
    %915 = arith.addf %913, %914 : vector<8x32xf32>
    %cst_316 = arith.constant 5.000000e-01 : f32
    %916 = vector.broadcast %cst_316 : f32 to vector<8x32xf32>
    %917 = arith.mulf %916, %915 : vector<8x32xf32>
    %918 = arith.mulf %907, %846 : vector<8x32xf32>
    %919 = arith.mulf %899, %909 : vector<8x32xf32>
    %920 = arith.addf %918, %919 : vector<8x32xf32>
    %921 = math.tanh %920 : vector<8x32xf32>
    %922 = arith.mulf %917, %921 : vector<8x32xf32>
    %c4_317 = arith.constant 4 : index
    %c0_318 = arith.constant 0 : index
    %c0_319 = arith.constant 0 : index
    %923 = vector.load %arg5[%c4_317, %c0_318, %c0_319] : memref<8x8x256xf32, #tpu.memory_space<vmem>>, vector<1x8x256xf32>
    %924 = vector.shape_cast %923 : vector<1x8x256xf32> to vector<8x256xf32>
    %925 = vector.extract_strided_slice %924 {offsets = [0, 0], sizes = [8, 128], strides = [1, 1]} : vector<8x256xf32> to vector<8x128xf32>
    %c3_320 = arith.constant 3 : index
    %c0_321 = arith.constant 0 : index
    %c0_322 = arith.constant 0 : index
    %926 = vector.load %arg5[%c3_320, %c0_321, %c0_322] : memref<8x8x256xf32, #tpu.memory_space<vmem>>, vector<1x8x256xf32>
    %927 = vector.shape_cast %926 : vector<1x8x256xf32> to vector<8x256xf32>
    %928 = vector.extract_strided_slice %927 {offsets = [0, 128], sizes = [8, 128], strides = [1, 1]} : vector<8x256xf32> to vector<8x128xf32>
    %929 = tpu.concatenate %925, %928 in 1 : vector<8x128xf32>, vector<8x128xf32> -> vector<8x256xf32>
    %930 = tpu.concatenate %890, %922 in 1 : vector<8x32xf32>, vector<8x32xf32> -> vector<8x64xf32>
    %cst_323 = arith.constant dense<0.000000e+00> : vector<8x256xf32>
    %931 = tpu.matmul %930, %622, %cst_323 {dimension_numbers = #tpu.dot_dimension_numbers<[1], [0], [0], [1], [0, 0, 1, 1], [], []>} : vector<8x64xf32>, vector<64x256xf32>, vector<8x256xf32> -> vector<8x256xf32>
    %932 = arith.addf %929, %931 : vector<8x256xf32>
    %933 = vector.extract_strided_slice %932 {offsets = [0, 0], sizes = [8, 128], strides = [1, 1]} : vector<8x256xf32> to vector<8x128xf32>
    %934 = vector.extract_strided_slice %933 {offsets = [0, 0], sizes = [8, 32], strides = [1, 1]} : vector<8x128xf32> to vector<8x32xf32>
    %cst_324 = arith.constant 5.000000e-01 : f32
    %935 = vector.broadcast %cst_324 : f32 to vector<8x32xf32>
    %936 = arith.mulf %935, %934 : vector<8x32xf32>
    %937 = math.tanh %936 : vector<8x32xf32>
    %cst_325 = arith.constant 1.000000e+00 : f32
    %938 = vector.broadcast %cst_325 : f32 to vector<8x32xf32>
    %939 = arith.addf %937, %938 : vector<8x32xf32>
    %cst_326 = arith.constant 5.000000e-01 : f32
    %940 = vector.broadcast %cst_326 : f32 to vector<8x32xf32>
    %941 = arith.mulf %940, %939 : vector<8x32xf32>
    %942 = vector.extract_strided_slice %933 {offsets = [0, 32], sizes = [8, 32], strides = [1, 1]} : vector<8x128xf32> to vector<8x32xf32>
    %cst_327 = arith.constant 5.000000e-01 : f32
    %943 = vector.broadcast %cst_327 : f32 to vector<8x32xf32>
    %944 = arith.mulf %943, %942 : vector<8x32xf32>
    %945 = math.tanh %944 : vector<8x32xf32>
    %cst_328 = arith.constant 1.000000e+00 : f32
    %946 = vector.broadcast %cst_328 : f32 to vector<8x32xf32>
    %947 = arith.addf %945, %946 : vector<8x32xf32>
    %cst_329 = arith.constant 5.000000e-01 : f32
    %948 = vector.broadcast %cst_329 : f32 to vector<8x32xf32>
    %949 = arith.mulf %948, %947 : vector<8x32xf32>
    %950 = vector.extract_strided_slice %933 {offsets = [0, 64], sizes = [8, 32], strides = [1, 1]} : vector<8x128xf32> to vector<8x32xf32>
    %951 = math.tanh %950 : vector<8x32xf32>
    %952 = vector.extract_strided_slice %933 {offsets = [0, 96], sizes = [8, 32], strides = [1, 1]} : vector<8x128xf32> to vector<8x32xf32>
    %cst_330 = arith.constant 5.000000e-01 : f32
    %953 = vector.broadcast %cst_330 : f32 to vector<8x32xf32>
    %954 = arith.mulf %953, %952 : vector<8x32xf32>
    %955 = math.tanh %954 : vector<8x32xf32>
    %cst_331 = arith.constant 1.000000e+00 : f32
    %956 = vector.broadcast %cst_331 : f32 to vector<8x32xf32>
    %957 = arith.addf %955, %956 : vector<8x32xf32>
    %cst_332 = arith.constant 5.000000e-01 : f32
    %958 = vector.broadcast %cst_332 : f32 to vector<8x32xf32>
    %959 = arith.mulf %958, %957 : vector<8x32xf32>
    %960 = arith.mulf %949, %888 : vector<8x32xf32>
    %961 = arith.mulf %941, %951 : vector<8x32xf32>
    %962 = arith.addf %960, %961 : vector<8x32xf32>
    %963 = math.tanh %962 : vector<8x32xf32>
    %964 = arith.mulf %959, %963 : vector<8x32xf32>
    %965 = vector.extract_strided_slice %932 {offsets = [0, 128], sizes = [8, 128], strides = [1, 1]} : vector<8x256xf32> to vector<8x128xf32>
    %966 = vector.extract_strided_slice %965 {offsets = [0, 0], sizes = [8, 32], strides = [1, 1]} : vector<8x128xf32> to vector<8x32xf32>
    %cst_333 = arith.constant 5.000000e-01 : f32
    %967 = vector.broadcast %cst_333 : f32 to vector<8x32xf32>
    %968 = arith.mulf %967, %966 : vector<8x32xf32>
    %969 = math.tanh %968 : vector<8x32xf32>
    %cst_334 = arith.constant 1.000000e+00 : f32
    %970 = vector.broadcast %cst_334 : f32 to vector<8x32xf32>
    %971 = arith.addf %969, %970 : vector<8x32xf32>
    %cst_335 = arith.constant 5.000000e-01 : f32
    %972 = vector.broadcast %cst_335 : f32 to vector<8x32xf32>
    %973 = arith.mulf %972, %971 : vector<8x32xf32>
    %974 = vector.extract_strided_slice %965 {offsets = [0, 32], sizes = [8, 32], strides = [1, 1]} : vector<8x128xf32> to vector<8x32xf32>
    %cst_336 = arith.constant 5.000000e-01 : f32
    %975 = vector.broadcast %cst_336 : f32 to vector<8x32xf32>
    %976 = arith.mulf %975, %974 : vector<8x32xf32>
    %977 = math.tanh %976 : vector<8x32xf32>
    %cst_337 = arith.constant 1.000000e+00 : f32
    %978 = vector.broadcast %cst_337 : f32 to vector<8x32xf32>
    %979 = arith.addf %977, %978 : vector<8x32xf32>
    %cst_338 = arith.constant 5.000000e-01 : f32
    %980 = vector.broadcast %cst_338 : f32 to vector<8x32xf32>
    %981 = arith.mulf %980, %979 : vector<8x32xf32>
    %982 = vector.extract_strided_slice %965 {offsets = [0, 64], sizes = [8, 32], strides = [1, 1]} : vector<8x128xf32> to vector<8x32xf32>
    %983 = math.tanh %982 : vector<8x32xf32>
    %984 = vector.extract_strided_slice %965 {offsets = [0, 96], sizes = [8, 32], strides = [1, 1]} : vector<8x128xf32> to vector<8x32xf32>
    %cst_339 = arith.constant 5.000000e-01 : f32
    %985 = vector.broadcast %cst_339 : f32 to vector<8x32xf32>
    %986 = arith.mulf %985, %984 : vector<8x32xf32>
    %987 = math.tanh %986 : vector<8x32xf32>
    %cst_340 = arith.constant 1.000000e+00 : f32
    %988 = vector.broadcast %cst_340 : f32 to vector<8x32xf32>
    %989 = arith.addf %987, %988 : vector<8x32xf32>
    %cst_341 = arith.constant 5.000000e-01 : f32
    %990 = vector.broadcast %cst_341 : f32 to vector<8x32xf32>
    %991 = arith.mulf %990, %989 : vector<8x32xf32>
    %992 = arith.mulf %981, %920 : vector<8x32xf32>
    %993 = arith.mulf %973, %983 : vector<8x32xf32>
    %994 = arith.addf %992, %993 : vector<8x32xf32>
    %995 = math.tanh %994 : vector<8x32xf32>
    %996 = arith.mulf %991, %995 : vector<8x32xf32>
    %c5_342 = arith.constant 5 : index
    %c0_343 = arith.constant 0 : index
    %c0_344 = arith.constant 0 : index
    %997 = vector.load %arg5[%c5_342, %c0_343, %c0_344] : memref<8x8x256xf32, #tpu.memory_space<vmem>>, vector<1x8x256xf32>
    %998 = vector.shape_cast %997 : vector<1x8x256xf32> to vector<8x256xf32>
    %999 = vector.extract_strided_slice %998 {offsets = [0, 0], sizes = [8, 128], strides = [1, 1]} : vector<8x256xf32> to vector<8x128xf32>
    %c2_345 = arith.constant 2 : index
    %c0_346 = arith.constant 0 : index
    %c0_347 = arith.constant 0 : index
    %1000 = vector.load %arg5[%c2_345, %c0_346, %c0_347] : memref<8x8x256xf32, #tpu.memory_space<vmem>>, vector<1x8x256xf32>
    %1001 = vector.shape_cast %1000 : vector<1x8x256xf32> to vector<8x256xf32>
    %1002 = vector.extract_strided_slice %1001 {offsets = [0, 128], sizes = [8, 128], strides = [1, 1]} : vector<8x256xf32> to vector<8x128xf32>
    %1003 = tpu.concatenate %999, %1002 in 1 : vector<8x128xf32>, vector<8x128xf32> -> vector<8x256xf32>
    %1004 = tpu.concatenate %964, %996 in 1 : vector<8x32xf32>, vector<8x32xf32> -> vector<8x64xf32>
    %cst_348 = arith.constant dense<0.000000e+00> : vector<8x256xf32>
    %1005 = tpu.matmul %1004, %622, %cst_348 {dimension_numbers = #tpu.dot_dimension_numbers<[1], [0], [0], [1], [0, 0, 1, 1], [], []>} : vector<8x64xf32>, vector<64x256xf32>, vector<8x256xf32> -> vector<8x256xf32>
    %1006 = arith.addf %1003, %1005 : vector<8x256xf32>
    %1007 = vector.extract_strided_slice %1006 {offsets = [0, 0], sizes = [8, 128], strides = [1, 1]} : vector<8x256xf32> to vector<8x128xf32>
    %1008 = vector.extract_strided_slice %1007 {offsets = [0, 0], sizes = [8, 32], strides = [1, 1]} : vector<8x128xf32> to vector<8x32xf32>
    %cst_349 = arith.constant 5.000000e-01 : f32
    %1009 = vector.broadcast %cst_349 : f32 to vector<8x32xf32>
    %1010 = arith.mulf %1009, %1008 : vector<8x32xf32>
    %1011 = math.tanh %1010 : vector<8x32xf32>
    %cst_350 = arith.constant 1.000000e+00 : f32
    %1012 = vector.broadcast %cst_350 : f32 to vector<8x32xf32>
    %1013 = arith.addf %1011, %1012 : vector<8x32xf32>
    %cst_351 = arith.constant 5.000000e-01 : f32
    %1014 = vector.broadcast %cst_351 : f32 to vector<8x32xf32>
    %1015 = arith.mulf %1014, %1013 : vector<8x32xf32>
    %1016 = vector.extract_strided_slice %1007 {offsets = [0, 32], sizes = [8, 32], strides = [1, 1]} : vector<8x128xf32> to vector<8x32xf32>
    %cst_352 = arith.constant 5.000000e-01 : f32
    %1017 = vector.broadcast %cst_352 : f32 to vector<8x32xf32>
    %1018 = arith.mulf %1017, %1016 : vector<8x32xf32>
    %1019 = math.tanh %1018 : vector<8x32xf32>
    %cst_353 = arith.constant 1.000000e+00 : f32
    %1020 = vector.broadcast %cst_353 : f32 to vector<8x32xf32>
    %1021 = arith.addf %1019, %1020 : vector<8x32xf32>
    %cst_354 = arith.constant 5.000000e-01 : f32
    %1022 = vector.broadcast %cst_354 : f32 to vector<8x32xf32>
    %1023 = arith.mulf %1022, %1021 : vector<8x32xf32>
    %1024 = vector.extract_strided_slice %1007 {offsets = [0, 64], sizes = [8, 32], strides = [1, 1]} : vector<8x128xf32> to vector<8x32xf32>
    %1025 = math.tanh %1024 : vector<8x32xf32>
    %1026 = vector.extract_strided_slice %1007 {offsets = [0, 96], sizes = [8, 32], strides = [1, 1]} : vector<8x128xf32> to vector<8x32xf32>
    %cst_355 = arith.constant 5.000000e-01 : f32
    %1027 = vector.broadcast %cst_355 : f32 to vector<8x32xf32>
    %1028 = arith.mulf %1027, %1026 : vector<8x32xf32>
    %1029 = math.tanh %1028 : vector<8x32xf32>
    %cst_356 = arith.constant 1.000000e+00 : f32
    %1030 = vector.broadcast %cst_356 : f32 to vector<8x32xf32>
    %1031 = arith.addf %1029, %1030 : vector<8x32xf32>
    %cst_357 = arith.constant 5.000000e-01 : f32
    %1032 = vector.broadcast %cst_357 : f32 to vector<8x32xf32>
    %1033 = arith.mulf %1032, %1031 : vector<8x32xf32>
    %1034 = arith.mulf %1023, %962 : vector<8x32xf32>
    %1035 = arith.mulf %1015, %1025 : vector<8x32xf32>
    %1036 = arith.addf %1034, %1035 : vector<8x32xf32>
    %1037 = math.tanh %1036 : vector<8x32xf32>
    %1038 = arith.mulf %1033, %1037 : vector<8x32xf32>
    %1039 = vector.extract_strided_slice %1006 {offsets = [0, 128], sizes = [8, 128], strides = [1, 1]} : vector<8x256xf32> to vector<8x128xf32>
    %1040 = vector.extract_strided_slice %1039 {offsets = [0, 0], sizes = [8, 32], strides = [1, 1]} : vector<8x128xf32> to vector<8x32xf32>
    %cst_358 = arith.constant 5.000000e-01 : f32
    %1041 = vector.broadcast %cst_358 : f32 to vector<8x32xf32>
    %1042 = arith.mulf %1041, %1040 : vector<8x32xf32>
    %1043 = math.tanh %1042 : vector<8x32xf32>
    %cst_359 = arith.constant 1.000000e+00 : f32
    %1044 = vector.broadcast %cst_359 : f32 to vector<8x32xf32>
    %1045 = arith.addf %1043, %1044 : vector<8x32xf32>
    %cst_360 = arith.constant 5.000000e-01 : f32
    %1046 = vector.broadcast %cst_360 : f32 to vector<8x32xf32>
    %1047 = arith.mulf %1046, %1045 : vector<8x32xf32>
    %1048 = vector.extract_strided_slice %1039 {offsets = [0, 32], sizes = [8, 32], strides = [1, 1]} : vector<8x128xf32> to vector<8x32xf32>
    %cst_361 = arith.constant 5.000000e-01 : f32
    %1049 = vector.broadcast %cst_361 : f32 to vector<8x32xf32>
    %1050 = arith.mulf %1049, %1048 : vector<8x32xf32>
    %1051 = math.tanh %1050 : vector<8x32xf32>
    %cst_362 = arith.constant 1.000000e+00 : f32
    %1052 = vector.broadcast %cst_362 : f32 to vector<8x32xf32>
    %1053 = arith.addf %1051, %1052 : vector<8x32xf32>
    %cst_363 = arith.constant 5.000000e-01 : f32
    %1054 = vector.broadcast %cst_363 : f32 to vector<8x32xf32>
    %1055 = arith.mulf %1054, %1053 : vector<8x32xf32>
    %1056 = vector.extract_strided_slice %1039 {offsets = [0, 64], sizes = [8, 32], strides = [1, 1]} : vector<8x128xf32> to vector<8x32xf32>
    %1057 = math.tanh %1056 : vector<8x32xf32>
    %1058 = vector.extract_strided_slice %1039 {offsets = [0, 96], sizes = [8, 32], strides = [1, 1]} : vector<8x128xf32> to vector<8x32xf32>
    %cst_364 = arith.constant 5.000000e-01 : f32
    %1059 = vector.broadcast %cst_364 : f32 to vector<8x32xf32>
    %1060 = arith.mulf %1059, %1058 : vector<8x32xf32>
    %1061 = math.tanh %1060 : vector<8x32xf32>
    %cst_365 = arith.constant 1.000000e+00 : f32
    %1062 = vector.broadcast %cst_365 : f32 to vector<8x32xf32>
    %1063 = arith.addf %1061, %1062 : vector<8x32xf32>
    %cst_366 = arith.constant 5.000000e-01 : f32
    %1064 = vector.broadcast %cst_366 : f32 to vector<8x32xf32>
    %1065 = arith.mulf %1064, %1063 : vector<8x32xf32>
    %1066 = arith.mulf %1055, %994 : vector<8x32xf32>
    %1067 = arith.mulf %1047, %1057 : vector<8x32xf32>
    %1068 = arith.addf %1066, %1067 : vector<8x32xf32>
    %1069 = math.tanh %1068 : vector<8x32xf32>
    %1070 = arith.mulf %1065, %1069 : vector<8x32xf32>
    %c6_367 = arith.constant 6 : index
    %c0_368 = arith.constant 0 : index
    %c0_369 = arith.constant 0 : index
    %1071 = vector.load %arg5[%c6_367, %c0_368, %c0_369] : memref<8x8x256xf32, #tpu.memory_space<vmem>>, vector<1x8x256xf32>
    %1072 = vector.shape_cast %1071 : vector<1x8x256xf32> to vector<8x256xf32>
    %1073 = vector.extract_strided_slice %1072 {offsets = [0, 0], sizes = [8, 128], strides = [1, 1]} : vector<8x256xf32> to vector<8x128xf32>
    %c1_370 = arith.constant 1 : index
    %c0_371 = arith.constant 0 : index
    %c0_372 = arith.constant 0 : index
    %1074 = vector.load %arg5[%c1_370, %c0_371, %c0_372] : memref<8x8x256xf32, #tpu.memory_space<vmem>>, vector<1x8x256xf32>
    %1075 = vector.shape_cast %1074 : vector<1x8x256xf32> to vector<8x256xf32>
    %1076 = vector.extract_strided_slice %1075 {offsets = [0, 128], sizes = [8, 128], strides = [1, 1]} : vector<8x256xf32> to vector<8x128xf32>
    %1077 = tpu.concatenate %1073, %1076 in 1 : vector<8x128xf32>, vector<8x128xf32> -> vector<8x256xf32>
    %1078 = tpu.concatenate %1038, %1070 in 1 : vector<8x32xf32>, vector<8x32xf32> -> vector<8x64xf32>
    %cst_373 = arith.constant dense<0.000000e+00> : vector<8x256xf32>
    %1079 = tpu.matmul %1078, %622, %cst_373 {dimension_numbers = #tpu.dot_dimension_numbers<[1], [0], [0], [1], [0, 0, 1, 1], [], []>} : vector<8x64xf32>, vector<64x256xf32>, vector<8x256xf32> -> vector<8x256xf32>
    %1080 = arith.addf %1077, %1079 : vector<8x256xf32>
    %1081 = vector.extract_strided_slice %1080 {offsets = [0, 0], sizes = [8, 128], strides = [1, 1]} : vector<8x256xf32> to vector<8x128xf32>
    %1082 = vector.extract_strided_slice %1081 {offsets = [0, 0], sizes = [8, 32], strides = [1, 1]} : vector<8x128xf32> to vector<8x32xf32>
    %cst_374 = arith.constant 5.000000e-01 : f32
    %1083 = vector.broadcast %cst_374 : f32 to vector<8x32xf32>
    %1084 = arith.mulf %1083, %1082 : vector<8x32xf32>
    %1085 = math.tanh %1084 : vector<8x32xf32>
    %cst_375 = arith.constant 1.000000e+00 : f32
    %1086 = vector.broadcast %cst_375 : f32 to vector<8x32xf32>
    %1087 = arith.addf %1085, %1086 : vector<8x32xf32>
    %cst_376 = arith.constant 5.000000e-01 : f32
    %1088 = vector.broadcast %cst_376 : f32 to vector<8x32xf32>
    %1089 = arith.mulf %1088, %1087 : vector<8x32xf32>
    %1090 = vector.extract_strided_slice %1081 {offsets = [0, 32], sizes = [8, 32], strides = [1, 1]} : vector<8x128xf32> to vector<8x32xf32>
    %cst_377 = arith.constant 5.000000e-01 : f32
    %1091 = vector.broadcast %cst_377 : f32 to vector<8x32xf32>
    %1092 = arith.mulf %1091, %1090 : vector<8x32xf32>
    %1093 = math.tanh %1092 : vector<8x32xf32>
    %cst_378 = arith.constant 1.000000e+00 : f32
    %1094 = vector.broadcast %cst_378 : f32 to vector<8x32xf32>
    %1095 = arith.addf %1093, %1094 : vector<8x32xf32>
    %cst_379 = arith.constant 5.000000e-01 : f32
    %1096 = vector.broadcast %cst_379 : f32 to vector<8x32xf32>
    %1097 = arith.mulf %1096, %1095 : vector<8x32xf32>
    %1098 = vector.extract_strided_slice %1081 {offsets = [0, 64], sizes = [8, 32], strides = [1, 1]} : vector<8x128xf32> to vector<8x32xf32>
    %1099 = math.tanh %1098 : vector<8x32xf32>
    %1100 = vector.extract_strided_slice %1081 {offsets = [0, 96], sizes = [8, 32], strides = [1, 1]} : vector<8x128xf32> to vector<8x32xf32>
    %cst_380 = arith.constant 5.000000e-01 : f32
    %1101 = vector.broadcast %cst_380 : f32 to vector<8x32xf32>
    %1102 = arith.mulf %1101, %1100 : vector<8x32xf32>
    %1103 = math.tanh %1102 : vector<8x32xf32>
    %cst_381 = arith.constant 1.000000e+00 : f32
    %1104 = vector.broadcast %cst_381 : f32 to vector<8x32xf32>
    %1105 = arith.addf %1103, %1104 : vector<8x32xf32>
    %cst_382 = arith.constant 5.000000e-01 : f32
    %1106 = vector.broadcast %cst_382 : f32 to vector<8x32xf32>
    %1107 = arith.mulf %1106, %1105 : vector<8x32xf32>
    %1108 = arith.mulf %1097, %1036 : vector<8x32xf32>
    %1109 = arith.mulf %1089, %1099 : vector<8x32xf32>
    %1110 = arith.addf %1108, %1109 : vector<8x32xf32>
    %1111 = math.tanh %1110 : vector<8x32xf32>
    %1112 = arith.mulf %1107, %1111 : vector<8x32xf32>
    %1113 = vector.extract_strided_slice %1080 {offsets = [0, 128], sizes = [8, 128], strides = [1, 1]} : vector<8x256xf32> to vector<8x128xf32>
    %1114 = vector.extract_strided_slice %1113 {offsets = [0, 0], sizes = [8, 32], strides = [1, 1]} : vector<8x128xf32> to vector<8x32xf32>
    %cst_383 = arith.constant 5.000000e-01 : f32
    %1115 = vector.broadcast %cst_383 : f32 to vector<8x32xf32>
    %1116 = arith.mulf %1115, %1114 : vector<8x32xf32>
    %1117 = math.tanh %1116 : vector<8x32xf32>
    %cst_384 = arith.constant 1.000000e+00 : f32
    %1118 = vector.broadcast %cst_384 : f32 to vector<8x32xf32>
    %1119 = arith.addf %1117, %1118 : vector<8x32xf32>
    %cst_385 = arith.constant 5.000000e-01 : f32
    %1120 = vector.broadcast %cst_385 : f32 to vector<8x32xf32>
    %1121 = arith.mulf %1120, %1119 : vector<8x32xf32>
    %1122 = vector.extract_strided_slice %1113 {offsets = [0, 32], sizes = [8, 32], strides = [1, 1]} : vector<8x128xf32> to vector<8x32xf32>
    %cst_386 = arith.constant 5.000000e-01 : f32
    %1123 = vector.broadcast %cst_386 : f32 to vector<8x32xf32>
    %1124 = arith.mulf %1123, %1122 : vector<8x32xf32>
    %1125 = math.tanh %1124 : vector<8x32xf32>
    %cst_387 = arith.constant 1.000000e+00 : f32
    %1126 = vector.broadcast %cst_387 : f32 to vector<8x32xf32>
    %1127 = arith.addf %1125, %1126 : vector<8x32xf32>
    %cst_388 = arith.constant 5.000000e-01 : f32
    %1128 = vector.broadcast %cst_388 : f32 to vector<8x32xf32>
    %1129 = arith.mulf %1128, %1127 : vector<8x32xf32>
    %1130 = vector.extract_strided_slice %1113 {offsets = [0, 64], sizes = [8, 32], strides = [1, 1]} : vector<8x128xf32> to vector<8x32xf32>
    %1131 = math.tanh %1130 : vector<8x32xf32>
    %1132 = vector.extract_strided_slice %1113 {offsets = [0, 96], sizes = [8, 32], strides = [1, 1]} : vector<8x128xf32> to vector<8x32xf32>
    %cst_389 = arith.constant 5.000000e-01 : f32
    %1133 = vector.broadcast %cst_389 : f32 to vector<8x32xf32>
    %1134 = arith.mulf %1133, %1132 : vector<8x32xf32>
    %1135 = math.tanh %1134 : vector<8x32xf32>
    %cst_390 = arith.constant 1.000000e+00 : f32
    %1136 = vector.broadcast %cst_390 : f32 to vector<8x32xf32>
    %1137 = arith.addf %1135, %1136 : vector<8x32xf32>
    %cst_391 = arith.constant 5.000000e-01 : f32
    %1138 = vector.broadcast %cst_391 : f32 to vector<8x32xf32>
    %1139 = arith.mulf %1138, %1137 : vector<8x32xf32>
    %1140 = arith.mulf %1129, %1068 : vector<8x32xf32>
    %1141 = arith.mulf %1121, %1131 : vector<8x32xf32>
    %1142 = arith.addf %1140, %1141 : vector<8x32xf32>
    %1143 = math.tanh %1142 : vector<8x32xf32>
    %1144 = arith.mulf %1139, %1143 : vector<8x32xf32>
    %c7_392 = arith.constant 7 : index
    %c0_393 = arith.constant 0 : index
    %c0_394 = arith.constant 0 : index
    %1145 = vector.load %arg5[%c7_392, %c0_393, %c0_394] : memref<8x8x256xf32, #tpu.memory_space<vmem>>, vector<1x8x256xf32>
    %1146 = vector.shape_cast %1145 : vector<1x8x256xf32> to vector<8x256xf32>
    %1147 = vector.extract_strided_slice %1146 {offsets = [0, 0], sizes = [8, 128], strides = [1, 1]} : vector<8x256xf32> to vector<8x128xf32>
    %c0_395 = arith.constant 0 : index
    %c0_396 = arith.constant 0 : index
    %c0_397 = arith.constant 0 : index
    %1148 = vector.load %arg5[%c0_395, %c0_396, %c0_397] : memref<8x8x256xf32, #tpu.memory_space<vmem>>, vector<1x8x256xf32>
    %1149 = vector.shape_cast %1148 : vector<1x8x256xf32> to vector<8x256xf32>
    %1150 = vector.extract_strided_slice %1149 {offsets = [0, 128], sizes = [8, 128], strides = [1, 1]} : vector<8x256xf32> to vector<8x128xf32>
    %1151 = tpu.concatenate %1147, %1150 in 1 : vector<8x128xf32>, vector<8x128xf32> -> vector<8x256xf32>
    %1152 = tpu.concatenate %1112, %1144 in 1 : vector<8x32xf32>, vector<8x32xf32> -> vector<8x64xf32>
    %cst_398 = arith.constant dense<0.000000e+00> : vector<8x256xf32>
    %1153 = tpu.matmul %1152, %622, %cst_398 {dimension_numbers = #tpu.dot_dimension_numbers<[1], [0], [0], [1], [0, 0, 1, 1], [], []>} : vector<8x64xf32>, vector<64x256xf32>, vector<8x256xf32> -> vector<8x256xf32>
    %1154 = arith.addf %1151, %1153 : vector<8x256xf32>
    %1155 = vector.extract_strided_slice %1154 {offsets = [0, 0], sizes = [8, 128], strides = [1, 1]} : vector<8x256xf32> to vector<8x128xf32>
    %1156 = vector.extract_strided_slice %1155 {offsets = [0, 0], sizes = [8, 32], strides = [1, 1]} : vector<8x128xf32> to vector<8x32xf32>
    %cst_399 = arith.constant 5.000000e-01 : f32
    %1157 = vector.broadcast %cst_399 : f32 to vector<8x32xf32>
    %1158 = arith.mulf %1157, %1156 : vector<8x32xf32>
    %1159 = math.tanh %1158 : vector<8x32xf32>
    %cst_400 = arith.constant 1.000000e+00 : f32
    %1160 = vector.broadcast %cst_400 : f32 to vector<8x32xf32>
    %1161 = arith.addf %1159, %1160 : vector<8x32xf32>
    %cst_401 = arith.constant 5.000000e-01 : f32
    %1162 = vector.broadcast %cst_401 : f32 to vector<8x32xf32>
    %1163 = arith.mulf %1162, %1161 : vector<8x32xf32>
    %1164 = vector.extract_strided_slice %1155 {offsets = [0, 32], sizes = [8, 32], strides = [1, 1]} : vector<8x128xf32> to vector<8x32xf32>
    %cst_402 = arith.constant 5.000000e-01 : f32
    %1165 = vector.broadcast %cst_402 : f32 to vector<8x32xf32>
    %1166 = arith.mulf %1165, %1164 : vector<8x32xf32>
    %1167 = math.tanh %1166 : vector<8x32xf32>
    %cst_403 = arith.constant 1.000000e+00 : f32
    %1168 = vector.broadcast %cst_403 : f32 to vector<8x32xf32>
    %1169 = arith.addf %1167, %1168 : vector<8x32xf32>
    %cst_404 = arith.constant 5.000000e-01 : f32
    %1170 = vector.broadcast %cst_404 : f32 to vector<8x32xf32>
    %1171 = arith.mulf %1170, %1169 : vector<8x32xf32>
    %1172 = vector.extract_strided_slice %1155 {offsets = [0, 64], sizes = [8, 32], strides = [1, 1]} : vector<8x128xf32> to vector<8x32xf32>
    %1173 = math.tanh %1172 : vector<8x32xf32>
    %1174 = vector.extract_strided_slice %1155 {offsets = [0, 96], sizes = [8, 32], strides = [1, 1]} : vector<8x128xf32> to vector<8x32xf32>
    %cst_405 = arith.constant 5.000000e-01 : f32
    %1175 = vector.broadcast %cst_405 : f32 to vector<8x32xf32>
    %1176 = arith.mulf %1175, %1174 : vector<8x32xf32>
    %1177 = math.tanh %1176 : vector<8x32xf32>
    %cst_406 = arith.constant 1.000000e+00 : f32
    %1178 = vector.broadcast %cst_406 : f32 to vector<8x32xf32>
    %1179 = arith.addf %1177, %1178 : vector<8x32xf32>
    %cst_407 = arith.constant 5.000000e-01 : f32
    %1180 = vector.broadcast %cst_407 : f32 to vector<8x32xf32>
    %1181 = arith.mulf %1180, %1179 : vector<8x32xf32>
    %1182 = arith.mulf %1171, %1110 : vector<8x32xf32>
    %1183 = arith.mulf %1163, %1173 : vector<8x32xf32>
    %1184 = arith.addf %1182, %1183 : vector<8x32xf32>
    %1185 = math.tanh %1184 : vector<8x32xf32>
    %1186 = arith.mulf %1181, %1185 : vector<8x32xf32>
    %1187 = vector.extract_strided_slice %1154 {offsets = [0, 128], sizes = [8, 128], strides = [1, 1]} : vector<8x256xf32> to vector<8x128xf32>
    %1188 = vector.extract_strided_slice %1187 {offsets = [0, 0], sizes = [8, 32], strides = [1, 1]} : vector<8x128xf32> to vector<8x32xf32>
    %cst_408 = arith.constant 5.000000e-01 : f32
    %1189 = vector.broadcast %cst_408 : f32 to vector<8x32xf32>
    %1190 = arith.mulf %1189, %1188 : vector<8x32xf32>
    %1191 = math.tanh %1190 : vector<8x32xf32>
    %cst_409 = arith.constant 1.000000e+00 : f32
    %1192 = vector.broadcast %cst_409 : f32 to vector<8x32xf32>
    %1193 = arith.addf %1191, %1192 : vector<8x32xf32>
    %cst_410 = arith.constant 5.000000e-01 : f32
    %1194 = vector.broadcast %cst_410 : f32 to vector<8x32xf32>
    %1195 = arith.mulf %1194, %1193 : vector<8x32xf32>
    %1196 = vector.extract_strided_slice %1187 {offsets = [0, 32], sizes = [8, 32], strides = [1, 1]} : vector<8x128xf32> to vector<8x32xf32>
    %cst_411 = arith.constant 5.000000e-01 : f32
    %1197 = vector.broadcast %cst_411 : f32 to vector<8x32xf32>
    %1198 = arith.mulf %1197, %1196 : vector<8x32xf32>
    %1199 = math.tanh %1198 : vector<8x32xf32>
    %cst_412 = arith.constant 1.000000e+00 : f32
    %1200 = vector.broadcast %cst_412 : f32 to vector<8x32xf32>
    %1201 = arith.addf %1199, %1200 : vector<8x32xf32>
    %cst_413 = arith.constant 5.000000e-01 : f32
    %1202 = vector.broadcast %cst_413 : f32 to vector<8x32xf32>
    %1203 = arith.mulf %1202, %1201 : vector<8x32xf32>
    %1204 = vector.extract_strided_slice %1187 {offsets = [0, 64], sizes = [8, 32], strides = [1, 1]} : vector<8x128xf32> to vector<8x32xf32>
    %1205 = math.tanh %1204 : vector<8x32xf32>
    %1206 = vector.extract_strided_slice %1187 {offsets = [0, 96], sizes = [8, 32], strides = [1, 1]} : vector<8x128xf32> to vector<8x32xf32>
    %cst_414 = arith.constant 5.000000e-01 : f32
    %1207 = vector.broadcast %cst_414 : f32 to vector<8x32xf32>
    %1208 = arith.mulf %1207, %1206 : vector<8x32xf32>
    %1209 = math.tanh %1208 : vector<8x32xf32>
    %cst_415 = arith.constant 1.000000e+00 : f32
    %1210 = vector.broadcast %cst_415 : f32 to vector<8x32xf32>
    %1211 = arith.addf %1209, %1210 : vector<8x32xf32>
    %cst_416 = arith.constant 5.000000e-01 : f32
    %1212 = vector.broadcast %cst_416 : f32 to vector<8x32xf32>
    %1213 = arith.mulf %1212, %1211 : vector<8x32xf32>
    %1214 = arith.mulf %1203, %1142 : vector<8x32xf32>
    %1215 = arith.mulf %1195, %1205 : vector<8x32xf32>
    %1216 = arith.addf %1214, %1215 : vector<8x32xf32>
    %1217 = math.tanh %1216 : vector<8x32xf32>
    %1218 = arith.mulf %1213, %1217 : vector<8x32xf32>
    %1219 = tpu.concatenate %668, %1218 in 1 : vector<8x32xf32>, vector<8x32xf32> -> vector<8x64xf32>
    %1220 = tpu.concatenate %742, %1144 in 1 : vector<8x32xf32>, vector<8x32xf32> -> vector<8x64xf32>
    %1221 = tpu.concatenate %816, %1070 in 1 : vector<8x32xf32>, vector<8x32xf32> -> vector<8x64xf32>
    %1222 = tpu.concatenate %890, %996 in 1 : vector<8x32xf32>, vector<8x32xf32> -> vector<8x64xf32>
    %1223 = tpu.concatenate %964, %922 in 1 : vector<8x32xf32>, vector<8x32xf32> -> vector<8x64xf32>
    %1224 = tpu.concatenate %1038, %848 in 1 : vector<8x32xf32>, vector<8x32xf32> -> vector<8x64xf32>
    %1225 = tpu.concatenate %1112, %774 in 1 : vector<8x32xf32>, vector<8x32xf32> -> vector<8x64xf32>
    %1226 = tpu.concatenate %1186, %700 in 1 : vector<8x32xf32>, vector<8x32xf32> -> vector<8x64xf32>
    %c640 = arith.constant 640 : index
    %c0_417 = arith.constant 0 : index
    %1227 = vector.load %arg3[%c640, %c0_417] : memref<648x128xf32, #tpu.memory_space<vmem>>, vector<1x128xf32>
    %c641 = arith.constant 641 : index
    %c0_418 = arith.constant 0 : index
    %1228 = vector.load %arg3[%c641, %c0_418] : memref<648x128xf32, #tpu.memory_space<vmem>>, vector<1x128xf32>
    %c642 = arith.constant 642 : index
    %c0_419 = arith.constant 0 : index
    %1229 = vector.load %arg3[%c642, %c0_419] : memref<648x128xf32, #tpu.memory_space<vmem>>, vector<1x128xf32>
    %c643 = arith.constant 643 : index
    %c0_420 = arith.constant 0 : index
    %1230 = vector.load %arg3[%c643, %c0_420] : memref<648x128xf32, #tpu.memory_space<vmem>>, vector<1x128xf32>
    %c644 = arith.constant 644 : index
    %c0_421 = arith.constant 0 : index
    %1231 = vector.load %arg3[%c644, %c0_421] : memref<648x128xf32, #tpu.memory_space<vmem>>, vector<1x128xf32>
    %c645 = arith.constant 645 : index
    %c0_422 = arith.constant 0 : index
    %1232 = vector.load %arg3[%c645, %c0_422] : memref<648x128xf32, #tpu.memory_space<vmem>>, vector<1x128xf32>
    %1233 = tpu.concatenate %1219, %1220, %1221, %1222, %1223, %1224, %1225, %1226 in 0 : vector<8x64xf32>, vector<8x64xf32>, vector<8x64xf32>, vector<8x64xf32>, vector<8x64xf32>, vector<8x64xf32>, vector<8x64xf32>, vector<8x64xf32> -> vector<64x64xf32>
    %c0_423 = arith.constant 0 : index
    %c0_424 = arith.constant 0 : index
    %1234 = vector.load %arg3[%c0_423, %c0_424] : memref<648x128xf32, #tpu.memory_space<vmem>>, vector<64x128xf32>
    %cst_425 = arith.constant dense<0.000000e+00> : vector<64x128xf32>
    %1235 = tpu.matmul %1233, %1234, %cst_425 {dimension_numbers = #tpu.dot_dimension_numbers<[1], [0], [0], [1], [0, 0, 1, 1], [], []>} : vector<64x64xf32>, vector<64x128xf32>, vector<64x128xf32> -> vector<64x128xf32>
    %1236 = vector.broadcast %1227 : vector<1x128xf32> to vector<64x128xf32>
    %1237 = arith.addf %1235, %1236 : vector<64x128xf32>
    %cst_426 = arith.constant 0.000000e+00 : f32
    %1238 = vector.broadcast %cst_426 : f32 to vector<64x128xf32>
    %1239 = arith.maximumf %1237, %1238 : vector<64x128xf32>
    %1240 = vector.extract_strided_slice %1239 {offsets = [0, 0], sizes = [8, 128], strides = [1, 1]} : vector<64x128xf32> to vector<8x128xf32>
    %1241 = vector.broadcast %1228 : vector<1x128xf32> to vector<8x128xf32>
    %1242 = arith.mulf %1240, %1241 : vector<8x128xf32>
    %cst_427 = arith.constant dense<0.000000e+00> : vector<8xf32>
    %1243 = vector.multi_reduction <add>, %1242, %cst_427 [1] : vector<8x128xf32> to vector<8xf32>
    %1244 = vector.shape_cast %1243 : vector<8xf32> to vector<8x1xf32>
    %1245 = vector.extract_strided_slice %1239 {offsets = [8, 0], sizes = [8, 128], strides = [1, 1]} : vector<64x128xf32> to vector<8x128xf32>
    %1246 = vector.broadcast %1228 : vector<1x128xf32> to vector<8x128xf32>
    %1247 = arith.mulf %1245, %1246 : vector<8x128xf32>
    %cst_428 = arith.constant dense<0.000000e+00> : vector<8xf32>
    %1248 = vector.multi_reduction <add>, %1247, %cst_428 [1] : vector<8x128xf32> to vector<8xf32>
    %1249 = vector.shape_cast %1248 : vector<8xf32> to vector<8x1xf32>
    %1250 = vector.extract_strided_slice %1239 {offsets = [16, 0], sizes = [8, 128], strides = [1, 1]} : vector<64x128xf32> to vector<8x128xf32>
    %1251 = vector.broadcast %1228 : vector<1x128xf32> to vector<8x128xf32>
    %1252 = arith.mulf %1250, %1251 : vector<8x128xf32>
    %cst_429 = arith.constant dense<0.000000e+00> : vector<8xf32>
    %1253 = vector.multi_reduction <add>, %1252, %cst_429 [1] : vector<8x128xf32> to vector<8xf32>
    %1254 = vector.shape_cast %1253 : vector<8xf32> to vector<8x1xf32>
    %1255 = vector.extract_strided_slice %1239 {offsets = [24, 0], sizes = [8, 128], strides = [1, 1]} : vector<64x128xf32> to vector<8x128xf32>
    %1256 = vector.broadcast %1228 : vector<1x128xf32> to vector<8x128xf32>
    %1257 = arith.mulf %1255, %1256 : vector<8x128xf32>
    %cst_430 = arith.constant dense<0.000000e+00> : vector<8xf32>
    %1258 = vector.multi_reduction <add>, %1257, %cst_430 [1] : vector<8x128xf32> to vector<8xf32>
    %1259 = vector.shape_cast %1258 : vector<8xf32> to vector<8x1xf32>
    %1260 = vector.extract_strided_slice %1239 {offsets = [32, 0], sizes = [8, 128], strides = [1, 1]} : vector<64x128xf32> to vector<8x128xf32>
    %1261 = vector.broadcast %1228 : vector<1x128xf32> to vector<8x128xf32>
    %1262 = arith.mulf %1260, %1261 : vector<8x128xf32>
    %cst_431 = arith.constant dense<0.000000e+00> : vector<8xf32>
    %1263 = vector.multi_reduction <add>, %1262, %cst_431 [1] : vector<8x128xf32> to vector<8xf32>
    %1264 = vector.shape_cast %1263 : vector<8xf32> to vector<8x1xf32>
    %1265 = vector.extract_strided_slice %1239 {offsets = [40, 0], sizes = [8, 128], strides = [1, 1]} : vector<64x128xf32> to vector<8x128xf32>
    %1266 = vector.broadcast %1228 : vector<1x128xf32> to vector<8x128xf32>
    %1267 = arith.mulf %1265, %1266 : vector<8x128xf32>
    %cst_432 = arith.constant dense<0.000000e+00> : vector<8xf32>
    %1268 = vector.multi_reduction <add>, %1267, %cst_432 [1] : vector<8x128xf32> to vector<8xf32>
    %1269 = vector.shape_cast %1268 : vector<8xf32> to vector<8x1xf32>
    %1270 = vector.extract_strided_slice %1239 {offsets = [48, 0], sizes = [8, 128], strides = [1, 1]} : vector<64x128xf32> to vector<8x128xf32>
    %1271 = vector.broadcast %1228 : vector<1x128xf32> to vector<8x128xf32>
    %1272 = arith.mulf %1270, %1271 : vector<8x128xf32>
    %cst_433 = arith.constant dense<0.000000e+00> : vector<8xf32>
    %1273 = vector.multi_reduction <add>, %1272, %cst_433 [1] : vector<8x128xf32> to vector<8xf32>
    %1274 = vector.shape_cast %1273 : vector<8xf32> to vector<8x1xf32>
    %1275 = vector.extract_strided_slice %1239 {offsets = [56, 0], sizes = [8, 128], strides = [1, 1]} : vector<64x128xf32> to vector<8x128xf32>
    %1276 = vector.broadcast %1228 : vector<1x128xf32> to vector<8x128xf32>
    %1277 = arith.mulf %1275, %1276 : vector<8x128xf32>
    %cst_434 = arith.constant dense<0.000000e+00> : vector<8xf32>
    %1278 = vector.multi_reduction <add>, %1277, %cst_434 [1] : vector<8x128xf32> to vector<8xf32>
    %1279 = vector.shape_cast %1278 : vector<8xf32> to vector<8x1xf32>
    %1280 = tpu.concatenate %1244, %1249, %1254, %1259, %1264, %1269, %1274, %1279 in 1 : vector<8x1xf32>, vector<8x1xf32>, vector<8x1xf32>, vector<8x1xf32>, vector<8x1xf32>, vector<8x1xf32>, vector<8x1xf32>, vector<8x1xf32> -> vector<8x8xf32>
    %cst_435 = arith.constant dense<0xFF800000> : vector<8xf32>
    %1281 = vector.multi_reduction <maximumf>, %1280, %cst_435 [1] : vector<8x8xf32> to vector<8xf32>
    %1282 = vector.shape_cast %1281 : vector<8xf32> to vector<8x1xf32>
    %1283 = vector.broadcast %1282 : vector<8x1xf32> to vector<8x8xf32>
    %1284 = arith.subf %1280, %1283 : vector<8x8xf32>
    %1285 = math.exp %1284 : vector<8x8xf32>
    %cst_436 = arith.constant dense<0.000000e+00> : vector<8xf32>
    %1286 = vector.multi_reduction <add>, %1285, %cst_436 [1] : vector<8x8xf32> to vector<8xf32>
    %1287 = vector.shape_cast %1286 : vector<8xf32> to vector<8x1xf32>
    %1288 = tpu.reciprocal %1287 {approx = true} : vector<8x1xf32> -> vector<8x1xf32>
    %1289 = vector.broadcast %1288 : vector<8x1xf32> to vector<8x8xf32>
    %1290 = arith.mulf %1285, %1289 : vector<8x8xf32>
    %cst_437 = arith.constant 0.000000e+00 : f32
    %1291 = vector.broadcast %cst_437 : f32 to vector<8x64xf32>
    %1292 = vector.extract_strided_slice %1290 {offsets = [0, 0], sizes = [8, 1], strides = [1, 1]} : vector<8x8xf32> to vector<8x1xf32>
    %1293 = vector.broadcast %1292 : vector<8x1xf32> to vector<8x64xf32>
    %1294 = arith.mulf %1293, %1219 : vector<8x64xf32>
    %1295 = arith.addf %1291, %1294 : vector<8x64xf32>
    %1296 = vector.extract_strided_slice %1290 {offsets = [0, 1], sizes = [8, 1], strides = [1, 1]} : vector<8x8xf32> to vector<8x1xf32>
    %1297 = vector.broadcast %1296 : vector<8x1xf32> to vector<8x64xf32>
    %1298 = arith.mulf %1297, %1220 : vector<8x64xf32>
    %1299 = arith.addf %1295, %1298 : vector<8x64xf32>
    %1300 = vector.extract_strided_slice %1290 {offsets = [0, 2], sizes = [8, 1], strides = [1, 1]} : vector<8x8xf32> to vector<8x1xf32>
    %1301 = vector.broadcast %1300 : vector<8x1xf32> to vector<8x64xf32>
    %1302 = arith.mulf %1301, %1221 : vector<8x64xf32>
    %1303 = arith.addf %1299, %1302 : vector<8x64xf32>
    %1304 = vector.extract_strided_slice %1290 {offsets = [0, 3], sizes = [8, 1], strides = [1, 1]} : vector<8x8xf32> to vector<8x1xf32>
    %1305 = vector.broadcast %1304 : vector<8x1xf32> to vector<8x64xf32>
    %1306 = arith.mulf %1305, %1222 : vector<8x64xf32>
    %1307 = arith.addf %1303, %1306 : vector<8x64xf32>
    %1308 = vector.extract_strided_slice %1290 {offsets = [0, 4], sizes = [8, 1], strides = [1, 1]} : vector<8x8xf32> to vector<8x1xf32>
    %1309 = vector.broadcast %1308 : vector<8x1xf32> to vector<8x64xf32>
    %1310 = arith.mulf %1309, %1223 : vector<8x64xf32>
    %1311 = arith.addf %1307, %1310 : vector<8x64xf32>
    %1312 = vector.extract_strided_slice %1290 {offsets = [0, 5], sizes = [8, 1], strides = [1, 1]} : vector<8x8xf32> to vector<8x1xf32>
    %1313 = vector.broadcast %1312 : vector<8x1xf32> to vector<8x64xf32>
    %1314 = arith.mulf %1313, %1224 : vector<8x64xf32>
    %1315 = arith.addf %1311, %1314 : vector<8x64xf32>
    %1316 = vector.extract_strided_slice %1290 {offsets = [0, 6], sizes = [8, 1], strides = [1, 1]} : vector<8x8xf32> to vector<8x1xf32>
    %1317 = vector.broadcast %1316 : vector<8x1xf32> to vector<8x64xf32>
    %1318 = arith.mulf %1317, %1225 : vector<8x64xf32>
    %1319 = arith.addf %1315, %1318 : vector<8x64xf32>
    %1320 = vector.extract_strided_slice %1290 {offsets = [0, 7], sizes = [8, 1], strides = [1, 1]} : vector<8x8xf32> to vector<8x1xf32>
    %1321 = vector.broadcast %1320 : vector<8x1xf32> to vector<8x64xf32>
    %1322 = arith.mulf %1321, %1226 : vector<8x64xf32>
    %1323 = arith.addf %1319, %1322 : vector<8x64xf32>
    %c128 = arith.constant 128 : index
    %c0_438 = arith.constant 0 : index
    %1324 = vector.load %arg3[%c128, %c0_438] : memref<648x128xf32, #tpu.memory_space<vmem>>, vector<64x128xf32>
    %cst_439 = arith.constant dense<0.000000e+00> : vector<8x128xf32>
    %1325 = tpu.matmul %1323, %1324, %cst_439 {dimension_numbers = #tpu.dot_dimension_numbers<[1], [0], [0], [1], [0, 0, 1, 1], [], []>} : vector<8x64xf32>, vector<64x128xf32>, vector<8x128xf32> -> vector<8x128xf32>
    %1326 = vector.broadcast %1229 : vector<1x128xf32> to vector<8x128xf32>
    %1327 = arith.addf %1325, %1326 : vector<8x128xf32>
    %cst_440 = arith.constant 0.000000e+00 : f32
    %1328 = vector.broadcast %cst_440 : f32 to vector<8x128xf32>
    %1329 = arith.maximumf %1327, %1328 : vector<8x128xf32>
    %c256 = arith.constant 256 : index
    %c0_441 = arith.constant 0 : index
    %1330 = vector.load %arg3[%c256, %c0_441] : memref<648x128xf32, #tpu.memory_space<vmem>>, vector<128x128xf32>
    %cst_442 = arith.constant dense<0.000000e+00> : vector<8x128xf32>
    %1331 = tpu.matmul %1329, %1330, %cst_442 {dimension_numbers = #tpu.dot_dimension_numbers<[1], [0], [0], [1], [0, 0, 1, 1], [], []>} : vector<8x128xf32>, vector<128x128xf32>, vector<8x128xf32> -> vector<8x128xf32>
    %1332 = vector.broadcast %1230 : vector<1x128xf32> to vector<8x128xf32>
    %1333 = arith.addf %1331, %1332 : vector<8x128xf32>
    %cst_443 = arith.constant 0.000000e+00 : f32
    %1334 = vector.broadcast %cst_443 : f32 to vector<8x128xf32>
    %1335 = arith.maximumf %1333, %1334 : vector<8x128xf32>
    %c384 = arith.constant 384 : index
    %c0_444 = arith.constant 0 : index
    %1336 = vector.load %arg3[%c384, %c0_444] : memref<648x128xf32, #tpu.memory_space<vmem>>, vector<128x128xf32>
    %cst_445 = arith.constant dense<0.000000e+00> : vector<8x128xf32>
    %1337 = tpu.matmul %1335, %1336, %cst_445 {dimension_numbers = #tpu.dot_dimension_numbers<[1], [0], [0], [1], [0, 0, 1, 1], [], []>} : vector<8x128xf32>, vector<128x128xf32>, vector<8x128xf32> -> vector<8x128xf32>
    %1338 = vector.broadcast %1231 : vector<1x128xf32> to vector<8x128xf32>
    %1339 = arith.addf %1337, %1338 : vector<8x128xf32>
    %cst_446 = arith.constant 0.000000e+00 : f32
    %1340 = vector.broadcast %cst_446 : f32 to vector<8x128xf32>
    %1341 = arith.maximumf %1339, %1340 : vector<8x128xf32>
    %c512 = arith.constant 512 : index
    %c0_447 = arith.constant 0 : index
    %1342 = vector.load %arg3[%c512, %c0_447] : memref<648x128xf32, #tpu.memory_space<vmem>>, vector<128x128xf32>
    %cst_448 = arith.constant dense<0.000000e+00> : vector<8x128xf32>
    %1343 = tpu.matmul %1341, %1342, %cst_448 {dimension_numbers = #tpu.dot_dimension_numbers<[1], [0], [0], [1], [0, 0, 1, 1], [], []>} : vector<8x128xf32>, vector<128x128xf32>, vector<8x128xf32> -> vector<8x128xf32>
    %1344 = vector.broadcast %1232 : vector<1x128xf32> to vector<8x128xf32>
    %1345 = arith.addf %1343, %1344 : vector<8x128xf32>
    %cst_449 = arith.constant 5.000000e-01 : f32
    %1346 = vector.broadcast %cst_449 : f32 to vector<8x128xf32>
    %1347 = arith.mulf %1346, %1345 : vector<8x128xf32>
    %1348 = math.tanh %1347 : vector<8x128xf32>
    %cst_450 = arith.constant 1.000000e+00 : f32
    %1349 = vector.broadcast %cst_450 : f32 to vector<8x128xf32>
    %1350 = arith.addf %1348, %1349 : vector<8x128xf32>
    %cst_451 = arith.constant 5.000000e-01 : f32
    %1351 = vector.broadcast %cst_451 : f32 to vector<8x128xf32>
    %1352 = arith.mulf %1351, %1350 : vector<8x128xf32>
    %c0_452 = arith.constant 0 : index
    %c0_453 = arith.constant 0 : index
    %1353 = vector.load %arg4[%c0_452, %c0_453] : memref<8x128xf32, #tpu.memory_space<vmem>>, vector<8x128xf32>
    tpu.vector_store %arg4[%c0_452, %c0_453], %1352 {strides = array<i32>} : memref<8x128xf32, #tpu.memory_space<vmem>>, vector<8x128xf32>,
    return
  }
  func.func @transform_0(%arg0: i32) -> (i32, i32, i32) {
    %c0_i32 = arith.constant 0 : i32
    %c0_i32_0 = arith.constant 0 : i32
    %c0_i32_1 = arith.constant 0 : i32
    return %c0_i32, %arg0, %c0_i32_0 : i32, i32, i32
  }
  func.func @transform_1(%arg0: i32) -> (i32, i32) {
    %c0_i32 = arith.constant 0 : i32
    %c0_i32_0 = arith.constant 0 : i32
    %c0_i32_1 = arith.constant 0 : i32
    return %c0_i32, %c0_i32_0 : i32, i32
  }
  func.func @transform_2(%arg0: i32) -> (i32, i32) {
    %c0_i32 = arith.constant 0 : i32
    %c0_i32_0 = arith.constant 0 : i32
    %c0_i32_1 = arith.constant 0 : i32
    return %c0_i32, %c0_i32_0 : i32, i32
  }
  func.func @transform_3(%arg0: i32) -> (i32, i32) {
    %c0_i32 = arith.constant 0 : i32
    %c0_i32_0 = arith.constant 0 : i32
    return %arg0, %c0_i32 : i32, i32
  }
}

</mosaic_0001>

<bundles_post_ra>
// kernel: forward.1
= control target key start
LH: loop header
LB: loop body
LE: loop exit
PB: predicated region body
PF: predicated region fallthrough
CT: control target
= control target key end

     0   :  { %8 = vsyncpa [#allocation4], 0  ;;  %s4061_s12 = smov [#allocation3]   ;;  %s5046_s0 = inlined_call_operand.vmem [shape: f32[8,8,16], index: 0, kind: input, shape index: {}]   ;;  %s5047_s1 = inlined_call_operand.hbm [shape: f32[216,256], index: 1, kind: input, shape index: {}]   ;;  %s5048_s2 = inlined_call_operand.vmem [shape: f32[648,128], index: 2, kind: input, shape index: {}]   ;;  %s5049_s3 = inlined_call_operand.vmem [shape: f32[8,128], index: 3, kind: output, shape index: {}]  }
   0x1   :  { %s16_s13 = sshll.u32 %s4061_s12, 4  ;;  %s4037_s16 = scalar_lea.hbm %s5047_s1, 6912  ;;  %s17_s13 = int_to_ptr.vmem [resolvable:$true] %s16_s13 }
   0x2   :  { %p4038_p0 = scmp.ne.s32.totalorder %s5047_s1, %s4037_s16  ;;  %p4041_p1 = scmp.lt.u32.totalorder %s4037_s16, %s5047_s1 }
   0x4   :  { %p4043_p2 = pnand %p4041_p1, %p4038_p0 }
   0x6   :  { %4046 = shalt.err (!%p4043_p2)
}
   0x7   :  { %s4047_s21 = scalar_lea.vmem %s17_s13, 6912  ;;  %p4052_p4 = scmp.lt.s32.totalorder %s17_s13, %s17_s13 }
   0x8   :  { %p4048_p3 = scmp.ne.s32.totalorder %s17_s13, %s4047_s21  ;;  %p4053_p5 = scmp.lt.s32.totalorder %s4047_s21, %s4047_s21 }
   0xa   :  { %p4054_p6 = por %p4053_p5, %p4052_p4 }
   0xc   :  { %p4055_p7 = pnand %p4054_p6, %p4048_p3 }
   0xe   :  { %4058 = shalt.err (!%p4055_p7)
}
   0xf   :  { %s4062_s22 = smov 256   ;;  %s4063_s23 = smov 16  }
  0x10   :  { %22 = dma.hbm_to_vmem [thread:$0]  %s5047_s1, 6912, %s17_s13, [#allocation4], %s4062_s22, %s4062_s22, %s4063_s23  }
  0x11   :  { %4059 = dma.done.wait [#allocation4], 6912  }
  0x12   :  { %4060 = vsyncadd [#allocation4], 4294960384  ;;  %v4064_v0 = vmov 0.0   ;;  %v37_v1 = vld [vmem:[#allocation3 + $0x8] sm:$0xff]  ;;  %v39_v2 = vld [vmem:[#allocation3 + $0x18] sm:$0xff]  ;;  %vm53_vm0 = vcmask 130048   ;;  %v43_v36 = vlaneseq }
  0x13   :  { %166 = vmatprep.mubr.f32.mxu1 %v4064_v0  ;;  %142 = vmatprep.mubr.f32.mxu0 %v4064_v0  ;;  %v36_v3 = vld [vmem:[#allocation3] sm:$0xff]  ;;  %v3436_v4 = vpack.c.bf16 %v39_v2, %v37_v1  ;;  %v38_v5 = vld [vmem:[#allocation3 + $0x10] sm:$0xff]  ;;  %v208_v6 = vld [vmem:[#allocation3 + $0xa8] sm:$0xff]  ;;  %s4065_s8 = smov 64   ;;  %s4066_s9 = smov 32   ;;  %vm363_vm1 = vcmask 261120  }
  0x14   :  { %v3438_v7 = vpack.c.bf16 %v38_v5, %v36_v3  ;;  %v210_v8 = vld [vmem:[#allocation3 + $0xb8] sm:$0xff]  ;;  %v207_v9 = vld [vmem:[#allocation3 + $0xa0] sm:$0xff]  ;;  %v209_v10 = vld [vmem:[#allocation3 + $0xb0] sm:$0xff]  ;;  %v4184_v40 = vshrl.u32 %v43_v36, 7  ;;  %vm228_vm2 = vcmask 523264   ;;  %vm2720_vm3 = vcmask 7168  }
  0x15   :  { %3812 = vmatprep.subr.bf16.mxu1 %v3436_v4  ;;  %v4111_v11 = vpack.c.bf16 %v210_v8, %v208_v6  ;;  %v212_v12 = vld [vmem:[#allocation3 + $0xc8] sm:$0xff]  ;;  %v214_v13 = vld [vmem:[#allocation3 + $0xd8] sm:$0xff]  ;;  %3437 = vmatprep.subr.bf16.mxu0 %v3436_v4  ;;  %v32_v14 = vld [vmem:[%s5046_s0 + $0x20] sm:$0xff]  ;;  %v4116_v15 = vpack.c.bf16 %v209_v10, %v207_v9  ;;  %vm2722_vm4 = vcmask 15360   ;;  %vm2724_vm5 = vcmask 23552  }
  0x16   :  { %3813 = vmatpush1.bf16.msra.mxu1 %v3438_v7  ;;  %3439 = vmatpush1.bf16.msra.mxu0 %v3438_v7  ;;  %v4119_v16 = vpack.c.bf16 %v214_v13, %v212_v12  ;;  %v211_v17 = vld [vmem:[#allocation3 + $0xc0] sm:$0xff]  ;;  %v213_v18 = vld [vmem:[#allocation3 + $0xd0] sm:$0xff]  ;;  %v216_v19 = vld [vmem:[#allocation3 + $0xe8] sm:$0xff]  ;;  %v45_v44 = vsub.s32 0, %v4184_v40  ;;  %v49_v48 = vsub.s32 1, %v4184_v40  ;;  %vm2726_vm6 = vcmask 31744  }
  0x17   :  { %3441 = vmatprep.subr.bf16.mxu1 %v4111_v11  ;;  %3473 = vmatprep.subr.bf16.mxu0 %v4111_v11  ;;  %v218_v20 = vld [vmem:[#allocation3 + $0xf8] sm:$0xff]  ;;  %v33_v21 = vld [vmem:[%s5046_s0 + $0x28] sm:$0xff]  ;;  %v4128_v22 = vpack.c.bf16 %v213_v18, %v211_v17  ;;  %v28_v23 = vld [vmem:[%s5046_s0] sm:$0xff]  ;;  %vm2728_vm7 = vcmask 39936   ;;  %vm2730_vm8 = vcmask 48128   ;;  %vm2732_vm9 = vcmask 56320  }
  0x18   :  { %v4134_v24 = vpack.c.bf16 %v218_v20, %v216_v19  ;;  %v215_v25 = vld [vmem:[#allocation3 + $0xe0] sm:$0xff]  ;;  %v217_v26 = vld [vmem:[#allocation3 + $0xf0] sm:$0xff]  ;;  %v220_v27 = vld [vmem:[#allocation3 + $0x108] sm:$0xff]  ;;  %vm2734_vm10 = vcmask 64512   ;;  %vm4076_vm11 = vmmov 0  }
  0x19   :  { %3167 = vmatmul.mubr.msk.f32.vlgmr.msra.gmra.mrb[0].mxu1 %vm53_vm0, %v32_v14  ;;  %3163 = vmatmul.mubr.msk.f32.vlgmr.msra.gmra.mrb[0].mxu0 %vm53_vm0, %v28_v23  ;;  %v222_v28 = vld [vmem:[#allocation3 + $0x118] sm:$0xff]  ;;  %v34_v29 = vld [vmem:[%s5046_s0 + $0x30] sm:$0xff]  ;;  %v4146_v30 = vpack.c.bf16 %v217_v26, %v215_v25  ;;  %v219_v32 = vld [vmem:[#allocation3 + $0x100] sm:$0xff] }
  0x1a   :  { %3443 = vmatpush1.bf16.msra.mxu1 %v4116_v15  ;;  %172 = vmatprep.mubr.f32.mxu1 %v4064_v0  ;;  %v4149_v31 = vpack.c.bf16 %v222_v28, %v220_v27  ;;  %v221_v33 = vld [vmem:[#allocation3 + $0x110] sm:$0xff]  ;;  %v35_v34 = vld [vmem:[%s5046_s0 + $0x38] sm:$0xff]  ;;  %v41_v45 = vld [vmem:[#allocation3 + $0x1a0] ss:$8 sm:$0x3] }
  0x1b   :  { %3445 = vmatprep.subr.bf16.mxu1 %v4119_v16  ;;  %148 = vmatprep.mubr.f32.mxu0 %v4064_v0  ;;  %v4159_v35 = vpack.c.bf16 %v221_v33, %v219_v32  ;;  %v4200_v49 = vrot.slane %v41_v45, %v45_v44  ;;  %v4207_v53 = vrot.slane %v41_v45, %v49_v48 }
  0x1c   :  { %3475 = vmatpush1.bf16.msra.mxu0 %v4116_v15 }
  0x1d   :  { %3168 = vmatmul.mubr.msk.f32.gmra.mrb[2].mxu1 %vm53_vm0, %v33_v21  ;;  %3477 = vmatprep.subr.bf16.mxu0 %v4119_v16  ;;  %v29_v21 = vld [vmem:[%s5046_s0 + $0x8] sm:$0xff] }
  0x1e   :  { %3447 = vmatpush1.bf16.msra.mxu1 %v4128_v22  ;;  %178 = vmatprep.mubr.f32.mxu1 %v4064_v0 }
  0x1f   :  { %3449 = vmatprep.subr.bf16.mxu1 %v4134_v24  ;;  %3164 = vmatmul.mubr.msk.f32.gmra.mrb[2].mxu0 %vm53_vm0, %v29_v21 }
  0x20   :  { %3479 = vmatpush1.bf16.msra.mxu0 %v4128_v22  ;;  %154 = vmatprep.mubr.f32.mxu0 %v4064_v0 }
  0x21   :  { %3169 = vmatmul.mubr.msk.f32.gmra.mrb[4].mxu1 %vm53_vm0, %v34_v29  ;;  %3481 = vmatprep.subr.bf16.mxu0 %v4134_v24 }
  0x22   :  { %3451 = vmatpush1.bf16.msra.mxu1 %v4146_v30  ;;  %184 = vmatprep.mubr.f32.mxu1 %v4064_v0 }
  0x23   :  { %3453 = vmatprep.subr.bf16.mxu1 %v4149_v31 }
  0x24   :  { %3483 = vmatpush1.bf16.msra.mxu0 %v4146_v30 }
  0x25   :  { %3170 = vmatmul.mubr.msk.f32.gmra.mrb[6].mxu1 %vm53_vm0, %v35_v34  ;;  %3485 = vmatprep.subr.bf16.mxu0 %v4149_v31 }
  0x26   :  { %3455 = vmatpush1.bf16.msra.mxu1 %v4159_v35  ;;  %296 = vmatprep.mubr.f32.mxu1 %v4064_v0 }
  0x27   :  { %3457 = vmatprep.subr.bf16.mxu1 %v4111_v11 }
  0x28   :  { %3487 = vmatpush1.bf16.msra.mxu0 %v4159_v35 }
  0x29   :  { %297 = vmatmul.mubr.f32.vlgmr.msra.gmra.mrb[8].mxu1 %v4064_v0  ;;  %3505 = vmatprep.subr.bf16.mxu0 %v4111_v11 }
  0x2a   :  { %3459 = vmatpush1.bf16.msra.mxu1 %v4116_v15  ;;  %432 = vmatprep.mubr.f32.mxu1 %v4064_v0 }
  0x2b   :  { %3461 = vmatprep.subr.bf16.mxu1 %v4119_v16 }
  0x2e   :  { %3463 = vmatpush1.bf16.msra.mxu1 %v4128_v22 }
  0x2f   :  { %3465 = vmatprep.subr.bf16.mxu1 %v4134_v24 }
  0x32   :  { %3467 = vmatpush1.bf16.msra.mxu1 %v4146_v30 }
  0x33   :  { %3469 = vmatprep.subr.bf16.mxu1 %v4149_v31 }
  0x36   :  { %3471 = vmatpush1.bf16.msra.mxu1 %v4159_v35 }
  0x37   :  { %3489 = vmatprep.subr.bf16.mxu1 %v4111_v11 }
  0xec   :  { %v4180_v37 = vpop.f32.mrb[0].mxu1  ;;  %v144_v39 = vpop.f32.mrb[0].mxu0 }
  0xed   :  { %v4182_v38 = vpop.f32.mrb[1].mxu1  ;;  %v4186_v41 = vpop.f32.mrb[1].mxu0  ;;  %v145_v52 = vadd.f32 %v144_v39, %v4200_v49 }
  0xf0   :  { %v4188_v42 = vpop.f32.mrb[2].mxu1 }
  0xf1   :  { %v4190_v43 = vpop.f32.mrb[3].mxu1 }
  0xf2   :  { %v150_v33 = vpop.f32.mrb[2].mxu0 }
  0xf3   :  { %v4243_v34 = vpop.f32.mrb[3].mxu0  ;;  %v151_v36 = vadd.f32 %v150_v33, %v4200_v49 }
  0xf4   :  { %v4193_v46 = vpop.f32.mrb[4].mxu1 }
  0xf5   :  { %v4195_v47 = vpop.f32.mrb[5].mxu1 }
  0xf6   :  { %v183_v39 = vadd.f32 %v4195_v47, %v4207_v53 }
  0xf8   :  { %v4202_v50 = vpop.f32.mrb[6].mxu1 }
  0xf9   :  { %v188_v51 = vpop.f32.mrb[7].mxu1 }
  0xfa   :  { %v189_v54 = vadd.f32 %v188_v51, %v4207_v53 }
  0xfc   :  { %v298_v55 = vpop.f32.mrb[8].mxu1 }
  0xfd   :  { %v303_v56 = vadd.f32 %v298_v55, %v145_v52  ;;  %v300_v57 = vpop.f32.mrb[9].mxu1 }
  0xfe   :  { %v304_v58 = vadd.f32 %v300_v57, %v189_v54 }
  0xff   :  { %3839 = vtanh.f32 %v303_v56  ;;  %v305_v61 = vmul.f32 0.5, %v303_v56 }
 0x100   :  { %3841 = vtanh.f32 %v304_v58  ;;  %v327_v62 = vmul.f32 0.5, %v304_v58 }
 0x101   :  { %3843 = vtanh.f32 %v305_v61 }
 0x102   :  { %3845 = vtanh.f32 %v327_v62 }
 0x109   :  { %v3840_v59 = vpop.eup %3839 }
 0x10a   :  { %312 = vrot.lane.b32.xlu0 %v3840_v59, %s4065_s8  ;;  %v3842_v60 = vpop.eup %3841 }
 0x10b   :  { %v3844_v63 = vpop.eup %3843 }
 0x10c   :  { %v307_v1 = vadd.f32 1.0, %v3844_v63  ;;  %v3846_v2 = vpop.eup %3845 }
 0x10d   :  { %v329_v3 = vadd.f32 1.0, %v3846_v2 }
 0x10e   :  { %334 = vrot.lane.b32.xlu0 %v3842_v60, %s4065_s8  ;;  %v308_v4 = vmul.f32 0.5, %v307_v1 }
 0x10f   :  { %v330_v7 = vmul.f32 0.5, %v329_v3 }
 0x110   :  { %v310_v10 = vmul.f32 0.0, %v308_v4 }
 0x111   :  { %v332_v14 = vmul.f32 0.0, %v330_v7 }
 0x17c   :  { %v313_v5 = vpop.permute.xlu0 %312 }
 0x17d   :  { %v315_v6 = vmul.f32 %v313_v5, %v308_v4 }
 0x17f   :  { %317 = vrot.lane.b32.xlu1 %v315_v6, %s4066_s9 }
 0x180   :  { %v335_v8 = vpop.permute.xlu0 %334 }
 0x181   :  { %v337_v9 = vmul.f32 %v335_v8, %v330_v7 }
 0x183   :  { %339 = vrot.lane.b32.xlu1 %v337_v9, %s4066_s9 }
 0x1f1   :  { %v318_v12 = vpop.permute.xlu1 %317 }
 0x1f2   :  { %v4214_v13 = vadd.f32 %v318_v12, %v310_v10  ;;  %v30_v12 = vld [vmem:[%s5046_s0 + $0x10] sm:$0xff] }
 0x1f3   :  { %3165 = vmatmul.mubr.msk.f32.gmra.mrb[4].mxu0 %vm53_vm0, %v30_v12 }
 0x1f4   :  { %3847 = vtanh.f32 %v4214_v13  ;;  %160 = vmatprep.mubr.f32.mxu0 %v4064_v0 }
 0x1f5   :  { %v340_v17 = vpop.permute.xlu1 %339 }
 0x1f6   :  { %v342_v18 = vadd.f32 %v340_v17, %v332_v14 }
 0x1f8   :  { %3849 = vtanh.f32 %v342_v18 }
 0x1fe   :  { %v3848_v19 = vpop.eup %3847 }
 0x1ff   :  { %323 = vrot.lane.b32.xlu0 %v3848_v19, %s4065_s8 }
 0x202   :  { %v3850_v20 = vpop.eup %3849 }
 0x203   :  { %345 = vrot.lane.b32.xlu1 %v3850_v20, %s4065_s8 }
 0x271   :  { %v324_v23 = vpop.permute.xlu0 %323 }
 0x272   :  { %v326_v25 = vmul.f32 %v324_v23, %v308_v4 }
 0x274   :  { %356 = vrot.lane.b32.xlu0 %v326_v25, %s4066_s9 }
 0x275   :  { %v346_v26 = vpop.permute.xlu1 %345 }
 0x276   :  { %v348_v27 = vmul.f32 %v346_v26, %v330_v7 }
 0x278   :  { %360 = vrot.lane.b32.xlu1 %v348_v27, %s4065_s8 }
 0x2c6   :  { %v156_v23 = vpop.f32.mrb[4].mxu0 }
 0x2c7   :  { %v4273_v25 = vpop.f32.mrb[5].mxu0 }
 0x2e6   :  { %v4226_v28 = vpop.permute.xlu0 %356 }
 0x2ea   :  { %v4228_v29 = vpop.permute.xlu1 %360 }
 0x2eb   :  { %v364_v32 = vsel %vm363_vm1, %v4226_v28, %v4228_v29 }
 0x2ec   :  { %3171 = vmatmul.mubr.msk.f32.vlgmr.msra.gmra.mrb[10].mxu1 %vm228_vm2, %v364_v32 }
 0x2ed   :  { %3491 = vmatpush1.bf16.msra.mxu1 %v4116_v15  ;;  %702 = vmatprep.mubr.f32.mxu1 %v4064_v0 }
 0x2ee   :  { %3493 = vmatprep.subr.bf16.mxu1 %v4119_v16 }
 0x2f1   :  { %3495 = vmatpush1.bf16.msra.mxu1 %v4128_v22 }
 0x2f2   :  { %3497 = vmatprep.subr.bf16.mxu1 %v4134_v24 }
 0x2f5   :  { %3499 = vmatpush1.bf16.msra.mxu1 %v4146_v30 }
 0x2f6   :  { %3501 = vmatprep.subr.bf16.mxu1 %v4149_v31 }
 0x2f9   :  { %3503 = vmatpush1.bf16.msra.mxu1 %v4159_v35 }
 0x2fa   :  { %3521 = vmatprep.subr.bf16.mxu1 %v4111_v11 }
 0x3bf   :  { %v434_v45 = vpop.f32.mrb[10].mxu1 }
 0x3c0   :  { %v439_v51 = vadd.f32 %v434_v45, %v151_v36  ;;  %v436_v52 = vpop.f32.mrb[11].mxu1  ;;  %v177_v45 = vadd.f32 %v4190_v43, %v4207_v53 }
 0x3c1   :  { %v440_v54 = vadd.f32 %v436_v52, %v183_v39  ;;  %v157_v39 = vadd.f32 %v156_v23, %v4200_v49 }
 0x3c2   :  { %3851 = vtanh.f32 %v439_v51  ;;  %v441_v57 = vmul.f32 0.5, %v439_v51 }
 0x3c3   :  { %3853 = vtanh.f32 %v440_v54  ;;  %v463_v58 = vmul.f32 0.5, %v440_v54 }
 0x3c4   :  { %3855 = vtanh.f32 %v441_v57 }
 0x3c5   :  { %3857 = vtanh.f32 %v463_v58 }
 0x3cc   :  { %v3852_v55 = vpop.eup %3851 }
 0x3cd   :  { %v3854_v56 = vpop.eup %3853  ;;  %448 = vrot.lane.b32.xlu0 %v3852_v55, %s4065_s8 }
 0x3ce   :  { %470 = vrot.lane.b32.xlu1 %v3854_v56, %s4065_s8  ;;  %v3856_v59 = vpop.eup %3855 }
 0x3cf   :  { %v3858_v60 = vpop.eup %3857  ;;  %v443_v61 = vadd.f32 1.0, %v3856_v59 }
 0x3d0   :  { %v465_v47 = vadd.f32 1.0, %v3858_v60 }
 0x3d1   :  { %v444_v62 = vmul.f32 0.5, %v443_v61 }
 0x3d2   :  { %v466_v1 = vmul.f32 0.5, %v465_v47 }
 0x3d3   :  { %v446_v5 = vmul.f32 %v444_v62, %v4214_v13  ;;  %v31_v13 = vld [vmem:[%s5046_s0 + $0x18] sm:$0xff] }
 0x3d4   :  { %v468_v7 = vmul.f32 %v466_v1, %v342_v18  ;;  %3166 = vmatmul.mubr.msk.f32.gmra.mrb[6].mxu0 %vm53_vm0, %v31_v13 }
 0x3d5   :  { %567 = vmatprep.mubr.f32.mxu0 %v4064_v0 }
 0x43f   :  { %v449_v63 = vpop.permute.xlu0 %448 }
 0x440   :  { %v451_v2 = vmul.f32 %v449_v63, %v444_v62  ;;  %v471_v3 = vpop.permute.xlu1 %470 }
 0x441   :  { %v473_v4 = vmul.f32 %v471_v3, %v466_v1 }
 0x442   :  { %453 = vrot.lane.b32.xlu0 %v451_v2, %s4066_s9 }
 0x443   :  { %475 = vrot.lane.b32.xlu1 %v473_v4, %s4066_s9 }
 0x4a7   :  { %v4275_v26 = vpop.f32.mrb[6].mxu0 }
 0x4a8   :  { %v4277_v27 = vpop.f32.mrb[7].mxu0 }
 0x4b4   :  { %v454_v6 = vpop.permute.xlu0 %453 }
 0x4b5   :  { %v4253_v8 = vadd.f32 %v454_v6, %v446_v5  ;;  %v476_v9 = vpop.permute.xlu1 %475 }
 0x4b6   :  { %v4255_v10 = vadd.f32 %v476_v9, %v468_v7 }
 0x4b7   :  { %3859 = vtanh.f32 %v4253_v8 }
 0x4b8   :  { %3861 = vtanh.f32 %v4255_v10 }
 0x4c1   :  { %v3860_v14 = vpop.eup %3859 }
 0x4c2   :  { %v3862_v17 = vpop.eup %3861  ;;  %459 = vrot.lane.b32.xlu0 %v3860_v14, %s4065_s8 }
 0x4c3   :  { %481 = vrot.lane.b32.xlu1 %v3862_v17, %s4065_s8 }
 0x534   :  { %v460_v18 = vpop.permute.xlu0 %459 }
 0x535   :  { %v462_v19 = vmul.f32 %v460_v18, %v444_v62  ;;  %v482_v20 = vpop.permute.xlu1 %481 }
 0x536   :  { %v484_v21 = vmul.f32 %v482_v20, %v466_v1 }
 0x537   :  { %492 = vrot.lane.b32.xlu0 %v462_v19, %s4066_s9 }
 0x538   :  { %496 = vrot.lane.b32.xlu1 %v484_v21, %s4065_s8 }
 0x5a9   :  { %v4279_v32 = vpop.permute.xlu0 %492 }
 0x5aa   :  { %v4281_v33 = vpop.permute.xlu1 %496 }
 0x5ab   :  { %v499_v36 = vsel %vm363_vm1, %v4279_v32, %v4281_v33 }
 0x5ac   :  { %3172 = vmatmul.mubr.msk.f32.vlgmr.msra.gmra.mrb[8].mxu0 %vm228_vm2, %v499_v36  ;;  %v163_v36 = vadd.f32 %v4275_v26, %v4200_v49 }
 0x5ad   :  { %3507 = vmatpush1.bf16.msra.mxu0 %v4116_v15  ;;  %831 = vmatprep.mubr.f32.mxu0 %v4064_v0 }
 0x5ae   :  { %3509 = vmatprep.subr.bf16.mxu0 %v4119_v16 }
 0x5b1   :  { %3511 = vmatpush1.bf16.msra.mxu0 %v4128_v22 }
 0x5b2   :  { %3513 = vmatprep.subr.bf16.mxu0 %v4134_v24 }
 0x5b5   :  { %3515 = vmatpush1.bf16.msra.mxu0 %v4146_v30 }
 0x5b6   :  { %3517 = vmatprep.subr.bf16.mxu0 %v4149_v31 }
 0x5b9   :  { %3519 = vmatpush1.bf16.msra.mxu0 %v4159_v35 }
 0x5ba   :  { %3537 = vmatprep.subr.bf16.mxu0 %v4111_v11 }
 0x67f   :  { %v569_v51 = vpop.f32.mrb[8].mxu0 }
 0x680   :  { %v574_v52 = vadd.f32 %v569_v51, %v157_v39  ;;  %v571_v54 = vpop.f32.mrb[9].mxu0  ;;  %v171_v39 = vadd.f32 %v4182_v38, %v4207_v53 }
 0x681   :  { %v575_v55 = vadd.f32 %v571_v54, %v177_v45 }
 0x682   :  { %3863 = vtanh.f32 %v574_v52  ;;  %v576_v58 = vmul.f32 0.5, %v574_v52 }
 0x683   :  { %3865 = vtanh.f32 %v575_v55  ;;  %v598_v59 = vmul.f32 0.5, %v575_v55 }
 0x684   :  { %3867 = vtanh.f32 %v576_v58 }
 0x685   :  { %3869 = vtanh.f32 %v598_v59 }
 0x68c   :  { %v3864_v56 = vpop.eup %3863 }
 0x68d   :  { %v3866_v57 = vpop.eup %3865  ;;  %583 = vrot.lane.b32.xlu0 %v3864_v56, %s4065_s8 }
 0x68e   :  { %605 = vrot.lane.b32.xlu1 %v3866_v57, %s4065_s8  ;;  %v3868_v60 = vpop.eup %3867 }
 0x68f   :  { %v3870_v61 = vpop.eup %3869  ;;  %v578_v47 = vadd.f32 1.0, %v3868_v60 }
 0x690   :  { %v600_v43 = vadd.f32 1.0, %v3870_v61 }
 0x691   :  { %v579_v62 = vmul.f32 0.5, %v578_v47 }
 0x692   :  { %v601_v1 = vmul.f32 0.5, %v600_v43 }
 0x693   :  { %v581_v5 = vmul.f32 %v579_v62, %v4253_v8 }
 0x694   :  { %v603_v7 = vmul.f32 %v601_v1, %v4255_v10 }
 0x6ff   :  { %v584_v63 = vpop.permute.xlu0 %583 }
 0x700   :  { %v586_v2 = vmul.f32 %v584_v63, %v579_v62  ;;  %v606_v3 = vpop.permute.xlu1 %605 }
 0x701   :  { %v608_v4 = vmul.f32 %v606_v3, %v601_v1 }
 0x702   :  { %588 = vrot.lane.b32.xlu0 %v586_v2, %s4066_s9 }
 0x703   :  { %610 = vrot.lane.b32.xlu1 %v608_v4, %s4066_s9 }
 0x774   :  { %v589_v6 = vpop.permute.xlu0 %588 }
 0x775   :  { %v591_v9 = vadd.f32 %v589_v6, %v581_v5  ;;  %v611_v12 = vpop.permute.xlu1 %610 }
 0x776   :  { %v613_v13 = vadd.f32 %v611_v12, %v603_v7 }
 0x777   :  { %3871 = vtanh.f32 %v591_v9 }
 0x778   :  { %3873 = vtanh.f32 %v613_v13 }
 0x781   :  { %v3872_v14 = vpop.eup %3871 }
 0x782   :  { %v3874_v17 = vpop.eup %3873  ;;  %594 = vrot.lane.b32.xlu0 %v3872_v14, %s4065_s8 }
 0x783   :  { %616 = vrot.lane.b32.xlu1 %v3874_v17, %s4065_s8 }
 0x7f4   :  { %v595_v18 = vpop.permute.xlu0 %594 }
 0x7f5   :  { %v597_v19 = vmul.f32 %v595_v18, %v579_v62  ;;  %v617_v20 = vpop.permute.xlu1 %616 }
 0x7f6   :  { %v619_v21 = vmul.f32 %v617_v20, %v601_v1 }
 0x7f7   :  { %627 = vrot.lane.b32.xlu0 %v597_v19, %s4066_s9 }
 0x7f8   :  { %631 = vrot.lane.b32.xlu1 %v619_v21, %s4065_s8  ;;  %v169_v21 = vadd.f32 %v4180_v37, %v4200_v49 }
 0x869   :  { %v4309_v8 = vpop.permute.xlu0 %627 }
 0x86a   :  { %v4311_v10 = vpop.permute.xlu1 %631 }
 0x86b   :  { %v634_v23 = vsel %vm363_vm1, %v4309_v8, %v4311_v10 }
 0x86c   :  { %3173 = vmatmul.mubr.msk.f32.vlgmr.msra.gmra.mrb[12].mxu1 %vm228_vm2, %v634_v23  ;;  %v165_v23 = vadd.f32 %v4277_v27, %v4207_v53 }
 0x86d   :  { %3523 = vmatpush1.bf16.msra.mxu1 %v4116_v15  ;;  %960 = vmatprep.mubr.f32.mxu1 %v4064_v0 }
 0x86e   :  { %3525 = vmatprep.subr.bf16.mxu1 %v4119_v16 }
 0x871   :  { %3527 = vmatpush1.bf16.msra.mxu1 %v4128_v22 }
 0x872   :  { %3529 = vmatprep.subr.bf16.mxu1 %v4134_v24 }
 0x875   :  { %3531 = vmatpush1.bf16.msra.mxu1 %v4146_v30 }
 0x876   :  { %3533 = vmatprep.subr.bf16.mxu1 %v4149_v31 }
 0x879   :  { %3535 = vmatpush1.bf16.msra.mxu1 %v4159_v35 }
 0x87a   :  { %3553 = vmatprep.subr.bf16.mxu1 %v4111_v11 }
 0x93f   :  { %v704_v45 = vpop.f32.mrb[12].mxu1 }
 0x940   :  { %v709_v51 = vadd.f32 %v704_v45, %v163_v36  ;;  %v706_v52 = vpop.f32.mrb[13].mxu1 }
 0x941   :  { %v710_v54 = vadd.f32 %v706_v52, %v171_v39 }
 0x942   :  { %3875 = vtanh.f32 %v709_v51  ;;  %v711_v57 = vmul.f32 0.5, %v709_v51 }
 0x943   :  { %3877 = vtanh.f32 %v710_v54  ;;  %v733_v11 = vmul.f32 0.5, %v710_v54 }
 0x944   :  { %3879 = vtanh.f32 %v711_v57 }
 0x945   :  { %3881 = vtanh.f32 %v733_v11 }
 0x94c   :  { %v3876_v55 = vpop.eup %3875 }
 0x94d   :  { %v3878_v56 = vpop.eup %3877  ;;  %718 = vrot.lane.b32.xlu0 %v3876_v55, %s4065_s8 }
 0x94e   :  { %740 = vrot.lane.b32.xlu1 %v3878_v56, %s4065_s8  ;;  %v3880_v26 = vpop.eup %3879 }
 0x94f   :  { %v3882_v58 = vpop.eup %3881  ;;  %v713_v59 = vadd.f32 1.0, %v3880_v26 }
 0x950   :  { %v735_v38 = vadd.f32 1.0, %v3882_v58 }
 0x951   :  { %v714_v60 = vmul.f32 0.5, %v713_v59 }
 0x952   :  { %v736_v47 = vmul.f32 0.5, %v735_v38 }
 0x953   :  { %v716_v1 = vmul.f32 %v714_v60, %v591_v9 }
 0x954   :  { %v738_v3 = vmul.f32 %v736_v47, %v613_v13 }
 0x9bf   :  { %v719_v61 = vpop.permute.xlu0 %718 }
 0x9c0   :  { %v721_v43 = vmul.f32 %v719_v61, %v714_v60  ;;  %v741_v62 = vpop.permute.xlu1 %740 }
 0x9c1   :  { %v743_v63 = vmul.f32 %v741_v62, %v736_v47 }
 0x9c2   :  { %723 = vrot.lane.b32.xlu0 %v721_v43, %s4066_s9 }
 0x9c3   :  { %745 = vrot.lane.b32.xlu1 %v743_v63, %s4066_s9 }
 0xa34   :  { %v724_v2 = vpop.permute.xlu0 %723 }
 0xa35   :  { %v726_v4 = vadd.f32 %v724_v2, %v716_v1  ;;  %v746_v5 = vpop.permute.xlu1 %745 }
 0xa36   :  { %v748_v6 = vadd.f32 %v746_v5, %v738_v3 }
 0xa37   :  { %3883 = vtanh.f32 %v726_v4 }
 0xa38   :  { %3885 = vtanh.f32 %v748_v6 }
 0xa41   :  { %v3884_v7 = vpop.eup %3883 }
 0xa42   :  { %v3886_v12 = vpop.eup %3885  ;;  %729 = vrot.lane.b32.xlu0 %v3884_v7, %s4065_s8 }
 0xa43   :  { %751 = vrot.lane.b32.xlu1 %v3886_v12, %s4065_s8 }
 0xab4   :  { %v730_v14 = vpop.permute.xlu0 %729 }
 0xab5   :  { %v732_v17 = vmul.f32 %v730_v14, %v714_v60  ;;  %v752_v18 = vpop.permute.xlu1 %751 }
 0xab6   :  { %v754_v19 = vmul.f32 %v752_v18, %v736_v47 }
 0xab7   :  { %756 = vrot.lane.b32.xlu0 %v732_v17, %s4066_s9 }
 0xab8   :  { %760 = vrot.lane.b32.xlu1 %v754_v19, %s4065_s8  ;;  %v175_v19 = vadd.f32 %v4188_v42, %v4200_v49 }
 0xb29   :  { %v4338_v9 = vpop.permute.xlu0 %756 }
 0xb2a   :  { %v4340_v13 = vpop.permute.xlu1 %760 }
 0xb2b   :  { %v763_v20 = vsel %vm363_vm1, %v4338_v9, %v4340_v13 }
 0xb2c   :  { %3174 = vmatmul.mubr.msk.f32.vlgmr.msra.gmra.mrb[10].mxu0 %vm228_vm2, %v763_v20 }
 0xb2d   :  { %3539 = vmatpush1.bf16.msra.mxu0 %v4116_v15  ;;  %1089 = vmatprep.mubr.f32.mxu0 %v4064_v0 }
 0xb2e   :  { %3541 = vmatprep.subr.bf16.mxu0 %v4119_v16 }
 0xb31   :  { %3543 = vmatpush1.bf16.msra.mxu0 %v4128_v22 }
 0xb32   :  { %3545 = vmatprep.subr.bf16.mxu0 %v4134_v24 }
 0xb35   :  { %3547 = vmatpush1.bf16.msra.mxu0 %v4146_v30 }
 0xb36   :  { %3549 = vmatprep.subr.bf16.mxu0 %v4149_v31 }
 0xb39   :  { %3551 = vmatpush1.bf16.msra.mxu0 %v4159_v35 }
 0xbff   :  { %v833_v36 = vpop.f32.mrb[10].mxu0 }
 0xc00   :  { %v838_v39 = vadd.f32 %v833_v36, %v169_v21  ;;  %v835_v45 = vpop.f32.mrb[11].mxu0 }
 0xc01   :  { %v839_v51 = vadd.f32 %v835_v45, %v165_v23 }
 0xc02   :  { %3887 = vtanh.f32 %v838_v39  ;;  %v840_v55 = vmul.f32 0.5, %v838_v39 }
 0xc03   :  { %3889 = vtanh.f32 %v839_v51  ;;  %v862_v56 = vmul.f32 0.5, %v839_v51 }
 0xc04   :  { %3891 = vtanh.f32 %v840_v55 }
 0xc05   :  { %3893 = vtanh.f32 %v862_v56 }
 0xc0c   :  { %v3888_v52 = vpop.eup %3887 }
 0xc0d   :  { %v3890_v54 = vpop.eup %3889  ;;  %847 = vrot.lane.b32.xlu0 %v3888_v52, %s4065_s8 }
 0xc0e   :  { %869 = vrot.lane.b32.xlu1 %v3890_v54, %s4065_s8  ;;  %v3892_v37 = vpop.eup %3891 }
 0xc0f   :  { %v3894_v57 = vpop.eup %3893  ;;  %v842_v11 = vadd.f32 1.0, %v3892_v37 }
 0xc10   :  { %v864_v27 = vadd.f32 1.0, %v3894_v57 }
 0xc11   :  { %v843_v26 = vmul.f32 0.5, %v842_v11 }
 0xc12   :  { %v865_v59 = vmul.f32 0.5, %v864_v27 }
 0xc13   :  { %v845_v47 = vmul.f32 %v843_v26, %v726_v4 }
 0xc14   :  { %v867_v62 = vmul.f32 %v865_v59, %v748_v6 }
 0xc7f   :  { %v848_v58 = vpop.permute.xlu0 %847 }
 0xc80   :  { %v850_v38 = vmul.f32 %v848_v58, %v843_v26  ;;  %v870_v60 = vpop.permute.xlu1 %869 }
 0xc81   :  { %v872_v61 = vmul.f32 %v870_v60, %v865_v59 }
 0xc82   :  { %852 = vrot.lane.b32.xlu0 %v850_v38, %s4066_s9 }
 0xc83   :  { %874 = vrot.lane.b32.xlu1 %v872_v61, %s4066_s9 }
 0xcf4   :  { %v853_v43 = vpop.permute.xlu0 %852 }
 0xcf5   :  { %v855_v63 = vadd.f32 %v853_v43, %v845_v47  ;;  %v875_v1 = vpop.permute.xlu1 %874 }
 0xcf6   :  { %v877_v2 = vadd.f32 %v875_v1, %v867_v62  ;;  %v181_v1 = vadd.f32 %v4193_v46, %v4200_v49 }
 0xcf7   :  { %3895 = vtanh.f32 %v855_v63 }
 0xcf8   :  { %3897 = vtanh.f32 %v877_v2 }
 0xd01   :  { %v3896_v3 = vpop.eup %3895 }
 0xd02   :  { %v3898_v5 = vpop.eup %3897  ;;  %858 = vrot.lane.b32.xlu0 %v3896_v3, %s4065_s8 }
 0xd03   :  { %880 = vrot.lane.b32.xlu1 %v3898_v5, %s4065_s8 }
 0xd74   :  { %v859_v7 = vpop.permute.xlu0 %858 }
 0xd75   :  { %v861_v12 = vmul.f32 %v859_v7, %v843_v26  ;;  %v881_v14 = vpop.permute.xlu1 %880 }
 0xd76   :  { %v883_v17 = vmul.f32 %v881_v14, %v865_v59 }
 0xd77   :  { %885 = vrot.lane.b32.xlu0 %v861_v12, %s4066_s9 }
 0xd78   :  { %889 = vrot.lane.b32.xlu1 %v883_v17, %s4065_s8 }
 0xde9   :  { %v4366_v4 = vpop.permute.xlu0 %885 }
 0xdea   :  { %v4368_v6 = vpop.permute.xlu1 %889 }
 0xdeb   :  { %v892_v18 = vsel %vm363_vm1, %v4366_v4, %v4368_v6 }
 0xdec   :  { %3175 = vmatmul.mubr.msk.f32.vlgmr.msra.gmra.mrb[14].mxu1 %vm228_vm2, %v892_v18 }
 0xded   :  { %3555 = vmatpush1.bf16.msra.mxu1 %v4116_v15  ;;  %1218 = vmatprep.mubr.f32.mxu1 %v4064_v0  ;;  %v159_v15 = vadd.f32 %v4273_v25, %v4207_v53 }
 0xdee   :  { %3557 = vmatprep.subr.bf16.mxu1 %v4119_v16 }
 0xdf1   :  { %3559 = vmatpush1.bf16.msra.mxu1 %v4128_v22 }
 0xdf2   :  { %3561 = vmatprep.subr.bf16.mxu1 %v4134_v24 }
 0xdf5   :  { %3563 = vmatpush1.bf16.msra.mxu1 %v4146_v30 }
 0xdf6   :  { %3565 = vmatprep.subr.bf16.mxu1 %v4149_v31 }
 0xdf9   :  { %3567 = vmatpush1.bf16.msra.mxu1 %v4159_v35 }
 0xebf   :  { %v962_v20 = vpop.f32.mrb[14].mxu1 }
 0xec0   :  { %v967_v21 = vadd.f32 %v962_v20, %v175_v19  ;;  %v964_v23 = vpop.f32.mrb[15].mxu1 }
 0xec1   :  { %v968_v16 = vadd.f32 %v964_v23, %v159_v15 }
 0xec2   :  { %3899 = vtanh.f32 %v967_v21  ;;  %v969_v30 = vmul.f32 0.5, %v967_v21 }
 0xec3   :  { %3901 = vtanh.f32 %v968_v16  ;;  %v991_v31 = vmul.f32 0.5, %v968_v16 }
 0xec4   :  { %3903 = vtanh.f32 %v969_v30 }
 0xec5   :  { %3905 = vtanh.f32 %v991_v31 }
 0xecc   :  { %v3900_v22 = vpop.eup %3899 }
 0xecd   :  { %v3902_v24 = vpop.eup %3901  ;;  %976 = vrot.lane.b32.xlu0 %v3900_v22, %s4065_s8 }
 0xece   :  { %998 = vrot.lane.b32.xlu1 %v3902_v24, %s4065_s8  ;;  %v3904_v35 = vpop.eup %3903 }
 0xecf   :  { %v3906_v42 = vpop.eup %3905  ;;  %v971_v36 = vadd.f32 1.0, %v3904_v35 }
 0xed0   :  { %v993_v25 = vadd.f32 1.0, %v3906_v42 }
 0xed1   :  { %v972_v39 = vmul.f32 0.5, %v971_v36 }
 0xed2   :  { %v994_v51 = vmul.f32 0.5, %v993_v25 }
 0xed3   :  { %v974_v56 = vmul.f32 %v972_v39, %v855_v63 }
 0xed4   :  { %v996_v57 = vmul.f32 %v994_v51, %v877_v2  ;;  %v153_v2 = vadd.f32 %v4243_v34, %v4207_v53 }
 0xf3f   :  { %v977_v45 = vpop.permute.xlu0 %976 }
 0xf40   :  { %v979_v52 = vmul.f32 %v977_v45, %v972_v39  ;;  %v999_v54 = vpop.permute.xlu1 %998 }
 0xf41   :  { %v1001_v55 = vmul.f32 %v999_v54, %v994_v51 }
 0xf42   :  { %981 = vrot.lane.b32.xlu0 %v979_v52, %s4066_s9 }
 0xf43   :  { %1003 = vrot.lane.b32.xlu1 %v1001_v55, %s4066_s9 }
 0xfb4   :  { %v982_v37 = vpop.permute.xlu0 %981 }
 0xfb5   :  { %v984_v11 = vadd.f32 %v982_v37, %v974_v56  ;;  %v1004_v27 = vpop.permute.xlu1 %1003 }
 0xfb6   :  { %v1006_v26 = vadd.f32 %v1004_v27, %v996_v57  ;;  %v187_v27 = vadd.f32 %v4202_v50, %v4200_v49 }
 0xfb7   :  { %3907 = vtanh.f32 %v984_v11 }
 0xfb8   :  { %3909 = vtanh.f32 %v1006_v26 }
 0xfc1   :  { %v3908_v58 = vpop.eup %3907 }
 0xfc2   :  { %v3910_v59 = vpop.eup %3909  ;;  %987 = vrot.lane.b32.xlu0 %v3908_v58, %s4065_s8 }
 0xfc3   :  { %1009 = vrot.lane.b32.xlu1 %v3910_v59, %s4065_s8 }
0x1034   :  { %v988_v38 = vpop.permute.xlu0 %987 }
0x1035   :  { %v990_v60 = vmul.f32 %v988_v38, %v972_v39  ;;  %v1010_v61 = vpop.permute.xlu1 %1009 }
0x1036   :  { %v1012_v47 = vmul.f32 %v1010_v61, %v994_v51 }
0x1037   :  { %1014 = vrot.lane.b32.xlu0 %v990_v60, %s4066_s9 }
0x1038   :  { %1018 = vrot.lane.b32.xlu1 %v1012_v47, %s4065_s8 }
0x10a9   :  { %v4394_v43 = vpop.permute.xlu0 %1014 }
0x10aa   :  { %v4396_v62 = vpop.permute.xlu1 %1018 }
0x10ab   :  { %v1021_v63 = vsel %vm363_vm1, %v4394_v43, %v4396_v62 }
0x10ac   :  { %3176 = vmatmul.mubr.msk.f32.vlgmr.msra.gmra.mrb[12].mxu0 %vm228_vm2, %v1021_v63 }
0x10ad   :  { %1404 = vmatprep.mubr.f32.mxu0 %v4064_v0 }
0x117f   :  { %v1091_v3 = vpop.f32.mrb[12].mxu0 }
0x1180   :  { %v1096_v5 = vadd.f32 %v1091_v3, %v181_v1  ;;  %v1093_v7 = vpop.f32.mrb[13].mxu0 }
0x1181   :  { %v1097_v12 = vadd.f32 %v1093_v7, %v153_v2 }
0x1182   :  { %3911 = vtanh.f32 %v1096_v5  ;;  %v1098_v18 = vmul.f32 0.5, %v1096_v5 }
0x1183   :  { %3913 = vtanh.f32 %v1097_v12  ;;  %v1120_v19 = vmul.f32 0.5, %v1097_v12 }
0x1184   :  { %3915 = vtanh.f32 %v1098_v18 }
0x1185   :  { %3917 = vtanh.f32 %v1120_v19 }
0x118c   :  { %v3912_v14 = vpop.eup %3911 }
0x118d   :  { %v3914_v17 = vpop.eup %3913  ;;  %1105 = vrot.lane.b32.xlu0 %v3912_v14, %s4065_s8 }
0x118e   :  { %1127 = vrot.lane.b32.xlu1 %v3914_v17, %s4065_s8  ;;  %v3916_v46 = vpop.eup %3915 }
0x118f   :  { %v3918_v15 = vpop.eup %3917  ;;  %v1100_v20 = vadd.f32 1.0, %v3916_v46 }
0x1190   :  { %v1122_v34 = vadd.f32 1.0, %v3918_v15 }
0x1191   :  { %v1101_v21 = vmul.f32 0.5, %v1100_v20 }
0x1192   :  { %v1123_v16 = vmul.f32 0.5, %v1122_v34  ;;  %v1288_v34 = vld [vmem:[#allocation3 + $0x28] sm:$0xff] }
0x1193   :  { %v1103_v31 = vmul.f32 %v1101_v21, %v984_v11 }
0x1194   :  { %v1125_v42 = vmul.f32 %v1123_v16, %v1006_v26  ;;  %v147_v26 = vadd.f32 %v4186_v41, %v4207_v53 }
0x11ff   :  { %v1106_v23 = vpop.permute.xlu0 %1105 }
0x1200   :  { %v1108_v22 = vmul.f32 %v1106_v23, %v1101_v21  ;;  %v1128_v24 = vpop.permute.xlu1 %1127  ;;  %v1287_v23 = vld [vmem:[#allocation3 + $0x20] sm:$0xff] }
0x1201   :  { %v1130_v30 = vmul.f32 %v1128_v24, %v1123_v16  ;;  %v1470_v24 = vld [vmem:[#allocation3 + $0x128] sm:$0xff] }
0x1202   :  { %1110 = vrot.lane.b32.xlu0 %v1108_v22, %s4066_s9  ;;  %v1289_v22 = vld [vmem:[#allocation3 + $0x30] sm:$0xff] }
0x1203   :  { %1132 = vrot.lane.b32.xlu1 %v1130_v30, %s4066_s9  ;;  %v1472_v30 = vld [vmem:[#allocation3 + $0x138] sm:$0xff] }
0x1274   :  { %v1111_v35 = vpop.permute.xlu0 %1110 }
0x1275   :  { %v1113_v36 = vadd.f32 %v1111_v35, %v1103_v31  ;;  %v1133_v25 = vpop.permute.xlu1 %1132  ;;  %v3570_v31 = vpack.c.bf16 %v1289_v22, %v1287_v23  ;;  %v4440_v35 = vpack.c.bf16 %v1472_v30, %v1470_v24  ;;  %v1483_v22 = vld [vmem:[#allocation3 + $0x190] sm:$0xff] }
0x1276   :  { %v1135_v39 = vadd.f32 %v1133_v25, %v1125_v42  ;;  %v1469_v42 = vld [vmem:[#allocation3 + $0x120] sm:$0xff]  ;;  %v1292_v25 = vld [vmem:[#allocation3 + $0x48] sm:$0xff] }
0x1277   :  { %3919 = vtanh.f32 %v1113_v36  ;;  %3585 = vmatprep.subr.bf16.mxu1 %v4440_v35 }
0x1278   :  { %3921 = vtanh.f32 %v1135_v39 }
0x1281   :  { %v3920_v45 = vpop.eup %3919 }
0x1282   :  { %v3922_v51 = vpop.eup %3921  ;;  %1116 = vrot.lane.b32.xlu0 %v3920_v45, %s4065_s8  ;;  %v1294_v45 = vld [vmem:[#allocation3 + $0x58] sm:$0xff] }
0x1283   :  { %1138 = vrot.lane.b32.xlu1 %v3922_v51, %s4065_s8  ;;  %v1291_v51 = vld [vmem:[#allocation3 + $0x40] sm:$0xff] }
0x12f4   :  { %v1117_v52 = vpop.permute.xlu0 %1116 }
0x12f5   :  { %v1119_v54 = vmul.f32 %v1117_v52, %v1101_v21  ;;  %v1139_v55 = vpop.permute.xlu1 %1138  ;;  %v1290_v21 = vld [vmem:[#allocation3 + $0x38] sm:$0xff]  ;;  %v1293_v52 = vld [vmem:[#allocation3 + $0x50] sm:$0xff] }
0x12f6   :  { %v1141_v56 = vmul.f32 %v1139_v55, %v1123_v16  ;;  %v3568_v16 = vpack.c.bf16 %v1290_v21, %v1288_v34  ;;  %v3574_v55 = vpack.c.bf16 %v1293_v52, %v1291_v51  ;;  %v1482_v34 = vld [vmem:[#allocation3 + $0x188] sm:$0xff]  ;;  %v1484_v21 = vld [vmem:[#allocation3 + $0x198] sm:$0xff] }
0x12f7   :  { %1143 = vrot.lane.b32.xlu0 %v1119_v54, %s4066_s9  ;;  %v3572_v54 = vpack.c.bf16 %v1294_v45, %v1292_v25  ;;  %v4461_v23 = vpack.c.bf16 %v1484_v21, %v1482_v34 }
0x12f8   :  { %1147 = vrot.lane.b32.xlu1 %v1141_v56, %s4065_s8  ;;  %3569 = vmatprep.subr.bf16.mxu0 %v3568_v16  ;;  %v1474_v56 = vld [vmem:[#allocation3 + $0x148] sm:$0xff]  ;;  %v1481_v16 = vld [vmem:[#allocation3 + $0x180] sm:$0xff] }
0x12f9   :  { %3571 = vmatpush1.bf16.msra.mxu0 %v3570_v31  ;;  %v4463_v24 = vpack.c.bf16 %v1483_v22, %v1481_v16 }
0x12fa   :  { %3573 = vmatprep.subr.bf16.mxu0 %v3572_v54 }
0x12fd   :  { %3575 = vmatpush1.bf16.msra.mxu0 %v3574_v55 }
0x1369   :  { %v4415_v37 = vpop.permute.xlu0 %1143 }
0x136a   :  { %v4417_v57 = vpop.permute.xlu1 %1147 }
0x136b   :  { %v1150_v11 = vsel %vm363_vm1, %v4415_v37, %v4417_v57 }
0x136c   :  { %3177 = vmatmul.mubr.msk.f32.vlgmr.msra.gmra.mrb[16].mxu1 %vm228_vm2, %v1150_v11  ;;  %v1476_v11 = vld [vmem:[#allocation3 + $0x158] sm:$0xff] }
0x136d   :  { %1553 = vmatprep.mubr.f32.mxu1 %v4064_v0 }
0x143f   :  { %v1220_v58 = vpop.f32.mrb[16].mxu1 }
0x1440   :  { %v1225_v59 = vadd.f32 %v1220_v58, %v187_v27  ;;  %v1222_v38 = vpop.f32.mrb[17].mxu1  ;;  %v1473_v27 = vld [vmem:[#allocation3 + $0x140] sm:$0xff]  ;;  %v1475_v58 = vld [vmem:[#allocation3 + $0x150] sm:$0xff] }
0x1441   :  { %v1226_v60 = vadd.f32 %v1222_v38, %v147_v26  ;;  %v4446_v26 = vpack.c.bf16 %v1476_v11, %v1474_v56  ;;  %v1298_v38 = vld [vmem:[#allocation3 + $0x78] sm:$0xff] }
0x1442   :  { %3923 = vtanh.f32 %v1225_v59  ;;  %v1227_v63 = vmul.f32 0.5, %v1225_v59  ;;  %v1296_v59 = vld [vmem:[#allocation3 + $0x68] sm:$0xff] }
0x1443   :  { %3925 = vtanh.f32 %v1226_v60  ;;  %v1249_v1 = vmul.f32 0.5, %v1226_v60  ;;  %v4448_v60 = vpack.c.bf16 %v1475_v58, %v1473_v27 }
0x1444   :  { %3927 = vtanh.f32 %v1227_v63  ;;  %v1297_v63 = vld [vmem:[#allocation3 + $0x70] sm:$0xff] }
0x1445   :  { %3929 = vtanh.f32 %v1249_v1  ;;  %v1478_v1 = vld [vmem:[#allocation3 + $0x168] sm:$0xff] }
0x144c   :  { %v3924_v61 = vpop.eup %3923 }
0x144d   :  { %v3926_v47 = vpop.eup %3925  ;;  %1234 = vrot.lane.b32.xlu1 %v3924_v61, %s4065_s8  ;;  %v3576_v61 = vpack.c.bf16 %v1298_v38, %v1296_v59 }
0x144e   :  { %1256 = vrot.lane.b32.xlu0 %v3926_v47, %s4065_s8  ;;  %v3928_v49 = vpop.eup %3927  ;;  %v1295_v47 = vld [vmem:[#allocation3 + $0x60] sm:$0xff] }
0x144f   :  { %v3930_v50 = vpop.eup %3929  ;;  %v1229_v2 = vadd.f32 1.0, %v3928_v49  ;;  %v1480_v49 = vld [vmem:[#allocation3 + $0x178] sm:$0xff]  ;;  %3577 = vmatprep.subr.bf16.mxu0 %v3576_v61 }
0x1450   :  { %v1251_v41 = vadd.f32 1.0, %v3930_v50  ;;  %v1477_v50 = vld [vmem:[#allocation3 + $0x160] sm:$0xff] }
0x1451   :  { %v4430_v53 = vmul.f32 0.5, %v1229_v2  ;;  %v1479_v2 = vld [vmem:[#allocation3 + $0x170] sm:$0xff] }
0x1452   :  { %v4432_v5 = vmul.f32 0.5, %v1251_v41  ;;  %v3578_v41 = vpack.c.bf16 %v1297_v63, %v1295_v47 }
0x1453   :  { %v1232_v17 = vmul.f32 %v4430_v53, %v1113_v36  ;;  %v1471_v36 = vld [vmem:[#allocation3 + $0x130] sm:$0xff] }
0x1454   :  { %v1254_v19 = vmul.f32 %v4432_v5, %v1135_v39  ;;  %v4442_v39 = vpack.c.bf16 %v1471_v36, %v1469_v42  ;;  %3579 = vmatpush1.bf16.msra.mxu0 %v3578_v41 }
0x1456   :  { %3587 = vmatpush1.bf16.msra.mxu1 %v4442_v39 }
0x1457   :  { %3589 = vmatprep.subr.bf16.mxu1 %v4446_v26 }
0x145a   :  { %3591 = vmatpush1.bf16.msra.mxu1 %v4448_v60 }
0x14bf   :  { %v1235_v3 = vpop.permute.xlu1 %1234 }
0x14c0   :  { %v1237_v7 = vmul.f32 %v1235_v3, %v4430_v53  ;;  %v1257_v12 = vpop.permute.xlu0 %1256  ;;  %v4451_v3 = vpack.c.bf16 %v1480_v49, %v1478_v1 }
0x14c1   :  { %v1259_v14 = vmul.f32 %v1257_v12, %v4432_v5  ;;  %v1302_v12 = vld [vmem:[#allocation3 + $0x98] sm:$0xff] }
0x14c2   :  { %1239 = vrot.lane.b32.xlu1 %v1237_v7, %s4066_s9  ;;  %v1300_v7 = vld [vmem:[#allocation3 + $0x88] sm:$0xff]  ;;  %3593 = vmatprep.subr.bf16.mxu1 %v4451_v3 }
0x14c3   :  { %1261 = vrot.lane.b32.xlu0 %v1259_v14, %s4066_s9 }
0x1534   :  { %v1240_v18 = vpop.permute.xlu1 %1239 }
0x1535   :  { %v1242_v46 = vadd.f32 %v1240_v18, %v1232_v17  ;;  %v1262_v15 = vpop.permute.xlu0 %1261  ;;  %v4454_v17 = vpack.c.bf16 %v1479_v2, %v1477_v50  ;;  %v3580_v18 = vpack.c.bf16 %v1302_v12, %v1300_v7 }
0x1536   :  { %v1264_v20 = vadd.f32 %v1262_v15, %v1254_v19  ;;  %v1299_v19 = vld [vmem:[#allocation3 + $0x80] sm:$0xff] }
0x1537   :  { %3931 = vtanh.f32 %v1242_v46  ;;  %v1301_v46 = vld [vmem:[#allocation3 + $0x90] sm:$0xff]  ;;  %3595 = vmatpush1.bf16.msra.mxu1 %v4454_v17  ;;  %3581 = vmatprep.subr.bf16.mxu0 %v3580_v18 }
0x1538   :  { %3933 = vtanh.f32 %v1264_v20  ;;  %v3582_v20 = vpack.c.bf16 %v1301_v46, %v1299_v19  ;;  %3597 = vmatprep.subr.bf16.mxu1 %v4461_v23 }
0x153a   :  { %3583 = vmatpush1.bf16.msra.mxu0 %v3582_v20 }
0x153b   :  { %3617 = vmatprep.subr.bf16.mxu0 %v4440_v35  ;;  %3599 = vmatpush1.bf16.msra.mxu1 %v4463_v24 }
0x153c   :  { %3601 = vmatprep.subr.bf16.mxu1 %v4440_v35 }
0x153e   :  { %1554 = vmatmul.mubr.f32.vlgmr.msra.gmra.mrb[18].mxu1 %v4064_v0 }
0x153f   :  { %3603 = vmatpush1.bf16.msra.mxu1 %v4442_v39  ;;  %1686 = vmatprep.mubr.f32.mxu1 %v4064_v0 }
0x1540   :  { %3605 = vmatprep.subr.bf16.mxu1 %v4446_v26 }
0x1541   :  { %v3932_v14 = vpop.eup %3931 }
0x1542   :  { %v3934_v15 = vpop.eup %3933  ;;  %1245 = vrot.lane.b32.xlu1 %v3932_v14, %s4065_s8 }
0x1543   :  { %1267 = vrot.lane.b32.xlu0 %v3934_v15, %s4065_s8  ;;  %3607 = vmatpush1.bf16.msra.mxu1 %v4448_v60 }
0x1544   :  { %3609 = vmatprep.subr.bf16.mxu1 %v4451_v3 }
0x1547   :  { %3611 = vmatpush1.bf16.msra.mxu1 %v4454_v17 }
0x1548   :  { %3613 = vmatprep.subr.bf16.mxu1 %v4461_v23 }
0x154b   :  { %3615 = vmatpush1.bf16.msra.mxu1 %v4463_v24 }
0x154c   :  { %3633 = vmatprep.subr.bf16.mxu1 %v4440_v35 }
0x15b4   :  { %v1246_v30 = vpop.permute.xlu1 %1245 }
0x15b5   :  { %v1248_v31 = vmul.f32 %v1246_v30, %v4430_v53  ;;  %v1268_v42 = vpop.permute.xlu0 %1267  ;;  %v1276_v53 = vsel %vm363_vm1, %v4279_v32, %v4417_v57  ;;  %v1278_v32 = vsel %vm363_vm1, %v4338_v9, %v4368_v6  ;;  %v1280_v9 = vsel %vm363_vm1, %v4394_v43, %v4311_v10  ;;  %v1304_v43 = vld [vmem:[#allocation3 + $0x1a1] ss:$8 sm:$0x3] }
0x15b6   :  { %v1270_v36 = vmul.f32 %v1268_v42, %v4432_v5  ;;  %v1281_v6 = vsel %vm363_vm1, %v4415_v37, %v4281_v33  ;;  %v1309_v57 = vrot.slane %v1304_v43, %v45_v44  ;;  %v1313_v33 = vrot.slane %v1304_v43, %v49_v48 }
0x15b7   :  { %1283 = vrot.lane.b32.xlu1 %v1248_v31, %s4066_s9 }
0x15b8   :  { %1272 = vrot.lane.b32.xlu0 %v1270_v36, %s4065_s8 }
0x1611   :  { %v1555_v10 = vpop.f32.mrb[18].mxu1 }
0x162a   :  { %v1273_v25 = vpop.permute.xlu0 %1272 }
0x162b   :  { %v1275_v45 = vsel %vm363_vm1, %v4226_v28, %v1273_v25  ;;  %v1277_v28 = vsel %vm363_vm1, %v4309_v8, %v4396_v62  ;;  %v1279_v8 = vsel %vm363_vm1, %v4366_v4, %v4340_v13  ;;  %v1284_v62 = vpop.permute.xlu1 %1283  ;;  %v1557_v4 = vpop.f32.mrb[19].mxu1 }
0x162c   :  { %3178 = vmatmul.mubr.msk.f32.vlgmr.msra.gmra.mrb[14].mxu0 %vm228_vm2, %v1275_v45  ;;  %v1286_v13 = vsel %vm363_vm1, %v1284_v62, %v4228_v29 }
0x162d   :  { %1410 = vmatprep.mubr.f32.mxu0 %v4064_v0  ;;  %3619 = vmatpush1.bf16.msra.mxu0 %v4442_v39 }
0x162e   :  { %3621 = vmatprep.subr.bf16.mxu0 %v4446_v26 }
0x1630   :  { %3179 = vmatmul.mubr.msk.f32.gmra.mrb[16].mxu0 %vm228_vm2, %v1276_v53 }
0x1631   :  { %1416 = vmatprep.mubr.f32.mxu0 %v4064_v0  ;;  %3623 = vmatpush1.bf16.msra.mxu0 %v4448_v60 }
0x1632   :  { %3625 = vmatprep.subr.bf16.mxu0 %v4451_v3 }
0x1634   :  { %3180 = vmatmul.mubr.msk.f32.gmra.mrb[18].mxu0 %vm228_vm2, %v1277_v28 }
0x1635   :  { %1422 = vmatprep.mubr.f32.mxu0 %v4064_v0  ;;  %3627 = vmatpush1.bf16.msra.mxu0 %v4454_v17 }
0x1636   :  { %3629 = vmatprep.subr.bf16.mxu0 %v4461_v23 }
0x1638   :  { %3181 = vmatmul.mubr.msk.f32.gmra.mrb[20].mxu0 %vm228_vm2, %v1278_v32 }
0x1639   :  { %1428 = vmatprep.mubr.f32.mxu0 %v4064_v0  ;;  %3631 = vmatpush1.bf16.msra.mxu0 %v4463_v24 }
0x163a   :  { %3649 = vmatprep.subr.bf16.mxu0 %v4440_v35 }
0x163c   :  { %3182 = vmatmul.mubr.msk.f32.gmra.mrb[22].mxu0 %vm228_vm2, %v1279_v8 }
0x163d   :  { %1434 = vmatprep.mubr.f32.mxu0 %v4064_v0 }
0x1640   :  { %3183 = vmatmul.mubr.msk.f32.gmra.mrb[24].mxu0 %vm228_vm2, %v1280_v9 }
0x1641   :  { %1440 = vmatprep.mubr.f32.mxu0 %v4064_v0 }
0x1644   :  { %3184 = vmatmul.mubr.msk.f32.gmra.mrb[26].mxu0 %vm228_vm2, %v1281_v6 }
0x1645   :  { %1446 = vmatprep.mubr.f32.mxu0 %v4064_v0 }
0x1648   :  { %3185 = vmatmul.mubr.msk.f32.gmra.mrb[28].mxu0 %vm228_vm2, %v1286_v13 }
0x1649   :  { %1819 = vmatprep.mubr.f32.mxu0 %v4064_v0 }
0x16ff   :  { %v1406_v37 = vpop.f32.mrb[14].mxu0 }
0x1700   :  { %v1407_v5 = vadd.f32 %v1406_v37, %v1309_v57  ;;  %v1408_v51 = vpop.f32.mrb[15].mxu0 }
0x1701   :  { %v4532_v52 = vadd.f32 %v1408_v51, %v1313_v33 }
0x1702   :  { %v1560_v54 = vadd.f32 %v1555_v10, %v1407_v5 }
0x1703   :  { %v1412_v29 = vpop.f32.mrb[16].mxu0 }
0x1704   :  { %3935 = vtanh.f32 %v1560_v54  ;;  %v4534_v55 = vadd.f32 %v1412_v29, %v1309_v57  ;;  %v1414_v56 = vpop.f32.mrb[17].mxu0  ;;  %v1562_v30 = vmul.f32 0.5, %v1560_v54 }
0x1705   :  { %v4536_v11 = vadd.f32 %v1414_v56, %v1313_v33 }
0x1707   :  { %v1418_v27 = vpop.f32.mrb[18].mxu0 }
0x1708   :  { %v4538_v58 = vadd.f32 %v1418_v27, %v1309_v57  ;;  %v1420_v44 = vpop.f32.mrb[19].mxu0 }
0x1709   :  { %v4540_v59 = vadd.f32 %v1420_v44, %v1313_v33 }
0x170b   :  { %v1424_v40 = vpop.f32.mrb[20].mxu0 }
0x170c   :  { %v4542_v48 = vadd.f32 %v1424_v40, %v1309_v57  ;;  %v1426_v38 = vpop.f32.mrb[21].mxu0 }
0x170d   :  { %v4544_v61 = vadd.f32 %v1426_v38, %v1313_v33 }
0x170e   :  { %v3936_v47 = vpop.eup %3935 }
0x170f   :  { %v1430_v63 = vpop.f32.mrb[22].mxu0  ;;  %1569 = vrot.lane.b32.xlu0 %v3936_v47, %s4065_s8 }
0x1710   :  { %v4547_v1 = vadd.f32 %v1430_v63, %v1309_v57  ;;  %v1432_v49 = vpop.f32.mrb[23].mxu0 }
0x1711   :  { %v4549_v50 = vadd.f32 %v1432_v49, %v1313_v33 }
0x1713   :  { %v1436_v2 = vpop.f32.mrb[24].mxu0 }
0x1714   :  { %v4551_v41 = vadd.f32 %v1436_v2, %v1309_v57  ;;  %v1438_v7 = vpop.f32.mrb[25].mxu0 }
0x1715   :  { %v4553_v12 = vadd.f32 %v1438_v7, %v1313_v33 }
0x1717   :  { %v1442_v14 = vpop.f32.mrb[26].mxu0 }
0x1718   :  { %v4555_v18 = vadd.f32 %v1442_v14, %v1309_v57  ;;  %v1444_v19 = vpop.f32.mrb[27].mxu0 }
0x1719   :  { %v1445_v46 = vadd.f32 %v1444_v19, %v1313_v33 }
0x171b   :  { %v1448_v15 = vpop.f32.mrb[28].mxu0 }
0x171c   :  { %v4557_v20 = vadd.f32 %v1448_v15, %v1309_v57  ;;  %v1450_v34 = vpop.f32.mrb[29].mxu0 }
0x171d   :  { %v1451_v21 = vadd.f32 %v1450_v34, %v1313_v33 }
0x171f   :  { %v1561_v16 = vadd.f32 %v1557_v4, %v1451_v21 }
0x1721   :  { %3937 = vtanh.f32 %v1561_v16  ;;  %v1584_v53 = vmul.f32 0.5, %v1561_v16 }
0x1722   :  { %3939 = vtanh.f32 %v1562_v30 }
0x1723   :  { %3941 = vtanh.f32 %v1584_v53 }
0x172b   :  { %v3938_v22 = vpop.eup %3937 }
0x172c   :  { %1591 = vrot.lane.b32.xlu1 %v3938_v22, %s4065_s8  ;;  %v3940_v31 = vpop.eup %3939 }
0x172d   :  { %v1564_v42 = vadd.f32 1.0, %v3940_v31  ;;  %v3942_v28 = vpop.eup %3941 }
0x172e   :  { %v1586_v32 = vadd.f32 1.0, %v3942_v28 }
0x172f   :  { %v1565_v36 = vmul.f32 0.5, %v1564_v42 }
0x1730   :  { %v1587_v8 = vmul.f32 0.5, %v1586_v32 }
0x1731   :  { %v1567_v62 = vmul.f32 0.0, %v1565_v36 }
0x1732   :  { %v1589_v43 = vmul.f32 0.0, %v1587_v8 }
0x1781   :  { %v1570_v25 = vpop.permute.xlu0 %1569 }
0x1782   :  { %v1572_v45 = vmul.f32 %v1570_v25, %v1565_v36 }
0x1784   :  { %1574 = vrot.lane.b32.xlu0 %v1572_v45, %s4066_s9 }
0x179e   :  { %v1592_v9 = vpop.permute.xlu1 %1591 }
0x179f   :  { %v1594_v6 = vmul.f32 %v1592_v9, %v1587_v8 }
0x17a1   :  { %1596 = vrot.lane.b32.xlu1 %v1594_v6, %s4066_s9 }
0x17f6   :  { %v1575_v13 = vpop.permute.xlu0 %1574 }
0x17f7   :  { %v1577_v10 = vadd.f32 %v1575_v13, %v1567_v62 }
0x17f9   :  { %3943 = vtanh.f32 %v1577_v10 }
0x1803   :  { %v3944_v4 = vpop.eup %3943 }
0x1804   :  { %1580 = vrot.lane.b32.xlu0 %v3944_v4, %s4065_s8 }
0x1813   :  { %v1597_v57 = vpop.permute.xlu1 %1596 }
0x1814   :  { %v1599_v33 = vadd.f32 %v1597_v57, %v1589_v43 }
0x1816   :  { %3945 = vtanh.f32 %v1599_v33 }
0x1820   :  { %v3946_v37 = vpop.eup %3945 }
0x1821   :  { %1602 = vrot.lane.b32.xlu1 %v3946_v37, %s4065_s8 }
0x1876   :  { %v1581_v5 = vpop.permute.xlu0 %1580 }
0x1877   :  { %v1583_v51 = vmul.f32 %v1581_v5, %v1565_v36 }
0x1879   :  { %1611 = vrot.lane.b32.xlu0 %v1583_v51, %s4066_s9 }
0x1893   :  { %v1603_v54 = vpop.permute.xlu1 %1602 }
0x1894   :  { %v1605_v29 = vmul.f32 %v1603_v54, %v1587_v8 }
0x1896   :  { %1615 = vrot.lane.b32.xlu1 %v1605_v29, %s4065_s8 }
0x18eb   :  { %v4566_v56 = vpop.permute.xlu0 %1611 }
0x1908   :  { %v4568_v27 = vpop.permute.xlu1 %1615 }
0x1909   :  { %v1618_v44 = vsel %vm363_vm1, %v4566_v56, %v4568_v27 }
0x190a   :  { %3186 = vmatmul.mubr.msk.f32.vlgmr.msra.gmra.mrb[20].mxu1 %vm228_vm2, %v1618_v44 }
0x190b   :  { %3635 = vmatpush1.bf16.msra.mxu1 %v4442_v39  ;;  %1952 = vmatprep.mubr.f32.mxu1 %v4064_v0 }
0x190c   :  { %3637 = vmatprep.subr.bf16.mxu1 %v4446_v26 }
0x190f   :  { %3639 = vmatpush1.bf16.msra.mxu1 %v4448_v60 }
0x1910   :  { %3641 = vmatprep.subr.bf16.mxu1 %v4451_v3 }
0x1913   :  { %3643 = vmatpush1.bf16.msra.mxu1 %v4454_v17 }
0x1914   :  { %3645 = vmatprep.subr.bf16.mxu1 %v4461_v23 }
0x1917   :  { %3647 = vmatpush1.bf16.msra.mxu1 %v4463_v24 }
0x1918   :  { %3665 = vmatprep.subr.bf16.mxu1 %v4440_v35 }
0x19dd   :  { %v1688_v40 = vpop.f32.mrb[20].mxu1 }
0x19de   :  { %v1693_v38 = vadd.f32 %v1688_v40, %v4534_v55  ;;  %v1690_v47 = vpop.f32.mrb[21].mxu1 }
0x19df   :  { %v1694_v63 = vadd.f32 %v1690_v47, %v1445_v46 }
0x19e0   :  { %3947 = vtanh.f32 %v1693_v38  ;;  %v1695_v7 = vmul.f32 0.5, %v1693_v38 }
0x19e1   :  { %3949 = vtanh.f32 %v1694_v63  ;;  %v1717_v14 = vmul.f32 0.5, %v1694_v63 }
0x19e2   :  { %3951 = vtanh.f32 %v1695_v7 }
0x19e3   :  { %3953 = vtanh.f32 %v1717_v14 }
0x19ea   :  { %v3948_v49 = vpop.eup %3947 }
0x19eb   :  { %v3950_v2 = vpop.eup %3949  ;;  %1702 = vrot.lane.b32.xlu0 %v3948_v49, %s4065_s8 }
0x19ec   :  { %1724 = vrot.lane.b32.xlu1 %v3950_v2, %s4065_s8  ;;  %v3952_v19 = vpop.eup %3951 }
0x19ed   :  { %v3954_v15 = vpop.eup %3953  ;;  %v1697_v34 = vadd.f32 1.0, %v3952_v19 }
0x19ee   :  { %v1719_v21 = vadd.f32 1.0, %v3954_v15 }
0x19ef   :  { %v1698_v16 = vmul.f32 0.5, %v1697_v34 }
0x19f0   :  { %v1720_v22 = vmul.f32 0.5, %v1719_v21 }
0x19f1   :  { %v1700_v42 = vmul.f32 %v1698_v16, %v1577_v10 }
0x19f2   :  { %v1722_v25 = vmul.f32 %v1720_v22, %v1599_v33 }
0x1a5d   :  { %v1703_v55 = vpop.permute.xlu0 %1702 }
0x1a5e   :  { %v1705_v46 = vmul.f32 %v1703_v55, %v1698_v16  ;;  %v1725_v30 = vpop.permute.xlu1 %1724 }
0x1a5f   :  { %v1727_v31 = vmul.f32 %v1725_v30, %v1720_v22 }
0x1a60   :  { %1707 = vrot.lane.b32.xlu0 %v1705_v46, %s4066_s9 }
0x1a61   :  { %1729 = vrot.lane.b32.xlu1 %v1727_v31, %s4066_s9 }
0x1ad2   :  { %v1708_v36 = vpop.permute.xlu0 %1707 }
0x1ad3   :  { %v1710_v45 = vadd.f32 %v1708_v36, %v1700_v42  ;;  %v1730_v53 = vpop.permute.xlu1 %1729 }
0x1ad4   :  { %v1732_v28 = vadd.f32 %v1730_v53, %v1722_v25 }
0x1ad5   :  { %3955 = vtanh.f32 %v1710_v45 }
0x1ad6   :  { %3957 = vtanh.f32 %v1732_v28 }
0x1adf   :  { %v3956_v32 = vpop.eup %3955 }
0x1ae0   :  { %v3958_v8 = vpop.eup %3957  ;;  %1713 = vrot.lane.b32.xlu0 %v3956_v32, %s4065_s8 }
0x1ae1   :  { %1735 = vrot.lane.b32.xlu1 %v3958_v8, %s4065_s8 }
0x1b52   :  { %v1714_v9 = vpop.permute.xlu0 %1713 }
0x1b53   :  { %v1716_v6 = vmul.f32 %v1714_v9, %v1698_v16  ;;  %v1736_v62 = vpop.permute.xlu1 %1735 }
0x1b54   :  { %v1738_v13 = vmul.f32 %v1736_v62, %v1720_v22 }
0x1b55   :  { %1744 = vrot.lane.b32.xlu0 %v1716_v6, %s4066_s9 }
0x1b56   :  { %1748 = vrot.lane.b32.xlu1 %v1738_v13, %s4065_s8 }
0x1bc7   :  { %v4592_v10 = vpop.permute.xlu0 %1744 }
0x1bc8   :  { %v4594_v4 = vpop.permute.xlu1 %1748 }
0x1bc9   :  { %v1751_v43 = vsel %vm363_vm1, %v4592_v10, %v4594_v4 }
0x1bca   :  { %3187 = vmatmul.mubr.msk.f32.vlgmr.msra.gmra.mrb[30].mxu0 %vm228_vm2, %v1751_v43 }
0x1bcb   :  { %3651 = vmatpush1.bf16.msra.mxu0 %v4442_v39  ;;  %2081 = vmatprep.mubr.f32.mxu0 %v4064_v0 }
0x1bcc   :  { %3653 = vmatprep.subr.bf16.mxu0 %v4446_v26 }
0x1bcf   :  { %3655 = vmatpush1.bf16.msra.mxu0 %v4448_v60 }
0x1bd0   :  { %3657 = vmatprep.subr.bf16.mxu0 %v4451_v3 }
0x1bd3   :  { %3659 = vmatpush1.bf16.msra.mxu0 %v4454_v17 }
0x1bd4   :  { %3661 = vmatprep.subr.bf16.mxu0 %v4461_v23 }
0x1bd7   :  { %3663 = vmatpush1.bf16.msra.mxu0 %v4463_v24 }
0x1bd8   :  { %3681 = vmatprep.subr.bf16.mxu0 %v4440_v35 }
0x1c9d   :  { %v1821_v57 = vpop.f32.mrb[30].mxu0 }
0x1c9e   :  { %v1826_v33 = vadd.f32 %v1821_v57, %v4538_v58  ;;  %v1823_v37 = vpop.f32.mrb[31].mxu0 }
0x1c9f   :  { %v1827_v5 = vadd.f32 %v1823_v37, %v4553_v12 }
0x1ca0   :  { %3959 = vtanh.f32 %v1826_v33  ;;  %v1828_v29 = vmul.f32 0.5, %v1826_v33 }
0x1ca1   :  { %3961 = vtanh.f32 %v1827_v5  ;;  %v1850_v44 = vmul.f32 0.5, %v1827_v5 }
0x1ca2   :  { %3963 = vtanh.f32 %v1828_v29 }
0x1ca3   :  { %3965 = vtanh.f32 %v1850_v44 }
0x1caa   :  { %v3960_v51 = vpop.eup %3959 }
0x1cab   :  { %v3962_v54 = vpop.eup %3961  ;;  %1835 = vrot.lane.b32.xlu0 %v3960_v51, %s4065_s8 }
0x1cac   :  { %1857 = vrot.lane.b32.xlu1 %v3962_v54, %s4065_s8  ;;  %v3964_v40 = vpop.eup %3963 }
0x1cad   :  { %v3966_v38 = vpop.eup %3965  ;;  %v1830_v47 = vadd.f32 1.0, %v3964_v40 }
0x1cae   :  { %v1852_v63 = vadd.f32 1.0, %v3966_v38 }
0x1caf   :  { %v1831_v58 = vmul.f32 0.5, %v1830_v47 }
0x1cb0   :  { %v1853_v2 = vmul.f32 0.5, %v1852_v63 }
0x1cb1   :  { %v1833_v19 = vmul.f32 %v1831_v58, %v1710_v45 }
0x1cb2   :  { %v1855_v34 = vmul.f32 %v1853_v2, %v1732_v28 }
0x1d1d   :  { %v1836_v49 = vpop.permute.xlu0 %1835 }
0x1d1e   :  { %v1838_v12 = vmul.f32 %v1836_v49, %v1831_v58  ;;  %v1858_v7 = vpop.permute.xlu1 %1857 }
0x1d1f   :  { %v1860_v14 = vmul.f32 %v1858_v7, %v1853_v2 }
0x1d20   :  { %1840 = vrot.lane.b32.xlu0 %v1838_v12, %s4066_s9 }
0x1d21   :  { %1862 = vrot.lane.b32.xlu1 %v1860_v14, %s4066_s9 }
0x1d92   :  { %v1841_v15 = vpop.permute.xlu0 %1840 }
0x1d93   :  { %v1843_v21 = vadd.f32 %v1841_v15, %v1833_v19  ;;  %v1863_v16 = vpop.permute.xlu1 %1862 }
0x1d94   :  { %v1865_v55 = vadd.f32 %v1863_v16, %v1855_v34 }
0x1d95   :  { %3967 = vtanh.f32 %v1843_v21 }
0x1d96   :  { %3969 = vtanh.f32 %v1865_v55 }
0x1d9f   :  { %v3968_v22 = vpop.eup %3967 }
0x1da0   :  { %v3970_v46 = vpop.eup %3969  ;;  %1846 = vrot.lane.b32.xlu0 %v3968_v22, %s4065_s8 }
0x1da1   :  { %1868 = vrot.lane.b32.xlu1 %v3970_v46, %s4065_s8 }
0x1e12   :  { %v1847_v30 = vpop.permute.xlu0 %1846 }
0x1e13   :  { %v1849_v31 = vmul.f32 %v1847_v30, %v1831_v58  ;;  %v1869_v42 = vpop.permute.xlu1 %1868 }
0x1e14   :  { %v1871_v36 = vmul.f32 %v1869_v42, %v1853_v2 }
0x1e15   :  { %1877 = vrot.lane.b32.xlu0 %v1849_v31, %s4066_s9 }
0x1e16   :  { %1881 = vrot.lane.b32.xlu1 %v1871_v36, %s4065_s8 }
0x1e87   :  { %v4619_v25 = vpop.permute.xlu0 %1877 }
0x1e88   :  { %v4621_v45 = vpop.permute.xlu1 %1881 }
0x1e89   :  { %v1884_v53 = vsel %vm363_vm1, %v4619_v25, %v4621_v45 }
0x1e8a   :  { %3188 = vmatmul.mubr.msk.f32.vlgmr.msra.gmra.mrb[22].mxu1 %vm228_vm2, %v1884_v53 }
0x1e8b   :  { %3667 = vmatpush1.bf16.msra.mxu1 %v4442_v39  ;;  %2210 = vmatprep.mubr.f32.mxu1 %v4064_v0 }
0x1e8c   :  { %3669 = vmatprep.subr.bf16.mxu1 %v4446_v26 }
0x1e8f   :  { %3671 = vmatpush1.bf16.msra.mxu1 %v4448_v60 }
0x1e90   :  { %3673 = vmatprep.subr.bf16.mxu1 %v4451_v3 }
0x1e93   :  { %3675 = vmatpush1.bf16.msra.mxu1 %v4454_v17 }
0x1e94   :  { %3677 = vmatprep.subr.bf16.mxu1 %v4461_v23 }
0x1e97   :  { %3679 = vmatpush1.bf16.msra.mxu1 %v4463_v24 }
0x1e98   :  { %3697 = vmatprep.subr.bf16.mxu1 %v4440_v35 }
0x1f5d   :  { %v1954_v28 = vpop.f32.mrb[22].mxu1 }
0x1f5e   :  { %v1959_v32 = vadd.f32 %v1954_v28, %v4542_v48  ;;  %v1956_v8 = vpop.f32.mrb[23].mxu1 }
0x1f5f   :  { %v1960_v9 = vadd.f32 %v1956_v8, %v4549_v50 }
0x1f60   :  { %3971 = vtanh.f32 %v1959_v32  ;;  %v1961_v13 = vmul.f32 0.5, %v1959_v32 }
0x1f61   :  { %3973 = vtanh.f32 %v1960_v9  ;;  %v1983_v43 = vmul.f32 0.5, %v1960_v9 }
0x1f62   :  { %3975 = vtanh.f32 %v1961_v13 }
0x1f63   :  { %3977 = vtanh.f32 %v1983_v43 }
0x1f6a   :  { %v3972_v6 = vpop.eup %3971 }
0x1f6b   :  { %v3974_v62 = vpop.eup %3973  ;;  %1968 = vrot.lane.b32.xlu0 %v3972_v6, %s4065_s8 }
0x1f6c   :  { %1990 = vrot.lane.b32.xlu1 %v3974_v62, %s4065_s8  ;;  %v3976_v57 = vpop.eup %3975 }
0x1f6d   :  { %v3978_v35 = vpop.eup %3977  ;;  %v1963_v33 = vadd.f32 1.0, %v3976_v57 }
0x1f6e   :  { %v1985_v37 = vadd.f32 1.0, %v3978_v35 }
0x1f6f   :  { %v1964_v48 = vmul.f32 0.5, %v1963_v33 }
0x1f70   :  { %v1986_v51 = vmul.f32 0.5, %v1985_v37 }
0x1f71   :  { %v1966_v44 = vmul.f32 %v1964_v48, %v1843_v21 }
0x1f72   :  { %v1988_v38 = vmul.f32 %v1986_v51, %v1865_v55 }
0x1fdd   :  { %v1969_v5 = vpop.permute.xlu0 %1968 }
0x1fde   :  { %v1971_v50 = vmul.f32 %v1969_v5, %v1964_v48  ;;  %v1991_v54 = vpop.permute.xlu1 %1990 }
0x1fdf   :  { %v1993_v29 = vmul.f32 %v1991_v54, %v1986_v51 }
0x1fe0   :  { %1973 = vrot.lane.b32.xlu0 %v1971_v50, %s4066_s9 }
0x1fe1   :  { %1995 = vrot.lane.b32.xlu1 %v1993_v29, %s4066_s9 }
0x2052   :  { %v1974_v40 = vpop.permute.xlu0 %1973 }
0x2053   :  { %v1976_v47 = vadd.f32 %v1974_v40, %v1966_v44  ;;  %v1996_v63 = vpop.permute.xlu1 %1995 }
0x2054   :  { %v1998_v58 = vadd.f32 %v1996_v63, %v1988_v38 }
0x2055   :  { %3979 = vtanh.f32 %v1976_v47 }
0x2056   :  { %3981 = vtanh.f32 %v1998_v58 }
0x205f   :  { %v3980_v49 = vpop.eup %3979 }
0x2060   :  { %v3982_v2 = vpop.eup %3981  ;;  %1979 = vrot.lane.b32.xlu0 %v3980_v49, %s4065_s8 }
0x2061   :  { %2001 = vrot.lane.b32.xlu1 %v3982_v2, %s4065_s8 }
0x20d2   :  { %v1980_v12 = vpop.permute.xlu0 %1979 }
0x20d3   :  { %v1982_v7 = vmul.f32 %v1980_v12, %v1964_v48  ;;  %v2002_v14 = vpop.permute.xlu1 %2001 }
0x20d4   :  { %v2004_v19 = vmul.f32 %v2002_v14, %v1986_v51 }
0x20d5   :  { %2006 = vrot.lane.b32.xlu0 %v1982_v7, %s4066_s9 }
0x20d6   :  { %2010 = vrot.lane.b32.xlu1 %v2004_v19, %s4065_s8 }
0x2147   :  { %v4646_v15 = vpop.permute.xlu0 %2006 }
0x2148   :  { %v4648_v34 = vpop.permute.xlu1 %2010 }
0x2149   :  { %v2013_v21 = vsel %vm363_vm1, %v4646_v15, %v4648_v34 }
0x214a   :  { %3189 = vmatmul.mubr.msk.f32.vlgmr.msra.gmra.mrb[32].mxu0 %vm228_vm2, %v2013_v21 }
0x214b   :  { %3683 = vmatpush1.bf16.msra.mxu0 %v4442_v39  ;;  %2339 = vmatprep.mubr.f32.mxu0 %v4064_v0 }
0x214c   :  { %3685 = vmatprep.subr.bf16.mxu0 %v4446_v26 }
0x214f   :  { %3687 = vmatpush1.bf16.msra.mxu0 %v4448_v60 }
0x2150   :  { %3689 = vmatprep.subr.bf16.mxu0 %v4451_v3 }
0x2153   :  { %3691 = vmatpush1.bf16.msra.mxu0 %v4454_v17 }
0x2154   :  { %3693 = vmatprep.subr.bf16.mxu0 %v4461_v23 }
0x2157   :  { %3695 = vmatpush1.bf16.msra.mxu0 %v4463_v24 }
0x221d   :  { %v2083_v16 = vpop.f32.mrb[32].mxu0 }
0x221e   :  { %v2088_v55 = vadd.f32 %v2083_v16, %v4547_v1  ;;  %v2085_v22 = vpop.f32.mrb[33].mxu0 }
0x221f   :  { %v2089_v46 = vadd.f32 %v2085_v22, %v4544_v61 }
0x2220   :  { %3983 = vtanh.f32 %v2088_v55  ;;  %v2090_v42 = vmul.f32 0.5, %v2088_v55 }
0x2221   :  { %3985 = vtanh.f32 %v2089_v46  ;;  %v2112_v36 = vmul.f32 0.5, %v2089_v46 }
0x2222   :  { %3987 = vtanh.f32 %v2090_v42 }
0x2223   :  { %3989 = vtanh.f32 %v2112_v36 }
0x222a   :  { %v3984_v30 = vpop.eup %3983 }
0x222b   :  { %v3986_v31 = vpop.eup %3985  ;;  %2097 = vrot.lane.b32.xlu0 %v3984_v30, %s4065_s8 }
0x222c   :  { %2119 = vrot.lane.b32.xlu1 %v3986_v31, %s4065_s8  ;;  %v3988_v53 = vpop.eup %3987 }
0x222d   :  { %v3990_v28 = vpop.eup %3989  ;;  %v2092_v32 = vadd.f32 1.0, %v3988_v53 }
0x222e   :  { %v2114_v8 = vadd.f32 1.0, %v3990_v28 }
0x222f   :  { %v2093_v1 = vmul.f32 0.5, %v2092_v32 }
0x2230   :  { %v2115_v6 = vmul.f32 0.5, %v2114_v8 }
0x2231   :  { %v2095_v43 = vmul.f32 %v2093_v1, %v1976_v47 }
0x2232   :  { %v2117_v35 = vmul.f32 %v2115_v6, %v1998_v58 }
0x229d   :  { %v2098_v9 = vpop.permute.xlu0 %2097 }
0x229e   :  { %v2100_v61 = vmul.f32 %v2098_v9, %v2093_v1  ;;  %v2120_v62 = vpop.permute.xlu1 %2119 }
0x229f   :  { %v2122_v13 = vmul.f32 %v2120_v62, %v2115_v6 }
0x22a0   :  { %2102 = vrot.lane.b32.xlu0 %v2100_v61, %s4066_s9 }
0x22a1   :  { %2124 = vrot.lane.b32.xlu1 %v2122_v13, %s4066_s9 }
0x2312   :  { %v2103_v57 = vpop.permute.xlu0 %2102 }
0x2313   :  { %v2105_v33 = vadd.f32 %v2103_v57, %v2095_v43  ;;  %v2125_v37 = vpop.permute.xlu1 %2124 }
0x2314   :  { %v2127_v48 = vadd.f32 %v2125_v37, %v2117_v35 }
0x2315   :  { %3991 = vtanh.f32 %v2105_v33 }
0x2316   :  { %3993 = vtanh.f32 %v2127_v48 }
0x231f   :  { %v3992_v5 = vpop.eup %3991 }
0x2320   :  { %v3994_v51 = vpop.eup %3993  ;;  %2108 = vrot.lane.b32.xlu0 %v3992_v5, %s4065_s8 }
0x2321   :  { %2130 = vrot.lane.b32.xlu1 %v3994_v51, %s4065_s8 }
0x2392   :  { %v2109_v50 = vpop.permute.xlu0 %2108 }
0x2393   :  { %v2111_v54 = vmul.f32 %v2109_v50, %v2093_v1  ;;  %v2131_v29 = vpop.permute.xlu1 %2130 }
0x2394   :  { %v2133_v44 = vmul.f32 %v2131_v29, %v2115_v6 }
0x2395   :  { %2135 = vrot.lane.b32.xlu0 %v2111_v54, %s4066_s9 }
0x2396   :  { %2139 = vrot.lane.b32.xlu1 %v2133_v44, %s4065_s8 }
0x2407   :  { %v4672_v40 = vpop.permute.xlu0 %2135 }
0x2408   :  { %v4674_v38 = vpop.permute.xlu1 %2139 }
0x2409   :  { %v2142_v47 = vsel %vm363_vm1, %v4672_v40, %v4674_v38 }
0x240a   :  { %3190 = vmatmul.mubr.msk.f32.vlgmr.msra.gmra.mrb[24].mxu1 %vm228_vm2, %v2142_v47 }
0x240b   :  { %3699 = vmatpush1.bf16.msra.mxu1 %v4442_v39  ;;  %2468 = vmatprep.mubr.f32.mxu1 %v4064_v0 }
0x240c   :  { %3701 = vmatprep.subr.bf16.mxu1 %v4446_v26 }
0x240f   :  { %3703 = vmatpush1.bf16.msra.mxu1 %v4448_v60 }
0x2410   :  { %3705 = vmatprep.subr.bf16.mxu1 %v4451_v3 }
0x2413   :  { %3707 = vmatpush1.bf16.msra.mxu1 %v4454_v17 }
0x2414   :  { %3709 = vmatprep.subr.bf16.mxu1 %v4461_v23 }
0x2417   :  { %3711 = vmatpush1.bf16.msra.mxu1 %v4463_v24 }
0x24dd   :  { %v2212_v63 = vpop.f32.mrb[24].mxu1 }
0x24de   :  { %v2217_v58 = vadd.f32 %v2212_v63, %v4551_v41  ;;  %v2214_v49 = vpop.f32.mrb[25].mxu1 }
0x24df   :  { %v2218_v39 = vadd.f32 %v2214_v49, %v4540_v59 }
0x24e0   :  { %3995 = vtanh.f32 %v2217_v58  ;;  %v2219_v60 = vmul.f32 0.5, %v2217_v58 }
0x24e1   :  { %3997 = vtanh.f32 %v2218_v39  ;;  %v2241_v3 = vmul.f32 0.5, %v2218_v39 }
0x24e2   :  { %3999 = vtanh.f32 %v2219_v60 }
0x24e3   :  { %4001 = vtanh.f32 %v2241_v3 }
0x24ea   :  { %v3996_v2 = vpop.eup %3995 }
0x24eb   :  { %v3998_v26 = vpop.eup %3997  ;;  %2226 = vrot.lane.b32.xlu0 %v3996_v2, %s4065_s8 }
0x24ec   :  { %2248 = vrot.lane.b32.xlu1 %v3998_v26, %s4065_s8  ;;  %v4000_v17 = vpop.eup %3999 }
0x24ed   :  { %v4002_v23 = vpop.eup %4001  ;;  %v2221_v24 = vadd.f32 1.0, %v4000_v17 }
0x24ee   :  { %v2243_v12 = vadd.f32 1.0, %v4002_v23 }
0x24ef   :  { %v2222_v41 = vmul.f32 0.5, %v2221_v24 }
0x24f0   :  { %v2244_v14 = vmul.f32 0.5, %v2243_v12 }
0x24f1   :  { %v2224_v16 = vmul.f32 %v2222_v41, %v2105_v33 }
0x24f2   :  { %v2246_v22 = vmul.f32 %v2244_v14, %v2127_v48 }
0x255d   :  { %v2227_v7 = vpop.permute.xlu0 %2226 }
0x255e   :  { %v2229_v59 = vmul.f32 %v2227_v7, %v2222_v41  ;;  %v2249_v19 = vpop.permute.xlu1 %2248 }
0x255f   :  { %v2251_v21 = vmul.f32 %v2249_v19, %v2244_v14 }
0x2560   :  { %2231 = vrot.lane.b32.xlu0 %v2229_v59, %s4066_s9 }
0x2561   :  { %2253 = vrot.lane.b32.xlu1 %v2251_v21, %s4066_s9 }
0x25d2   :  { %v2232_v55 = vpop.permute.xlu0 %2231 }
0x25d3   :  { %v2234_v46 = vadd.f32 %v2232_v55, %v2224_v16  ;;  %v2254_v30 = vpop.permute.xlu1 %2253 }
0x25d4   :  { %v2256_v31 = vadd.f32 %v2254_v30, %v2246_v22 }
0x25d5   :  { %4003 = vtanh.f32 %v2234_v46 }
0x25d6   :  { %4005 = vtanh.f32 %v2256_v31 }
0x25df   :  { %v4004_v42 = vpop.eup %4003 }
0x25e0   :  { %v4006_v36 = vpop.eup %4005  ;;  %2237 = vrot.lane.b32.xlu0 %v4004_v42, %s4065_s8 }
0x25e1   :  { %2259 = vrot.lane.b32.xlu1 %v4006_v36, %s4065_s8 }
0x2652   :  { %v2238_v53 = vpop.permute.xlu0 %2237 }
0x2653   :  { %v2240_v28 = vmul.f32 %v2238_v53, %v2222_v41  ;;  %v2260_v32 = vpop.permute.xlu1 %2259 }
0x2654   :  { %v2262_v8 = vmul.f32 %v2260_v32, %v2244_v14 }
0x2655   :  { %2264 = vrot.lane.b32.xlu0 %v2240_v28, %s4066_s9 }
0x2656   :  { %2268 = vrot.lane.b32.xlu1 %v2262_v8, %s4065_s8 }
0x26c7   :  { %v4698_v1 = vpop.permute.xlu0 %2264 }
0x26c8   :  { %v4700_v9 = vpop.permute.xlu1 %2268 }
0x26c9   :  { %v2271_v6 = vsel %vm363_vm1, %v4698_v1, %v4700_v9 }
0x26ca   :  { %3191 = vmatmul.mubr.msk.f32.vlgmr.msra.gmra.mrb[34].mxu0 %vm228_vm2, %v2271_v6 }
0x279d   :  { %v2341_v61 = vpop.f32.mrb[34].mxu0 }
0x279e   :  { %v2346_v62 = vadd.f32 %v2341_v61, %v4555_v18  ;;  %v2343_v13 = vpop.f32.mrb[35].mxu0 }
0x279f   :  { %v2347_v43 = vadd.f32 %v2343_v13, %v4536_v11 }
0x27a0   :  { %4007 = vtanh.f32 %v2346_v62  ;;  %v2348_v33 = vmul.f32 0.5, %v2346_v62 }
0x27a1   :  { %4009 = vtanh.f32 %v2347_v43  ;;  %v2370_v37 = vmul.f32 0.5, %v2347_v43 }
0x27a2   :  { %4011 = vtanh.f32 %v2348_v33  ;;  %v2543_v33 = vld [vmem:[%s5048_s2] sm:$0xff] }
0x27a3   :  { %4013 = vtanh.f32 %v2370_v37  ;;  %v2544_v37 = vld [vmem:[%s5048_s2 + $0x8] sm:$0xff] }
0x27aa   :  { %v4008_v57 = vpop.eup %4007 }
0x27ab   :  { %v4010_v35 = vpop.eup %4009  ;;  %2355 = vrot.lane.b32.xlu0 %v4008_v57, %s4065_s8 }
0x27ac   :  { %2377 = vrot.lane.b32.xlu1 %v4010_v35, %s4065_s8  ;;  %v4012_v48 = vpop.eup %4011 }
0x27ad   :  { %v4014_v5 = vpop.eup %4013  ;;  %v2350_v51 = vadd.f32 1.0, %v4012_v48  ;;  %v2545_v48 = vld [vmem:[%s5048_s2 + $0x10] sm:$0xff] }
0x27ae   :  { %v2372_v50 = vadd.f32 1.0, %v4014_v5  ;;  %v3712_v5 = vpack.c.bf16 %v2544_v37, %v2543_v33 }
0x27af   :  { %v2351_v18 = vmul.f32 0.5, %v2350_v51  ;;  %v2546_v51 = vld [vmem:[%s5048_s2 + $0x18] sm:$0xff] }
0x27b0   :  { %v2373_v29 = vmul.f32 0.5, %v2372_v50  ;;  %v3716_v50 = vpack.c.bf16 %v2546_v51, %v2545_v48  ;;  %3713 = vmatprep.subr.bf16.mxu0 %v3712_v5 }
0x27b1   :  { %v2353_v63 = vmul.f32 %v2351_v18, %v2234_v46  ;;  %3715 = vmatpush3.bf16.msra.mxu0 %v3712_v5 }
0x27b2   :  { %v2375_v49 = vmul.f32 %v2373_v29, %v2256_v31  ;;  %3717 = vmatprep.subr.bf16.mxu0 %v3716_v50 }
0x27b5   :  { %3719 = vmatpush3.bf16.msra.mxu0 %v3716_v50 }
0x281d   :  { %v2356_v54 = vpop.permute.xlu0 %2355 }
0x281e   :  { %v2358_v11 = vmul.f32 %v2356_v54, %v2351_v18  ;;  %v2378_v44 = vpop.permute.xlu1 %2377  ;;  %v2548_v54 = vld [vmem:[%s5048_s2 + $0x28] sm:$0xff] }
0x281f   :  { %v2380_v47 = vmul.f32 %v2378_v44, %v2373_v29  ;;  %v2550_v44 = vld [vmem:[%s5048_s2 + $0x38] sm:$0xff] }
0x2820   :  { %2360 = vrot.lane.b32.xlu0 %v2358_v11, %s4066_s9  ;;  %v2549_v11 = vld [vmem:[%s5048_s2 + $0x30] sm:$0xff] }
0x2821   :  { %2382 = vrot.lane.b32.xlu1 %v2380_v47, %s4066_s9 }
0x2892   :  { %v2361_v58 = vpop.permute.xlu0 %2360 }
0x2893   :  { %v2363_v39 = vadd.f32 %v2361_v58, %v2353_v63  ;;  %v2383_v2 = vpop.permute.xlu1 %2382  ;;  %v3724_v63 = vpack.c.bf16 %v2550_v44, %v2549_v11 }
0x2894   :  { %v2385_v26 = vadd.f32 %v2383_v2, %v2375_v49 }
0x2895   :  { %4015 = vtanh.f32 %v2363_v39 }
0x2896   :  { %4017 = vtanh.f32 %v2385_v26 }
0x289f   :  { %v4016_v60 = vpop.eup %4015 }
0x28a0   :  { %v4018_v3 = vpop.eup %4017  ;;  %2366 = vrot.lane.b32.xlu0 %v4016_v60, %s4065_s8 }
0x28a1   :  { %2388 = vrot.lane.b32.xlu1 %v4018_v3, %s4065_s8 }
0x2912   :  { %v2367_v17 = vpop.permute.xlu0 %2366 }
0x2913   :  { %v2369_v23 = vmul.f32 %v2367_v17, %v2351_v18  ;;  %v2389_v24 = vpop.permute.xlu1 %2388  ;;  %v2547_v18 = vld [vmem:[%s5048_s2 + $0x20] sm:$0xff] }
0x2914   :  { %v2391_v12 = vmul.f32 %v2389_v24, %v2373_v29  ;;  %v3720_v29 = vpack.c.bf16 %v2548_v54, %v2547_v18 }
0x2915   :  { %2393 = vrot.lane.b32.xlu0 %v2369_v23, %s4066_s9  ;;  %v4772_v23 = vsel %vm363_vm1, %v4619_v25, %v4700_v9  ;;  %v4795_v25 = vsel %vm363_vm1, %v4698_v1, %v4621_v45  ;;  %v3193_v45 = vld [vmem:[%s5048_s2 + $0x280] ss:$0 sm:$0xff]  ;;  %v3202_v9 = vld [vmem:[%s5048_s2 + $0x281] ss:$0 sm:$0xff] }
0x2916   :  { %2397 = vrot.lane.b32.xlu1 %v2391_v12, %s4065_s8  ;;  %3721 = vmatprep.subr.bf16.mxu0 %v3720_v29 }
0x2917   :  { %3723 = vmatpush3.bf16.msra.mxu0 %v3720_v29 }
0x2918   :  { %3725 = vmatprep.subr.bf16.mxu0 %v3724_v63 }
0x291b   :  { %3727 = vmatpush3.bf16.msra.mxu0 %v3724_v63 }
0x2987   :  { %v4716_v41 = vpop.permute.xlu0 %2393 }
0x2988   :  { %v4718_v7 = vpop.permute.xlu1 %2397 }
0x2989   :  { %v2400_v14 = vsel %vm363_vm1, %v4716_v41, %v4718_v7  ;;  %v4765_v17 = vsel %vm363_vm1, %v4592_v10, %v4718_v7  ;;  %v4786_v10 = vsel %vm363_vm1, %v4672_v40, %v4648_v34 }
0x298a   :  { %3192 = vmatmul.mubr.msk.f32.vlgmr.msra.gmra.mrb[26].mxu1 %vm228_vm2, %v2400_v14 }
0x298b   :  { %3328 = vmatprep.mubr.msk.f32.mxu1 %vm4076_vm11, %v4064_v0 }
0x2a5d   :  { %v2470_v59 = vpop.f32.mrb[26].mxu1 }
0x2a5e   :  { %v2475_v19 = vadd.f32 %v2470_v59, %v4557_v20  ;;  %v2472_v21 = vpop.f32.mrb[27].mxu1 }
0x2a5f   :  { %v2476_v16 = vadd.f32 %v2472_v21, %v4532_v52 }
0x2a60   :  { %4019 = vtanh.f32 %v2475_v19  ;;  %v2477_v46 = vmul.f32 0.5, %v2475_v19 }
0x2a61   :  { %4021 = vtanh.f32 %v2476_v16  ;;  %v2499_v30 = vmul.f32 0.5, %v2476_v16 }
0x2a62   :  { %4023 = vtanh.f32 %v2477_v46 }
0x2a63   :  { %4025 = vtanh.f32 %v2499_v30 }
0x2a6a   :  { %v4020_v55 = vpop.eup %4019 }
0x2a6b   :  { %v4022_v22 = vpop.eup %4021  ;;  %2484 = vrot.lane.b32.xlu1 %v4020_v55, %s4065_s8 }
0x2a6c   :  { %2506 = vrot.lane.b32.xlu0 %v4022_v22, %s4065_s8  ;;  %v4024_v31 = vpop.eup %4023 }
0x2a6d   :  { %v4026_v42 = vpop.eup %4025  ;;  %v2479_v36 = vadd.f32 1.0, %v4024_v31 }
0x2a6e   :  { %v2501_v53 = vadd.f32 1.0, %v4026_v42 }
0x2a6f   :  { %v2480_v20 = vmul.f32 0.5, %v2479_v36 }
0x2a70   :  { %v2502_v32 = vmul.f32 0.5, %v2501_v53 }
0x2a71   :  { %v2482_v61 = vmul.f32 %v2480_v20, %v2363_v39 }
0x2a72   :  { %v2504_v13 = vmul.f32 %v2502_v32, %v2385_v26 }
0x2add   :  { %v2485_v28 = vpop.permute.xlu1 %2484 }
0x2ade   :  { %v2487_v52 = vmul.f32 %v2485_v28, %v2480_v20  ;;  %v2507_v8 = vpop.permute.xlu0 %2506 }
0x2adf   :  { %v2509_v6 = vmul.f32 %v2507_v8, %v2502_v32 }
0x2ae0   :  { %2489 = vrot.lane.b32.xlu1 %v2487_v52, %s4066_s9 }
0x2ae1   :  { %2511 = vrot.lane.b32.xlu0 %v2509_v6, %s4066_s9 }
0x2b52   :  { %v2490_v62 = vpop.permute.xlu1 %2489 }
0x2b53   :  { %v2492_v43 = vadd.f32 %v2490_v62, %v2482_v61  ;;  %v2512_v57 = vpop.permute.xlu0 %2511 }
0x2b54   :  { %v2514_v35 = vadd.f32 %v2512_v57, %v2504_v13 }
0x2b55   :  { %4027 = vtanh.f32 %v2492_v43 }
0x2b56   :  { %4029 = vtanh.f32 %v2514_v35 }
0x2b5f   :  { %v4028_v47 = vpop.eup %4027 }
0x2b60   :  { %v4030_v58 = vpop.eup %4029  ;;  %2495 = vrot.lane.b32.xlu1 %v4028_v47, %s4065_s8 }
0x2b61   :  { %2517 = vrot.lane.b32.xlu0 %v4030_v58, %s4065_s8 }
0x2bd2   :  { %v2496_v49 = vpop.permute.xlu1 %2495 }
0x2bd3   :  { %v2498_v39 = vmul.f32 %v2496_v49, %v2480_v20  ;;  %v2518_v2 = vpop.permute.xlu0 %2517 }
0x2bd4   :  { %v2520_v26 = vmul.f32 %v2518_v2, %v2502_v32 }
0x2bd5   :  { %2533 = vrot.lane.b32.xlu1 %v2498_v39, %s4066_s9 }
0x2bd6   :  { %2522 = vrot.lane.b32.xlu0 %v2520_v26, %s4065_s8 }
0x2c48   :  { %v2523_v60 = vpop.permute.xlu0 %2522 }
0x2c49   :  { %v4760_v3 = vsel %vm363_vm1, %v4566_v56, %v2523_v60  ;;  %v4781_v56 = vsel %vm363_vm1, %v4646_v15, %v4674_v38  ;;  %v4800_v15 = vsel %vm363_vm1, %v4716_v41, %v4594_v4  ;;  %v2534_v38 = vpop.permute.xlu1 %2533 }
0x2c4a   :  { %3300 = vmatprep.mubr.msk.f32.mxu0 %vm228_vm2, %v4760_v3  ;;  %v4808_v34 = vsel %vm363_vm1, %v2534_v38, %v4568_v27 }
0x2c4b   :  { %3301 = vmatmul.mubr.msk.f32.vlgmr.msra.gmra.mrb[36].mxu0 %vm228_vm2, %v4765_v17 }
0x2c4c   :  { %3303 = vmatprep.mubr.msk.f32.mxu0 %vm228_vm2, %v4772_v23 }
0x2c4f   :  { %3304 = vmatmul.mubr.msk.f32.gmra.mrb[38].mxu0 %vm228_vm2, %v4781_v56 }
0x2c50   :  { %3306 = vmatprep.mubr.msk.f32.mxu0 %vm228_vm2, %v4786_v10 }
0x2c53   :  { %3307 = vmatmul.mubr.msk.f32.gmra.mrb[40].mxu0 %vm228_vm2, %v4795_v25 }
0x2c54   :  { %3309 = vmatprep.mubr.msk.f32.mxu0 %vm228_vm2, %v4800_v15 }
0x2c57   :  { %3310 = vmatmul.mubr.msk.f32.gmra.mrb[42].mxu0 %vm228_vm2, %v4808_v34 }
0x2c58   :  { %3363 = vmatprep.mubr.msk.f32.mxu0 %vm4076_vm11, %v4064_v0 }
0x2d1e   :  { %v3302_v4 = vpop.f32.mrb[36].mxu0 }
0x2d1f   :  { %v2651_v40 = vadd.f32 %v3302_v4, %v3193_v45  ;;  %v2645_v1 = vpop.f32.mrb[37].mxu0  ;;  %v4068_v4 = vmov 0  }
0x2d20   :  { %v2646_v24 = vadd.f32 %v3193_v45, %v2645_v1  ;;  %3830 = vset.pattern.permute.xlu1 %v4068_v4 }
0x2d21   :  { %v2685_v12 = vmax.f32 %v2651_v40, 0.0 }
0x2d22   :  { %v2684_v41 = vmax.f32 %v2646_v24, 0.0  ;;  %v3305_v7 = vpop.f32.mrb[38].mxu0  ;;  %v4069_v24 = vmov 2  }
0x2d23   :  { %v2699_v27 = vmul.f32 %v3202_v9, %v2685_v12  ;;  %v2661_v14 = vadd.f32 %v3305_v7, %v3193_v45  ;;  %v2655_v59 = vpop.f32.mrb[39].mxu0  ;;  %v4070_v12 = vmov 7   ;;  %v4072_v7 = vmov 4  }
0x2d24   :  { %v2696_v19 = vmul.f32 %v3202_v9, %v2684_v41  ;;  %v2656_v21 = vadd.f32 %v3193_v45, %v2655_v59  ;;  %v4071_v41 = vmov 3  }
0x2d25   :  { %v2687_v16 = vmax.f32 %v2661_v14, 0.0  ;;  %2700 = vadd.xlane.f32.xlu1 %v2699_v27  ;;  %v2795_v27 = vld [vmem:[%s5048_s2 + $0x80] sm:$0xff]  ;;  %v2796_v14 = vld [vmem:[%s5048_s2 + $0x88] sm:$0xff] }
0x2d26   :  { %v3308_v55 = vpop.f32.mrb[40].mxu0  ;;  %2697 = vadd.xlane.f32.xlu0 %v2696_v19  ;;  %v2686_v46 = vmax.f32 %v2656_v21, 0.0  ;;  %v3729_v59 = vpack.c.bf16 %v2796_v14, %v2795_v27  ;;  %v4073_v19 = vmov 0.0|0.0   ;;  %v4074_v21 = vmov 5   ;;  %v2974_v14 = vld [vmem:[%s5048_s2 + $0x190] sm:$0xff] }
0x2d27   :  { %v2705_v22 = vmul.f32 %v3202_v9, %v2687_v16  ;;  %v2665_v30 = vpop.f32.mrb[41].mxu0  ;;  %v2671_v31 = vadd.f32 %v3308_v55, %v3193_v45  ;;  %3728 = vmatprep.subr.bf16.mxu1 %v4073_v19  ;;  %3740 = vmatprep.subr.bf16.mxu0 %v4073_v19  ;;  %v2797_v16 = vld [vmem:[%s5048_s2 + $0x90] sm:$0xff]  ;;  %v2798_v55 = vld [vmem:[%s5048_s2 + $0x98] sm:$0xff] }
0x2d28   :  { %v2666_v42 = vadd.f32 %v3193_v45, %v2665_v30  ;;  %v2702_v20 = vmul.f32 %v3202_v9, %v2686_v46  ;;  %3730 = vmatpush3.bf16.msra.mxu1 %v3729_v59  ;;  %v4075_v46 = vmov 6   ;;  %v2799_v30 = vld [vmem:[%s5048_s2 + $0xa0] sm:$0xff] }
0x2d29   :  { %v2689_v32 = vmax.f32 %v2671_v31, 0.0  ;;  %3731 = vmatprep.subr.bf16.mxu1 %v4073_v19  ;;  %v2800_v31 = vld [vmem:[%s5048_s2 + $0xa8] sm:$0xff] }
0x2d2a   :  { %v2688_v36 = vmax.f32 %v2666_v42, 0.0  ;;  %v3311_v53 = vpop.f32.mrb[42].mxu0  ;;  %2706 = vadd.xlane.f32.xlu0 %v2705_v22  ;;  %v3732_v22 = vpack.c.bf16 %v2798_v55, %v2797_v16  ;;  %v3735_v42 = vpack.c.bf16 %v2800_v31, %v2799_v30  ;;  %v2976_v55 = vld [vmem:[%s5048_s2 + $0x1a0] sm:$0xff]  ;;  %v2978_v30 = vld [vmem:[%s5048_s2 + $0x1b0] sm:$0xff]  ;;  %v2979_v31 = vld [vmem:[%s5048_s2 + $0x1b8] sm:$0xff] }
0x2d2b   :  { %v2675_v28 = vpop.f32.mrb[43].mxu0  ;;  %v2681_v8 = vadd.f32 %v3311_v53, %v3193_v45  ;;  %v2711_v62 = vmul.f32 %v3202_v9, %v2689_v32  ;;  %v2802_v53 = vld [vmem:[%s5048_s2 + $0xb8] sm:$0xff]  ;;  %v2882_v32 = vld [vmem:[%s5048_s2 + $0x108] sm:$0xff] }
0x2d2c   :  { %v2708_v52 = vmul.f32 %v3202_v9, %v2688_v36  ;;  %v2676_v6 = vadd.f32 %v3193_v45, %v2675_v28  ;;  %v4067_v45 = vmov 1   ;;  %3733 = vmatpush3.bf16.msra.mxu1 %v3732_v22  ;;  %v2801_v36 = vld [vmem:[%s5048_s2 + $0xb0] sm:$0xff]  ;;  %v2881_v28 = vld [vmem:[%s5048_s2 + $0x100] sm:$0xff]  ;;  %v2977_v22 = vld [vmem:[%s5048_s2 + $0x1a8] sm:$0xff] }
0x2d2d   :  { %v2691_v13 = vmax.f32 %v2681_v8, 0.0  ;;  %3831 = vset.pattern.permute.xlu0 %v4067_v45  ;;  %3734 = vmatprep.subr.bf16.mxu1 %v4073_v19  ;;  %v3741_v8 = vpack.c.bf16 %v2882_v32, %v2881_v28  ;;  %v2982_v28 = vld [vmem:[%s5048_s2 + $0x1d0] sm:$0xff]  ;;  %v2983_v32 = vld [vmem:[%s5048_s2 + $0x1d8] sm:$0xff] }
0x2d2e   :  { %v2690_v61 = vmax.f32 %v2676_v6, 0.0  ;;  %2709 = vadd.xlane.f32.xlu1 %v2708_v52  ;;  %2703 = vadd.xlane.f32.xlu0 %v2702_v20  ;;  %v3738_v20 = vpack.c.bf16 %v2802_v53, %v2801_v36  ;;  %v2883_v52 = vld [vmem:[%s5048_s2 + $0x110] sm:$0xff]  ;;  %v2884_v6 = vld [vmem:[%s5048_s2 + $0x118] sm:$0xff]  ;;  %v2980_v36 = vld [vmem:[%s5048_s2 + $0x1c0] sm:$0xff] }
0x2d2f   :  { %v2717_v57 = vmul.f32 %v3202_v9, %v2691_v13  ;;  %3742 = vmatpush3.bf16.msra.mxu0 %v3741_v8  ;;  %v2886_v13 = vld [vmem:[%s5048_s2 + $0x128] sm:$0xff]  ;;  %v2984_v8 = vld [vmem:[%s5048_s2 + $0x1e0] sm:$0xff] }
0x2d30   :  { %v2714_v43 = vmul.f32 %v3202_v9, %v2690_v61  ;;  %3736 = vmatpush3.bf16.msra.mxu1 %v3735_v42  ;;  %v3744_v61 = vpack.c.bf16 %v2884_v6, %v2883_v52  ;;  %3743 = vmatprep.subr.bf16.mxu0 %v4073_v19  ;;  %v3774_v42 = vpack.c.bf16 %v2979_v31, %v2978_v30  ;;  %v2981_v53 = vld [vmem:[%s5048_s2 + $0x1c8] sm:$0xff] }
0x2d31   :  { %3737 = vmatprep.subr.bf16.mxu1 %v4073_v19  ;;  %v3780_v52 = vpack.c.bf16 %v2983_v32, %v2982_v28  ;;  %v2985_v6 = vld [vmem:[%s5048_s2 + $0x1e8] sm:$0xff] }
0x2d32   :  { %2715 = vadd.xlane.f32.xlu1 %v2714_v43  ;;  %2712 = vadd.xlane.f32.xlu0 %v2711_v62  ;;  %v2885_v62 = vld [vmem:[%s5048_s2 + $0x120] sm:$0xff] }
0x2d33   :  { %3745 = vmatpush3.bf16.msra.mxu0 %v3744_v61  ;;  %v3747_v43 = vpack.c.bf16 %v2886_v13, %v2885_v62  ;;  %v3783_v61 = vpack.c.bf16 %v2985_v6, %v2984_v8  ;;  %v3203_v62 = vld [vmem:[%s5048_s2 + $0x282] ss:$0 sm:$0xff] }
0x2d34   :  { %3739 = vmatpush3.bf16.msra.mxu1 %v3738_v20  ;;  %3746 = vmatprep.subr.bf16.mxu0 %v4073_v19  ;;  %v3777_v20 = vpack.c.bf16 %v2981_v53, %v2980_v36 }
0x2d35   :  { %3764 = vmatprep.subr.bf16.mxu1 %v4073_v19 }
0x2d36   :  { %2718 = vadd.xlane.f32.xlu0 %v2717_v57  ;;  %v2887_v57 = vld [vmem:[%s5048_s2 + $0x130] sm:$0xff] }
0x2d37   :  { %3748 = vmatpush3.bf16.msra.mxu0 %v3747_v43 }
0x2d38   :  { %3749 = vmatprep.subr.bf16.mxu0 %v4073_v19 }
0x2db2   :  { %v2701_v33 = vpop.xlane.xlu1 %2700 }
0x2db3   :  { %v2698_v35 = vpop.xlane.xlu0 %2697 }
0x2db4   :  { %v2721_v48 = vsel %vm2720_vm3, %v2698_v35, %v2701_v33  ;;  %v2888_v35 = vld [vmem:[%s5048_s2 + $0x138] sm:$0xff] }
0x2db5   :  { %v3750_v33 = vpack.c.bf16 %v2888_v35, %v2887_v57 }
0x2db7   :  { %v2707_v37 = vpop.xlane.xlu0 %2706  ;;  %3751 = vmatpush3.bf16.msra.mxu0 %v3750_v33  ;;  %v2986_v33 = vld [vmem:[%s5048_s2 + $0x1f0] sm:$0xff] }
0x2db8   :  { %3752 = vmatprep.subr.bf16.mxu0 %v4073_v19 }
0x2dbb   :  { %v2710_v5 = vpop.xlane.xlu1 %2709  ;;  %v2704_v51 = vpop.xlane.xlu0 %2703 }
0x2dbc   :  { %v2723_v50 = vsel %vm2722_vm4, %v2721_v48, %v2704_v51  ;;  %v2890_v48 = vld [vmem:[%s5048_s2 + $0x148] sm:$0xff]  ;;  %v2891_v51 = vld [vmem:[%s5048_s2 + $0x150] sm:$0xff] }
0x2dbd   :  { %v2725_v18 = vsel %vm2724_vm5, %v2723_v50, %v2707_v37  ;;  %v2889_v37 = vld [vmem:[%s5048_s2 + $0x140] sm:$0xff]  ;;  %v2892_v50 = vld [vmem:[%s5048_s2 + $0x158] sm:$0xff] }
0x2dbe   :  { %v2727_v54 = vsel %vm2726_vm6, %v2725_v18, %v2710_v5  ;;  %v3753_v5 = vpack.c.bf16 %v2890_v48, %v2889_v37  ;;  %v3756_v18 = vpack.c.bf16 %v2892_v50, %v2891_v51  ;;  %v2987_v37 = vld [vmem:[%s5048_s2 + $0x1f8] sm:$0xff]  ;;  %v3064_v51 = vld [vmem:[%s5048_s2 + $0x208] sm:$0xff] }
0x2dbf   :  { %v2713_v29 = vpop.xlane.xlu0 %2712  ;;  %v2716_v11 = vpop.xlane.xlu1 %2715  ;;  %v3786_v48 = vpack.c.bf16 %v2987_v37, %v2986_v33 }
0x2dc0   :  { %v2729_v44 = vsel %vm2728_vm7, %v2727_v54, %v2713_v29  ;;  %3754 = vmatpush3.bf16.msra.mxu0 %v3753_v5  ;;  %v2893_v54 = vld [vmem:[%s5048_s2 + $0x160] sm:$0xff]  ;;  %v2894_v29 = vld [vmem:[%s5048_s2 + $0x168] sm:$0xff] }
0x2dc1   :  { %v2731_v47 = vsel %vm2730_vm8, %v2729_v44, %v2716_v11  ;;  %3755 = vmatprep.subr.bf16.mxu0 %v4073_v19  ;;  %v3759_v11 = vpack.c.bf16 %v2894_v29, %v2893_v54  ;;  %v3063_v5 = vld [vmem:[%s5048_s2 + $0x200] sm:$0xff] }
0x2dc2   :  { %v3789_v50 = vpack.c.bf16 %v3064_v51, %v3063_v5  ;;  %v3067_v29 = vld [vmem:[%s5048_s2 + $0x220] sm:$0xff] }
0x2dc3   :  { %v2719_v63 = vpop.xlane.xlu0 %2718 }
0x2dc4   :  { %v2733_v58 = vsel %vm2732_vm9, %v2731_v47, %v2719_v63  ;;  %3757 = vmatpush3.bf16.msra.mxu0 %v3756_v18  ;;  %v3066_v18 = vld [vmem:[%s5048_s2 + $0x218] sm:$0xff] }
0x2dc5   :  { %v2735_v49 = vsel %vm2734_vm10, %v2733_v58, -inf  ;;  %3758 = vmatprep.subr.bf16.mxu0 %v4073_v19 }
0x2dc6   :  { %2736 = vmax.xlane.f32.xlu1 %v2735_v49 }
0x2dc8   :  { %3760 = vmatpush3.bf16.msra.mxu0 %v3759_v11  ;;  %v3068_v11 = vld [vmem:[%s5048_s2 + $0x228] sm:$0xff] }
0x2dc9   :  { %3761 = vmatprep.subr.bf16.mxu0 %v4073_v19 }
0x2e53   :  { %v2737_v39 = vpop.xlane.xlu1 %2736 }
0x2e54   :  { %v2738_v2 = vsub.f32 %v2733_v58, %v2737_v39 }
0x2e56   :  { %v2739_v26 = vmul.f32 1.442695, %v2738_v2 }
0x2e58   :  { %4031 = vpow2.f32 %v2739_v26 }
0x2e62   :  { %v4032_v60 = vpop.eup %4031 }
0x2e63   :  { %v2741_v38 = vsel %vm2734_vm10, %v4032_v60, 0.0 }
0x2e64   :  { %2742 = vadd.xlane.f32.xlu0 %v2741_v38 }
0x2ef1   :  { %v2743_v40 = vpop.xlane.xlu0 %2742 }
0x2ef2   :  { %4033 = vrcp.f32 %v2743_v40 }
0x2efc   :  { %v4034_v1 = vpop.eup %4033 }
0x2efd   :  { %v2745_v9 = vmul.f32 %v4034_v1, %v4032_v60 }
0x2eff   :  { %2754 = vperm.xlu0 %3831, %v2745_v9   ;;  %2748 = vperm.xlu1 %3830, %v2745_v9  }
0x2f03   :  { %3832 = vset.pattern.permute.xlu1 %v4069_v24  ;;  %3838 = vset.pattern.permute.xlu0 %v4070_v12 }
0x2f04   :  { %2760 = vperm.xlu1 %3832, %v2745_v9  }
0x2f08   :  { %3833 = vset.pattern.permute.xlu1 %v4071_v41 }
0x2f09   :  { %2766 = vperm.xlu1 %3833, %v2745_v9  }
0x2f0d   :  { %3834 = vset.pattern.permute.xlu1 %v4072_v7 }
0x2f0e   :  { %2772 = vperm.xlu1 %3834, %v2745_v9  }
0x2f12   :  { %3835 = vset.pattern.permute.xlu1 %v4074_v21  ;;  %v2975_v21 = vld [vmem:[%s5048_s2 + $0x198] sm:$0xff] }
0x2f13   :  { %2778 = vperm.xlu1 %3835, %v2745_v9   ;;  %v3768_v16 = vpack.c.bf16 %v2975_v21, %v2974_v14 }
0x2f17   :  { %3836 = vset.pattern.permute.xlu1 %v4075_v46  ;;  %v3771_v46 = vpack.c.bf16 %v2977_v22, %v2976_v55 }
0x2f18   :  { %2784 = vperm.xlu1 %3836, %v2745_v9  }
0x2f1c   :  { %3837 = vset.pattern.permute.xlu1 %v4070_v12 }
0x2f1d   :  { %2790 = vperm.xlu1 %3837, %v2745_v9  }
0x2f7e   :  { %v2749_v44 = vpop.permute.xlu1 %2748  ;;  %v2755_v58 = vpop.permute.xlu0 %2754 }
0x2f7f   :  { %v2757_v39 = vmul.f32 %v2755_v58, %v4765_v17  ;;  %v2751_v2 = vmul.f32 %v2749_v44, %v4760_v3  ;;  %v3795_v44 = vpack.c.bf16 %v3068_v11, %v3067_v29 }
0x2f81   :  { %v2758_v38 = vadd.f32 %v2757_v39, %v2751_v2  ;;  %v3072_v39 = vld [vmem:[%s5048_s2 + $0x248] sm:$0xff] }
0x2f83   :  { %v2761_v47 = vpop.permute.xlu1 %2760 }
0x2f84   :  { %v2763_v26 = vmul.f32 %v2761_v47, %v4772_v23  ;;  %v3069_v47 = vld [vmem:[%s5048_s2 + $0x230] sm:$0xff] }
0x2f86   :  { %v2764_v4 = vadd.f32 %v2763_v26, %v2758_v38  ;;  %v3073_v26 = vld [vmem:[%s5048_s2 + $0x250] sm:$0xff] }
0x2f88   :  { %v2767_v63 = vpop.permute.xlu1 %2766 }
0x2f89   :  { %v2769_v45 = vmul.f32 %v2767_v63, %v4781_v56  ;;  %v2895_v56 = vld [vmem:[%s5048_s2 + $0x170] sm:$0xff]  ;;  %v3070_v63 = vld [vmem:[%s5048_s2 + $0x238] sm:$0xff] }
0x2f8a   :  { %v3798_v58 = vpack.c.bf16 %v3070_v63, %v3069_v47 }
0x2f8b   :  { %v2770_v1 = vadd.f32 %v2769_v45, %v2764_v4  ;;  %v3075_v45 = vld [vmem:[%s5048_s2 + $0x260] sm:$0xff]  ;;  %v3076_v4 = vld [vmem:[%s5048_s2 + $0x268] sm:$0xff] }
0x2f8d   :  { %v2773_v49 = vpop.permute.xlu1 %2772 }
0x2f8e   :  { %v2775_v40 = vmul.f32 %v2773_v49, %v4786_v10  ;;  %v2896_v10 = vld [vmem:[%s5048_s2 + $0x178] sm:$0xff]  ;;  %v3071_v49 = vld [vmem:[%s5048_s2 + $0x240] sm:$0xff] }
0x2f8f   :  { %v3801_v2 = vpack.c.bf16 %v3072_v39, %v3071_v49 }
0x2f90   :  { %v2776_v12 = vadd.f32 %v2775_v40, %v2770_v1  ;;  %v3807_v40 = vpack.c.bf16 %v3076_v4, %v3075_v45  ;;  %v3205_v1 = vld [vmem:[%s5048_s2 + $0x283] ss:$0 sm:$0xff] }
0x2f92   :  { %v2779_v60 = vpop.permute.xlu1 %2778 }
0x2f93   :  { %v2781_v9 = vmul.f32 %v2779_v60, %v4795_v25  ;;  %v3762_v25 = vpack.c.bf16 %v2896_v10, %v2895_v56  ;;  %v3074_v60 = vld [vmem:[%s5048_s2 + $0x258] sm:$0xff] }
0x2f94   :  { %v3804_v38 = vpack.c.bf16 %v3074_v60, %v3073_v26 }
0x2f95   :  { %v2782_v7 = vadd.f32 %v2781_v9, %v2776_v12  ;;  %3763 = vmatpush3.bf16.msra.mxu0 %v3762_v25  ;;  %v3207_v25 = vld [vmem:[%s5048_s2 + $0x285] ss:$0 sm:$0xff] }
0x2f96   :  { %3788 = vmatprep.subr.bf16.mxu0 %v4073_v19 }
0x2f97   :  { %v2785_v24 = vpop.permute.xlu1 %2784 }
0x2f98   :  { %v2787_v41 = vmul.f32 %v2785_v24, %v4800_v15  ;;  %v2972_v15 = vld [vmem:[%s5048_s2 + $0x180] sm:$0xff] }
0x2f9a   :  { %v2788_v27 = vadd.f32 %v2787_v41, %v2782_v7  ;;  %v3077_v7 = vld [vmem:[%s5048_s2 + $0x270] sm:$0xff] }
0x2f9c   :  { %v2791_v17 = vpop.permute.xlu1 %2790 }
0x2f9d   :  { %v2793_v3 = vmul.f32 %v2791_v17, %v4808_v34  ;;  %v2973_v34 = vld [vmem:[%s5048_s2 + $0x188] sm:$0xff]  ;;  %v3078_v17 = vld [vmem:[%s5048_s2 + $0x278] sm:$0xff] }
0x2f9e   :  { %v3765_v59 = vpack.c.bf16 %v2973_v34, %v2972_v15 }
0x2f9f   :  { %v2794_v23 = vadd.f32 %v2793_v3, %v2788_v27  ;;  %v3810_v27 = vpack.c.bf16 %v3078_v17, %v3077_v7 }
0x2fa1   :  { %3329 = vmatmul.mubr.msk.f32.vlgmr.msra.gmra.mrb[28].mxu1 %vm228_vm2, %v2794_v23 }
0x2fa2   :  { %3398 = vmatprep.mubr.msk.f32.mxu1 %vm4076_vm11, %v4064_v0  ;;  %3766 = vmatpush3.bf16.msra.mxu1 %v3765_v59 }
0x2fa3   :  { %3767 = vmatprep.subr.bf16.mxu1 %v4073_v19 }
0x2fa6   :  { %3769 = vmatpush3.bf16.msra.mxu1 %v3768_v16 }
0x2fa7   :  { %3770 = vmatprep.subr.bf16.mxu1 %v4073_v19 }
0x2faa   :  { %3772 = vmatpush3.bf16.msra.mxu1 %v3771_v46 }
0x2fab   :  { %3773 = vmatprep.subr.bf16.mxu1 %v4073_v19 }
0x2fae   :  { %3775 = vmatpush3.bf16.msra.mxu1 %v3774_v42 }
0x2faf   :  { %3776 = vmatprep.subr.bf16.mxu1 %v4073_v19 }
0x2fb2   :  { %3778 = vmatpush3.bf16.msra.mxu1 %v3777_v20 }
0x2fb3   :  { %3779 = vmatprep.subr.bf16.mxu1 %v4073_v19 }
0x2fb6   :  { %3781 = vmatpush3.bf16.msra.mxu1 %v3780_v52 }
0x2fb7   :  { %3782 = vmatprep.subr.bf16.mxu1 %v4073_v19 }
0x2fba   :  { %3784 = vmatpush3.bf16.msra.mxu1 %v3783_v61 }
0x2fbb   :  { %3785 = vmatprep.subr.bf16.mxu1 %v4073_v19 }
0x2fbe   :  { %3787 = vmatpush3.bf16.msra.mxu1 %v3786_v48 }
0x3074   :  { %v2876_v13 = vpop.f32.mrb[28].mxu1 }
0x3075   :  { %v2877_v43 = vadd.f32 %v3203_v62, %v2876_v13  ;;  %v3330_v57 = vpop.f32.mrb[29].mxu1 }
0x3077   :  { %v2880_v35 = vmax.f32 %v2877_v43, 0.0 }
0x3079   :  { %3364 = vmatmul.mubr.f32.vlgmr.msra.gmra.mrb[44].mxu0 %v2880_v35 }
0x307a   :  { %3433 = vmatprep.mubr.msk.f32.mxu0 %vm4076_vm11, %v4064_v0  ;;  %v3065_v0 = vld [vmem:[%s5048_s2 + $0x210] sm:$0xff]  ;;  %3790 = vmatpush3.bf16.msra.mxu0 %v3789_v50 }
0x307b   :  { %v3792_v54 = vpack.c.bf16 %v3066_v18, %v3065_v0  ;;  %3791 = vmatprep.subr.bf16.mxu0 %v4073_v19 }
0x307e   :  { %3793 = vmatpush3.bf16.msra.mxu0 %v3792_v54 }
0x307f   :  { %3794 = vmatprep.subr.bf16.mxu0 %v4073_v19 }
0x3082   :  { %3796 = vmatpush3.bf16.msra.mxu0 %v3795_v44 }
0x3083   :  { %3797 = vmatprep.subr.bf16.mxu0 %v4073_v19 }
0x3086   :  { %3799 = vmatpush3.bf16.msra.mxu0 %v3798_v58 }
0x3087   :  { %3800 = vmatprep.subr.bf16.mxu0 %v4073_v19 }
0x308a   :  { %3802 = vmatpush3.bf16.msra.mxu0 %v3801_v2 }
0x308b   :  { %3803 = vmatprep.subr.bf16.mxu0 %v4073_v19 }
0x308e   :  { %3805 = vmatpush3.bf16.msra.mxu0 %v3804_v38 }
0x308f   :  { %3806 = vmatprep.subr.bf16.mxu0 %v4073_v19 }
0x3092   :  { %3808 = vmatpush3.bf16.msra.mxu0 %v3807_v40 }
0x3093   :  { %3809 = vmatprep.subr.bf16.mxu0 %v4073_v19  ;;  %v3206_v19 = vld [vmem:[%s5048_s2 + $0x284] ss:$0 sm:$0xff] }
0x3096   :  { %3811 = vmatpush3.bf16.msra.mxu0 %v3810_v27 }
0x314c   :  { %v2967_v9 = vpop.f32.mrb[44].mxu0 }
0x314d   :  { %v2968_v24 = vadd.f32 %v3205_v1, %v2967_v9  ;;  %v3365_v12 = vpop.f32.mrb[45].mxu0 }
0x314f   :  { %v2971_v41 = vmax.f32 %v2968_v24, 0.0 }
0x3151   :  { %3399 = vmatmul.mubr.f32.vlgmr.msra.gmra.mrb[30].mxu1 %v2971_v41 }
0x3224   :  { %v3058_v3 = vpop.f32.mrb[30].mxu1 }
0x3225   :  { %v3059_v23 = vadd.f32 %v3206_v19, %v3058_v3  ;;  %v3400_v56 = vpop.f32.mrb[31].mxu1 }
0x3227   :  { %v3062_v10 = vmax.f32 %v3059_v23, 0.0 }
0x3229   :  { %3434 = vmatmul.mubr.f32.vlgmr.msra.gmra.mrb[46].mxu0 %v3062_v10 }
0x32fc   :  { %v3149_v15 = vpop.f32.mrb[46].mxu0 }
0x32fd   :  { %v3150_v34 = vadd.f32 %v3207_v25, %v3149_v15  ;;  %v3435_v14 = vpop.f32.mrb[47].mxu0 }
0x32ff   :  { %v3153_v59 = vmul.f32 0.5, %v3150_v34 }
0x3301   :  { %4035 = vtanh.f32 %v3153_v59 }
0x330b   :  { %v4036_v21 = vpop.eup %4035 }
0x330c   :  { %v3155_v16 = vadd.f32 1.0, %v4036_v21 }
0x330e   :  { %v3156_v55 = vmul.f32 0.5, %v3155_v16 }
0x3310   :  { %3157 = vst [vmem:[%s5049_s3] sm:$0xff] %v3156_v55 }
0x3311   :  { %3162 = vsyncpa [#allocation4], 1 }

</bundles_post_ra>
